<compile_context>
chip_gen: v5e
topology: v5e:2x2
jax: 0.10.0
libtpu: 0.0.40
codegen_flags: <defaults>
</compile_context>

<pallas_src>
import functools

import jax
import jax.numpy as jnp
import numpy as np
from jax.experimental import pallas as pl
from jax.experimental.pallas import tpu as pltpu


# ----------------------------------------------------------------------------
# Fused kernel: 2-layer bidirectional LSTM + select-last + FC.
# ----------------------------------------------------------------------------
def _fused_lstm_kernel(x_ref, mask_ref, lastm_ref,
                       wih0_ref, b0_ref, whh0f_ref, whh0b_ref,
                       wih1f_ref, wih1b_ref, b1_ref, whh1f_ref, whh1b_ref,
                       fcwf_ref, fcwb_ref, fcb_ref,
                       o_ref,
                       gates0_scr, out0f_scr, out0b_scr, gates1_scr,
                       *, seq_len, batch_p, hidden):
    T, Bp, H = seq_len, batch_p, hidden
    f32 = jnp.float32

    def cell(gates, h, c, m):
        # PyTorch gate order i, f, g, o.  Full-width EUP activations, then
        # static lane slices.
        sig = jax.nn.sigmoid(gates)
        th = jnp.tanh(gates)
        i_g = sig[:, 0 * H:1 * H]
        f_g = sig[:, 1 * H:2 * H]
        g_g = th[:, 2 * H:3 * H]
        o_g = sig[:, 3 * H:4 * H]
        c_new = f_g * c + i_g * g_g
        h_new = o_g * jnp.tanh(c_new)
        out = m * h_new                         # zero-padded (packed) output
        h_u = out + (1.0 - m) * h               # hold state past seq length
        c_u = m * c_new + (1.0 - m) * c
        return h_u, c_u, out

    # ---- Layer 0 input projection, fwd|bwd packed along gates (N = 8H). ----
    gates0_scr[...] = (jnp.dot(x_ref[...], wih0_ref[...],
                               preferred_element_type=f32) + b0_ref[...])

    # ---- Layer 0 recurrence: fwd & bwd interleaved (independent chains). ---
    z = jnp.zeros((Bp, H), f32)
    h0f, c0f, h0b, c0b = z, z, z, z
    for s in range(T):                          # T static -> static slices
        tf, tb = s, T - 1 - s
        rf, rb = tf * Bp, tb * Bp
        m_f = mask_ref[rf:rf + Bp, :]
        m_b = mask_ref[rb:rb + Bp, :]
        g_f = gates0_scr[rf:rf + Bp, 0:4 * H] + jnp.dot(
            h0f, whh0f_ref[...], preferred_element_type=f32)
        g_b = gates0_scr[rb:rb + Bp, 4 * H:8 * H] + jnp.dot(
            h0b, whh0b_ref[...], preferred_element_type=f32)
        h0f, c0f, of = cell(g_f, h0f, c0f, m_f)
        h0b, c0b, ob = cell(g_b, h0b, c0b, m_b)
        out0f_scr[rf:rf + Bp, :] = of
        out0b_scr[rb:rb + Bp, :] = ob

    # ---- Layer 1 input projection (concat avoided via split weights). ------
    gates1_scr[...] = (
        jnp.dot(out0f_scr[...], wih1f_ref[...], preferred_element_type=f32)
        + jnp.dot(out0b_scr[...], wih1b_ref[...], preferred_element_type=f32)
        + b1_ref[...])

    # ---- Layer 1 recurrence; only the last-valid-timestep outputs kept. ----
    h1f, c1f, h1b, c1b = z, z, z, z
    sel_b = z
    for s in range(T):
        tf, tb = s, T - 1 - s
        rf, rb = tf * Bp, tb * Bp
        m_f = mask_ref[rf:rf + Bp, :]
        m_b = mask_ref[rb:rb + Bp, :]
        g_f = gates1_scr[rf:rf + Bp, 0:4 * H] + jnp.dot(
            h1f, whh1f_ref[...], preferred_element_type=f32)
        g_b = gates1_scr[rb:rb + Bp, 4 * H:8 * H] + jnp.dot(
            h1b, whh1b_ref[...], preferred_element_type=f32)
        h1f, c1f, _ = cell(g_f, h1f, c1f, m_f)
        h1b, c1b, ob = cell(g_b, h1b, c1b, m_b)
        # backward half of the output at t = len[b]-1 (captured online).
        sel_b = sel_b + lastm_ref[rb:rb + Bp, :] * ob
    sel_f = h1f  # mask-held forward state == output at t = len[b]-1

    # ---- Final FC fused in the epilogue (dropout = identity, eval mode). ---
    # TODO(synk): nn.Dropout(0.5) is treated as identity (inference mode).
    o_ref[...] = (jnp.dot(sel_f, fcwf_ref[...], preferred_element_type=f32)
                  + jnp.dot(sel_b, fcwb_ref[...], preferred_element_type=f32)
                  + fcb_ref[...]).astype(o_ref.dtype)


def _full_spec(shape):
    zeros = (0,) * len(shape)
    return pl.BlockSpec(shape, lambda i, _z=zeros: _z)


# ----------------------------------------------------------------------------
# Full module forward (batch-first input, like the PyTorch module).
# ----------------------------------------------------------------------------
def lstm_wo_attention_forward(params, x0, lengths):
    """x0: (B, T, input_size) batch-first; lengths: (B,) int. Returns (B, 2)."""
    B, T, D = x0.shape
    H = params["l0_fwd"]["w_hh_t"].shape[0]
    Bp = max(8, ((B + 7) // 8) * 8)            # pad batch to a sublane tile

    x_t = jnp.transpose(x0, (1, 0, 2)).astype(jnp.float32)          # (T,B,D)
    x_t = jnp.pad(x_t, ((0, 0), (0, Bp - B), (0, 0)))
    x2d = x_t.reshape(T * Bp, D)

    lens = jnp.pad(lengths.astype(jnp.int32), (0, Bp - B))          # (Bp,)
    t_ids = jnp.arange(T, dtype=jnp.int32)[:, None]                 # (T,1)
    valid = (t_ids < lens[None, :]).astype(jnp.float32)             # (T,Bp)
    last = (t_ids == (lens[None, :] - 1)).astype(jnp.float32)       # (T,Bp)
    mask = jnp.broadcast_to(valid[:, :, None], (T, Bp, H)).reshape(T * Bp, H)
    lastm = jnp.broadcast_to(last[:, :, None], (T, Bp, H)).reshape(T * Bp, H)

    # Pack weights: fwd|bwd gate blocks side by side (N = 8H = 256 for H=32).
    p0f, p0b = params["l0_fwd"], params["l0_bwd"]
    p1f, p1b = params["l1_fwd"], params["l1_bwd"]
    wih0 = jnp.concatenate([p0f["w_ih_t"], p0b["w_ih_t"]], axis=1)  # (D, 8H)
    b0 = jnp.concatenate([p0f["b"], p0b["b"]], axis=1)              # (1, 8H)
    # layer-1 input is [out_fwd | out_bwd]; split W_ih rows to avoid a concat.
    wih1f = jnp.concatenate([p1f["w_ih_t"][:H], p1b["w_ih_t"][:H]], axis=1)
    wih1b = jnp.concatenate([p1f["w_ih_t"][H:], p1b["w_ih_t"][H:]], axis=1)
    b1 = jnp.concatenate([p1f["b"], p1b["b"]], axis=1)              # (1, 8H)
    fcwf = params["fc_w_t"][:H]                                     # (H, 2)
    fcwb = params["fc_w_t"][H:]                                     # (H, 2)
    fcb = params["fc_b2d"]                                          # (1, 2)

    args = (x2d, mask, lastm, wih0, b0, p0f["w_hh_t"], p0b["w_hh_t"],
            wih1f, wih1b, b1, p1f["w_hh_t"], p1b["w_hh_t"], fcwf, fcwb, fcb)

    kernel = functools.partial(_fused_lstm_kernel,
                               seq_len=T, batch_p=Bp, hidden=H)
    out = pl.pallas_call(
        kernel,
        out_shape=jax.ShapeDtypeStruct((Bp, 2), jnp.float32),
        grid=(1,),
        in_specs=[_full_spec(a.shape) for a in args],
        out_specs=_full_spec((Bp, 2)),
        scratch_shapes=[
            pltpu.VMEM((T * Bp, 8 * H), jnp.float32),   # layer-0 gates
            pltpu.VMEM((T * Bp, H), jnp.float32),       # layer-0 fwd outputs
            pltpu.VMEM((T * Bp, H), jnp.float32),       # layer-0 bwd outputs
            pltpu.VMEM((T * Bp, 8 * H), jnp.float32),   # layer-1 gates
        ],
        compiler_params=pltpu.CompilerParams(
            dimension_semantics=("arbitrary",),
            vmem_limit_bytes=32 * 1024 * 1024),
    )(*args)
    return out[:B]


# ----------------------------------------------------------------------------
# Deterministic parameter init (PyTorch-style U(-1/sqrt(fan), 1/sqrt(fan))).
# ----------------------------------------------------------------------------
def init_params(key, input_size, hidden_size, num_layers=2):
    params = {}
    bound = 1.0 / np.sqrt(hidden_size)

    def u(k, shape, bnd):
        return jax.random.uniform(k, shape, jnp.float32, -bnd, bnd)

    keys = jax.random.split(key, num_layers * 2 * 4 + 2)
    ki = 0
    for layer in range(num_layers):
        d_in = input_size if layer == 0 else 2 * hidden_size
        for dname in ("fwd", "bwd"):
            w_ih = u(keys[ki], (4 * hidden_size, d_in), bound); ki += 1
            w_hh = u(keys[ki], (4 * hidden_size, hidden_size), bound); ki += 1
            b_ih = u(keys[ki], (4 * hidden_size,), bound); ki += 1
            b_hh = u(keys[ki], (4 * hidden_size,), bound); ki += 1
            params[f"l{layer}_{dname}"] = {
                "w_ih_t": jnp.asarray(w_ih.T),          # (D_in, 4H)
                "w_hh_t": jnp.asarray(w_hh.T),          # (H, 4H)
                "b": (b_ih + b_hh).reshape(1, -1),      # (1, 4H)
            }
    fc_in = 2 * hidden_size                              # hidden * num_layers
    fb = 1.0 / np.sqrt(fc_in)
    fc_w = u(keys[ki], (2, fc_in), fb); ki += 1
    fc_b = u(keys[ki], (2,), fb); ki += 1
    params["fc_w_t"] = jnp.asarray(fc_w.T)               # (2H, 2)
    params["fc_b2d"] = fc_b.reshape(1, 2)
    return params


# ----------------------------------------------------------------------------
# Pure-JAX reference (same packed-sequence semantics) for verification.
# ----------------------------------------------------------------------------
def _lstm_dir_ref(x_tbd, lengths, w_ih_t, w_hh_t, b, reverse):
    seq_len, batch, _ = x_tbd.shape
    hidden = w_hh_t.shape[0]
    order = jnp.arange(seq_len)[::-1] if reverse else jnp.arange(seq_len)

    def step(carry, t):
        h, c = carry
        x = x_tbd[t]
        gates = (x @ w_ih_t + h @ w_hh_t + b)
        i = jax.nn.sigmoid(gates[:, :hidden])
        f = jax.nn.sigmoid(gates[:, hidden:2 * hidden])
        g = jnp.tanh(gates[:, 2 * hidden:3 * hidden])
        o = jax.nn.sigmoid(gates[:, 3 * hidden:])
        c_new = f * c + i * g
        h_new = o * jnp.tanh(c_new)
        valid = (lengths > t)[:, None]
        h = jnp.where(valid, h_new, h)
        c = jnp.where(valid, c_new, c)
        return (h, c), jnp.where(valid, h, 0.0)

    init = (jnp.zeros((batch, hidden), jnp.float32),
            jnp.zeros((batch, hidden), jnp.float32))
    _, outs = jax.lax.scan(step, init, order)
    return outs[::-1] if reverse else outs


def forward_ref(params, x0, lengths):
    batch = x0.shape[0]
    layer_in = jnp.transpose(x0, (1, 0, 2)).astype(jnp.float32)
    for layer in range(2):
        pf = params[f"l{layer}_fwd"]
        pb = params[f"l{layer}_bwd"]
        hf = _lstm_dir_ref(layer_in, lengths, pf["w_ih_t"], pf["w_hh_t"],
                           pf["b"][0], False)
        hb = _lstm_dir_ref(layer_in, lengths, pb["w_ih_t"], pb["w_hh_t"],
                           pb["b"][0], True)
        layer_in = jnp.concatenate([hf, hb], axis=-1)
    sel = layer_in[lengths - 1, jnp.arange(batch), :]
    return sel @ params["fc_w_t"] + params["fc_b2d"]


if __name__ == "__main__":
    INPUT_SIZE, HIDDEN, BATCH, SEQ = 128, 32, 4, 8   # small config of the module
    key = jax.random.PRNGKey(0)
    pkey, xkey = jax.random.split(key)

    params = init_params(pkey, INPUT_SIZE, HIDDEN)
    x0 = jax.random.normal(xkey, (BATCH, SEQ, INPUT_SIZE), jnp.float32)
    lengths = jnp.array([8, 5, 3, 6], dtype=jnp.int32)

    fwd = jax.jit(lstm_wo_attention_forward)
    z = fwd(params, x0, lengths)
    z = jax.block_until_ready(z)

    z_ref = forward_ref(params, x0, lengths)
    np.testing.assert_allclose(np.asarray(z), np.asarray(z_ref),
                               rtol=2e-3, atol=2e-3)
    print("KERNEL_OK")
</pallas_src>

<mosaic_0001>
module attributes {stable_mosaic.version = 11 : i64} {
  func.func @_fused_lstm_kernel(%arg0: i32, %arg1: memref<64x128xf32, #tpu.memory_space<vmem>>, %arg2: memref<64x32xf32, #tpu.memory_space<vmem>>, %arg3: memref<64x32xf32, #tpu.memory_space<vmem>>, %arg4: memref<128x256xf32, #tpu.memory_space<vmem>>, %arg5: memref<1x256xf32, #tpu.memory_space<vmem>>, %arg6: memref<32x128xf32, #tpu.memory_space<vmem>>, %arg7: memref<32x128xf32, #tpu.memory_space<vmem>>, %arg8: memref<32x256xf32, #tpu.memory_space<vmem>>, %arg9: memref<32x256xf32, #tpu.memory_space<vmem>>, %arg10: memref<1x256xf32, #tpu.memory_space<vmem>>, %arg11: memref<32x128xf32, #tpu.memory_space<vmem>>, %arg12: memref<32x128xf32, #tpu.memory_space<vmem>>, %arg13: memref<32x2xf32, #tpu.memory_space<vmem>>, %arg14: memref<32x2xf32, #tpu.memory_space<vmem>>, %arg15: memref<1x2xf32, #tpu.memory_space<vmem>>, %arg16: memref<8x2xf32, #tpu.memory_space<vmem>>, %arg17: memref<64x256xf32, #tpu.memory_space<vmem>>, %arg18: memref<64x32xf32, #tpu.memory_space<vmem>>, %arg19: memref<64x32xf32, #tpu.memory_space<vmem>>, %arg20: memref<64x256xf32, #tpu.memory_space<vmem>>) attributes {dimension_semantics = [#tpu.dimension_semantics<arbitrary>], iteration_bounds = array<i64: 1>, scalar_prefetch = 0 : i64, scratch_operands = 4 : i64, tpu.core_type = #tpu.core_type<tc>, window_params = [{pipeline_mode = #tpu.pipeline_mode<synchronous>, transform_indices = @transform_0, window_bounds = array<i64: 64, 128>}, {pipeline_mode = #tpu.pipeline_mode<synchronous>, transform_indices = @transform_1, window_bounds = array<i64: 64, 32>}, {pipeline_mode = #tpu.pipeline_mode<synchronous>, transform_indices = @transform_2, window_bounds = array<i64: 64, 32>}, {pipeline_mode = #tpu.pipeline_mode<synchronous>, transform_indices = @transform_3, window_bounds = array<i64: 128, 256>}, {pipeline_mode = #tpu.pipeline_mode<synchronous>, transform_indices = @transform_4, window_bounds = array<i64: 1, 256>}, {pipeline_mode = #tpu.pipeline_mode<synchronous>, transform_indices = @transform_5, window_bounds = array<i64: 32, 128>}, {pipeline_mode = #tpu.pipeline_mode<synchronous>, transform_indices = @transform_6, window_bounds = array<i64: 32, 128>}, {pipeline_mode = #tpu.pipeline_mode<synchronous>, transform_indices = @transform_7, window_bounds = array<i64: 32, 256>}, {pipeline_mode = #tpu.pipeline_mode<synchronous>, transform_indices = @transform_8, window_bounds = array<i64: 32, 256>}, {pipeline_mode = #tpu.pipeline_mode<synchronous>, transform_indices = @transform_9, window_bounds = array<i64: 1, 256>}, {pipeline_mode = #tpu.pipeline_mode<synchronous>, transform_indices = @transform_10, window_bounds = array<i64: 32, 128>}, {pipeline_mode = #tpu.pipeline_mode<synchronous>, transform_indices = @transform_11, window_bounds = array<i64: 32, 128>}, {pipeline_mode = #tpu.pipeline_mode<synchronous>, transform_indices = @transform_12, window_bounds = array<i64: 32, 2>}, {pipeline_mode = #tpu.pipeline_mode<synchronous>, transform_indices = @transform_13, window_bounds = array<i64: 32, 2>}, {pipeline_mode = #tpu.pipeline_mode<synchronous>, transform_indices = @transform_14, window_bounds = array<i64: 1, 2>}, {pipeline_mode = #tpu.pipeline_mode<synchronous>, transform_indices = @transform_15, window_bounds = array<i64: 8, 2>}]} {
    %c0 = arith.constant 0 : index
    %c0_0 = arith.constant 0 : index
    %0 = vector.load %arg1[%c0, %c0_0] : memref<64x128xf32, #tpu.memory_space<vmem>>, vector<64x128xf32>
    %c0_1 = arith.constant 0 : index
    %c0_2 = arith.constant 0 : index
    %1 = vector.load %arg4[%c0_1, %c0_2] : memref<128x256xf32, #tpu.memory_space<vmem>>, vector<128x256xf32>
    %cst = arith.constant dense<0.000000e+00> : vector<64x256xf32>
    %2 = tpu.matmul %0, %1, %cst {dimension_numbers = #tpu.dot_dimension_numbers<[1], [0], [0], [1], [0, 0, 1, 1], [], []>} : vector<64x128xf32>, vector<128x256xf32>, vector<64x256xf32> -> vector<64x256xf32>
    %c0_3 = arith.constant 0 : index
    %c0_4 = arith.constant 0 : index
    %3 = vector.load %arg5[%c0_3, %c0_4] : memref<1x256xf32, #tpu.memory_space<vmem>>, vector<1x256xf32>
    %4 = vector.broadcast %3 : vector<1x256xf32> to vector<64x256xf32>
    %5 = arith.addf %2, %4 : vector<64x256xf32>
    %c0_5 = arith.constant 0 : index
    %c0_6 = arith.constant 0 : index
    %6 = vector.load %arg17[%c0_5, %c0_6] : memref<64x256xf32, #tpu.memory_space<vmem>>, vector<64x256xf32>
    tpu.vector_store %arg17[%c0_5, %c0_6], %5 {strides = array<i32>} : memref<64x256xf32, #tpu.memory_space<vmem>>, vector<64x256xf32>,
    %cst_7 = arith.constant 0.000000e+00 : f32
    %7 = vector.broadcast %cst_7 : f32 to vector<8x32xf32>
    %c0_8 = arith.constant 0 : index
    %c0_9 = arith.constant 0 : index
    %8 = vector.load %arg2[%c0_8, %c0_9] : memref<64x32xf32, #tpu.memory_space<vmem>>, vector<8x32xf32>
    %c56 = arith.constant 56 : index
    %c0_10 = arith.constant 0 : index
    %9 = vector.load %arg2[%c56, %c0_10] : memref<64x32xf32, #tpu.memory_space<vmem>>, vector<8x32xf32>
    %c0_11 = arith.constant 0 : index
    %c0_12 = arith.constant 0 : index
    %10 = vector.load %arg17[%c0_11, %c0_12] : memref<64x256xf32, #tpu.memory_space<vmem>>, vector<8x128xf32>
    %c0_13 = arith.constant 0 : index
    %c0_14 = arith.constant 0 : index
    %11 = vector.load %arg6[%c0_13, %c0_14] : memref<32x128xf32, #tpu.memory_space<vmem>>, vector<32x128xf32>
    %cst_15 = arith.constant dense<0.000000e+00> : vector<8x128xf32>
    %12 = tpu.matmul %7, %11, %cst_15 {dimension_numbers = #tpu.dot_dimension_numbers<[1], [0], [0], [1], [0, 0, 1, 1], [], []>} : vector<8x32xf32>, vector<32x128xf32>, vector<8x128xf32> -> vector<8x128xf32>
    %13 = arith.addf %10, %12 : vector<8x128xf32>
    %c56_16 = arith.constant 56 : index
    %c128 = arith.constant 128 : index
    %14 = vector.load %arg17[%c56_16, %c128] : memref<64x256xf32, #tpu.memory_space<vmem>>, vector<8x128xf32>
    %c0_17 = arith.constant 0 : index
    %c0_18 = arith.constant 0 : index
    %15 = vector.load %arg7[%c0_17, %c0_18] : memref<32x128xf32, #tpu.memory_space<vmem>>, vector<32x128xf32>
    %cst_19 = arith.constant dense<0.000000e+00> : vector<8x128xf32>
    %16 = tpu.matmul %7, %15, %cst_19 {dimension_numbers = #tpu.dot_dimension_numbers<[1], [0], [0], [1], [0, 0, 1, 1], [], []>} : vector<8x32xf32>, vector<32x128xf32>, vector<8x128xf32> -> vector<8x128xf32>
    %17 = arith.addf %14, %16 : vector<8x128xf32>
    %18 = arith.negf %13 : vector<8x128xf32>
    %19 = math.exp %18 : vector<8x128xf32>
    %cst_20 = arith.constant 1.000000e+00 : f32
    %20 = vector.broadcast %cst_20 : f32 to vector<8x128xf32>
    %21 = arith.addf %20, %19 : vector<8x128xf32>
    %22 = arith.divf %20, %21 : vector<8x128xf32>
    %23 = math.tanh %13 : vector<8x128xf32>
    %24 = vector.extract_strided_slice %22 {offsets = [0, 0], sizes = [8, 32], strides = [1, 1]} : vector<8x128xf32> to vector<8x32xf32>
    %25 = vector.extract_strided_slice %22 {offsets = [0, 32], sizes = [8, 32], strides = [1, 1]} : vector<8x128xf32> to vector<8x32xf32>
    %26 = vector.extract_strided_slice %23 {offsets = [0, 64], sizes = [8, 32], strides = [1, 1]} : vector<8x128xf32> to vector<8x32xf32>
    %27 = vector.extract_strided_slice %22 {offsets = [0, 96], sizes = [8, 32], strides = [1, 1]} : vector<8x128xf32> to vector<8x32xf32>
    %28 = arith.mulf %25, %7 : vector<8x32xf32>
    %29 = arith.mulf %24, %26 : vector<8x32xf32>
    %30 = arith.addf %28, %29 : vector<8x32xf32>
    %31 = math.tanh %30 : vector<8x32xf32>
    %32 = arith.mulf %27, %31 : vector<8x32xf32>
    %33 = arith.mulf %8, %32 : vector<8x32xf32>
    %cst_21 = arith.constant 1.000000e+00 : f32
    %34 = vector.broadcast %cst_21 : f32 to vector<8x32xf32>
    %35 = arith.subf %34, %8 : vector<8x32xf32>
    %36 = arith.mulf %35, %7 : vector<8x32xf32>
    %37 = arith.addf %33, %36 : vector<8x32xf32>
    %38 = arith.mulf %8, %30 : vector<8x32xf32>
    %cst_22 = arith.constant 1.000000e+00 : f32
    %39 = vector.broadcast %cst_22 : f32 to vector<8x32xf32>
    %40 = arith.subf %39, %8 : vector<8x32xf32>
    %41 = arith.mulf %40, %7 : vector<8x32xf32>
    %42 = arith.addf %38, %41 : vector<8x32xf32>
    %43 = arith.negf %17 : vector<8x128xf32>
    %44 = math.exp %43 : vector<8x128xf32>
    %cst_23 = arith.constant 1.000000e+00 : f32
    %45 = vector.broadcast %cst_23 : f32 to vector<8x128xf32>
    %46 = arith.addf %45, %44 : vector<8x128xf32>
    %47 = arith.divf %45, %46 : vector<8x128xf32>
    %48 = math.tanh %17 : vector<8x128xf32>
    %49 = vector.extract_strided_slice %47 {offsets = [0, 0], sizes = [8, 32], strides = [1, 1]} : vector<8x128xf32> to vector<8x32xf32>
    %50 = vector.extract_strided_slice %47 {offsets = [0, 32], sizes = [8, 32], strides = [1, 1]} : vector<8x128xf32> to vector<8x32xf32>
    %51 = vector.extract_strided_slice %48 {offsets = [0, 64], sizes = [8, 32], strides = [1, 1]} : vector<8x128xf32> to vector<8x32xf32>
    %52 = vector.extract_strided_slice %47 {offsets = [0, 96], sizes = [8, 32], strides = [1, 1]} : vector<8x128xf32> to vector<8x32xf32>
    %53 = arith.mulf %50, %7 : vector<8x32xf32>
    %54 = arith.mulf %49, %51 : vector<8x32xf32>
    %55 = arith.addf %53, %54 : vector<8x32xf32>
    %56 = math.tanh %55 : vector<8x32xf32>
    %57 = arith.mulf %52, %56 : vector<8x32xf32>
    %58 = arith.mulf %9, %57 : vector<8x32xf32>
    %cst_24 = arith.constant 1.000000e+00 : f32
    %59 = vector.broadcast %cst_24 : f32 to vector<8x32xf32>
    %60 = arith.subf %59, %9 : vector<8x32xf32>
    %61 = arith.mulf %60, %7 : vector<8x32xf32>
    %62 = arith.addf %58, %61 : vector<8x32xf32>
    %63 = arith.mulf %9, %55 : vector<8x32xf32>
    %cst_25 = arith.constant 1.000000e+00 : f32
    %64 = vector.broadcast %cst_25 : f32 to vector<8x32xf32>
    %65 = arith.subf %64, %9 : vector<8x32xf32>
    %66 = arith.mulf %65, %7 : vector<8x32xf32>
    %67 = arith.addf %63, %66 : vector<8x32xf32>
    %c0_26 = arith.constant 0 : index
    %c0_27 = arith.constant 0 : index
    %68 = vector.load %arg18[%c0_26, %c0_27] : memref<64x32xf32, #tpu.memory_space<vmem>>, vector<8x32xf32>
    tpu.vector_store %arg18[%c0_26, %c0_27], %33 {strides = array<i32>} : memref<64x32xf32, #tpu.memory_space<vmem>>, vector<8x32xf32>,
    %c56_28 = arith.constant 56 : index
    %c0_29 = arith.constant 0 : index
    %69 = vector.load %arg19[%c56_28, %c0_29] : memref<64x32xf32, #tpu.memory_space<vmem>>, vector<8x32xf32>
    tpu.vector_store %arg19[%c56_28, %c0_29], %58 {strides = array<i32>} : memref<64x32xf32, #tpu.memory_space<vmem>>, vector<8x32xf32>,
    %c8 = arith.constant 8 : index
    %c0_30 = arith.constant 0 : index
    %70 = vector.load %arg2[%c8, %c0_30] : memref<64x32xf32, #tpu.memory_space<vmem>>, vector<8x32xf32>
    %c48 = arith.constant 48 : index
    %c0_31 = arith.constant 0 : index
    %71 = vector.load %arg2[%c48, %c0_31] : memref<64x32xf32, #tpu.memory_space<vmem>>, vector<8x32xf32>
    %c8_32 = arith.constant 8 : index
    %c0_33 = arith.constant 0 : index
    %72 = vector.load %arg17[%c8_32, %c0_33] : memref<64x256xf32, #tpu.memory_space<vmem>>, vector<8x128xf32>
    %c0_34 = arith.constant 0 : index
    %c0_35 = arith.constant 0 : index
    %73 = vector.load %arg6[%c0_34, %c0_35] : memref<32x128xf32, #tpu.memory_space<vmem>>, vector<32x128xf32>
    %cst_36 = arith.constant dense<0.000000e+00> : vector<8x128xf32>
    %74 = tpu.matmul %37, %73, %cst_36 {dimension_numbers = #tpu.dot_dimension_numbers<[1], [0], [0], [1], [0, 0, 1, 1], [], []>} : vector<8x32xf32>, vector<32x128xf32>, vector<8x128xf32> -> vector<8x128xf32>
    %75 = arith.addf %72, %74 : vector<8x128xf32>
    %c48_37 = arith.constant 48 : index
    %c128_38 = arith.constant 128 : index
    %76 = vector.load %arg17[%c48_37, %c128_38] : memref<64x256xf32, #tpu.memory_space<vmem>>, vector<8x128xf32>
    %c0_39 = arith.constant 0 : index
    %c0_40 = arith.constant 0 : index
    %77 = vector.load %arg7[%c0_39, %c0_40] : memref<32x128xf32, #tpu.memory_space<vmem>>, vector<32x128xf32>
    %cst_41 = arith.constant dense<0.000000e+00> : vector<8x128xf32>
    %78 = tpu.matmul %62, %77, %cst_41 {dimension_numbers = #tpu.dot_dimension_numbers<[1], [0], [0], [1], [0, 0, 1, 1], [], []>} : vector<8x32xf32>, vector<32x128xf32>, vector<8x128xf32> -> vector<8x128xf32>
    %79 = arith.addf %76, %78 : vector<8x128xf32>
    %80 = arith.negf %75 : vector<8x128xf32>
    %81 = math.exp %80 : vector<8x128xf32>
    %cst_42 = arith.constant 1.000000e+00 : f32
    %82 = vector.broadcast %cst_42 : f32 to vector<8x128xf32>
    %83 = arith.addf %82, %81 : vector<8x128xf32>
    %84 = arith.divf %82, %83 : vector<8x128xf32>
    %85 = math.tanh %75 : vector<8x128xf32>
    %86 = vector.extract_strided_slice %84 {offsets = [0, 0], sizes = [8, 32], strides = [1, 1]} : vector<8x128xf32> to vector<8x32xf32>
    %87 = vector.extract_strided_slice %84 {offsets = [0, 32], sizes = [8, 32], strides = [1, 1]} : vector<8x128xf32> to vector<8x32xf32>
    %88 = vector.extract_strided_slice %85 {offsets = [0, 64], sizes = [8, 32], strides = [1, 1]} : vector<8x128xf32> to vector<8x32xf32>
    %89 = vector.extract_strided_slice %84 {offsets = [0, 96], sizes = [8, 32], strides = [1, 1]} : vector<8x128xf32> to vector<8x32xf32>
    %90 = arith.mulf %87, %42 : vector<8x32xf32>
    %91 = arith.mulf %86, %88 : vector<8x32xf32>
    %92 = arith.addf %90, %91 : vector<8x32xf32>
    %93 = math.tanh %92 : vector<8x32xf32>
    %94 = arith.mulf %89, %93 : vector<8x32xf32>
    %95 = arith.mulf %70, %94 : vector<8x32xf32>
    %cst_43 = arith.constant 1.000000e+00 : f32
    %96 = vector.broadcast %cst_43 : f32 to vector<8x32xf32>
    %97 = arith.subf %96, %70 : vector<8x32xf32>
    %98 = arith.mulf %97, %37 : vector<8x32xf32>
    %99 = arith.addf %95, %98 : vector<8x32xf32>
    %100 = arith.mulf %70, %92 : vector<8x32xf32>
    %cst_44 = arith.constant 1.000000e+00 : f32
    %101 = vector.broadcast %cst_44 : f32 to vector<8x32xf32>
    %102 = arith.subf %101, %70 : vector<8x32xf32>
    %103 = arith.mulf %102, %42 : vector<8x32xf32>
    %104 = arith.addf %100, %103 : vector<8x32xf32>
    %105 = arith.negf %79 : vector<8x128xf32>
    %106 = math.exp %105 : vector<8x128xf32>
    %cst_45 = arith.constant 1.000000e+00 : f32
    %107 = vector.broadcast %cst_45 : f32 to vector<8x128xf32>
    %108 = arith.addf %107, %106 : vector<8x128xf32>
    %109 = arith.divf %107, %108 : vector<8x128xf32>
    %110 = math.tanh %79 : vector<8x128xf32>
    %111 = vector.extract_strided_slice %109 {offsets = [0, 0], sizes = [8, 32], strides = [1, 1]} : vector<8x128xf32> to vector<8x32xf32>
    %112 = vector.extract_strided_slice %109 {offsets = [0, 32], sizes = [8, 32], strides = [1, 1]} : vector<8x128xf32> to vector<8x32xf32>
    %113 = vector.extract_strided_slice %110 {offsets = [0, 64], sizes = [8, 32], strides = [1, 1]} : vector<8x128xf32> to vector<8x32xf32>
    %114 = vector.extract_strided_slice %109 {offsets = [0, 96], sizes = [8, 32], strides = [1, 1]} : vector<8x128xf32> to vector<8x32xf32>
    %115 = arith.mulf %112, %67 : vector<8x32xf32>
    %116 = arith.mulf %111, %113 : vector<8x32xf32>
    %117 = arith.addf %115, %116 : vector<8x32xf32>
    %118 = math.tanh %117 : vector<8x32xf32>
    %119 = arith.mulf %114, %118 : vector<8x32xf32>
    %120 = arith.mulf %71, %119 : vector<8x32xf32>
    %cst_46 = arith.constant 1.000000e+00 : f32
    %121 = vector.broadcast %cst_46 : f32 to vector<8x32xf32>
    %122 = arith.subf %121, %71 : vector<8x32xf32>
    %123 = arith.mulf %122, %62 : vector<8x32xf32>
    %124 = arith.addf %120, %123 : vector<8x32xf32>
    %125 = arith.mulf %71, %117 : vector<8x32xf32>
    %cst_47 = arith.constant 1.000000e+00 : f32
    %126 = vector.broadcast %cst_47 : f32 to vector<8x32xf32>
    %127 = arith.subf %126, %71 : vector<8x32xf32>
    %128 = arith.mulf %127, %67 : vector<8x32xf32>
    %129 = arith.addf %125, %128 : vector<8x32xf32>
    %c8_48 = arith.constant 8 : index
    %c0_49 = arith.constant 0 : index
    %130 = vector.load %arg18[%c8_48, %c0_49] : memref<64x32xf32, #tpu.memory_space<vmem>>, vector<8x32xf32>
    tpu.vector_store %arg18[%c8_48, %c0_49], %95 {strides = array<i32>} : memref<64x32xf32, #tpu.memory_space<vmem>>, vector<8x32xf32>,
    %c48_50 = arith.constant 48 : index
    %c0_51 = arith.constant 0 : index
    %131 = vector.load %arg19[%c48_50, %c0_51] : memref<64x32xf32, #tpu.memory_space<vmem>>, vector<8x32xf32>
    tpu.vector_store %arg19[%c48_50, %c0_51], %120 {strides = array<i32>} : memref<64x32xf32, #tpu.memory_space<vmem>>, vector<8x32xf32>,
    %c16 = arith.constant 16 : index
    %c0_52 = arith.constant 0 : index
    %132 = vector.load %arg2[%c16, %c0_52] : memref<64x32xf32, #tpu.memory_space<vmem>>, vector<8x32xf32>
    %c40 = arith.constant 40 : index
    %c0_53 = arith.constant 0 : index
    %133 = vector.load %arg2[%c40, %c0_53] : memref<64x32xf32, #tpu.memory_space<vmem>>, vector<8x32xf32>
    %c16_54 = arith.constant 16 : index
    %c0_55 = arith.constant 0 : index
    %134 = vector.load %arg17[%c16_54, %c0_55] : memref<64x256xf32, #tpu.memory_space<vmem>>, vector<8x128xf32>
    %c0_56 = arith.constant 0 : index
    %c0_57 = arith.constant 0 : index
    %135 = vector.load %arg6[%c0_56, %c0_57] : memref<32x128xf32, #tpu.memory_space<vmem>>, vector<32x128xf32>
    %cst_58 = arith.constant dense<0.000000e+00> : vector<8x128xf32>
    %136 = tpu.matmul %99, %135, %cst_58 {dimension_numbers = #tpu.dot_dimension_numbers<[1], [0], [0], [1], [0, 0, 1, 1], [], []>} : vector<8x32xf32>, vector<32x128xf32>, vector<8x128xf32> -> vector<8x128xf32>
    %137 = arith.addf %134, %136 : vector<8x128xf32>
    %c40_59 = arith.constant 40 : index
    %c128_60 = arith.constant 128 : index
    %138 = vector.load %arg17[%c40_59, %c128_60] : memref<64x256xf32, #tpu.memory_space<vmem>>, vector<8x128xf32>
    %c0_61 = arith.constant 0 : index
    %c0_62 = arith.constant 0 : index
    %139 = vector.load %arg7[%c0_61, %c0_62] : memref<32x128xf32, #tpu.memory_space<vmem>>, vector<32x128xf32>
    %cst_63 = arith.constant dense<0.000000e+00> : vector<8x128xf32>
    %140 = tpu.matmul %124, %139, %cst_63 {dimension_numbers = #tpu.dot_dimension_numbers<[1], [0], [0], [1], [0, 0, 1, 1], [], []>} : vector<8x32xf32>, vector<32x128xf32>, vector<8x128xf32> -> vector<8x128xf32>
    %141 = arith.addf %138, %140 : vector<8x128xf32>
    %142 = arith.negf %137 : vector<8x128xf32>
    %143 = math.exp %142 : vector<8x128xf32>
    %cst_64 = arith.constant 1.000000e+00 : f32
    %144 = vector.broadcast %cst_64 : f32 to vector<8x128xf32>
    %145 = arith.addf %144, %143 : vector<8x128xf32>
    %146 = arith.divf %144, %145 : vector<8x128xf32>
    %147 = math.tanh %137 : vector<8x128xf32>
    %148 = vector.extract_strided_slice %146 {offsets = [0, 0], sizes = [8, 32], strides = [1, 1]} : vector<8x128xf32> to vector<8x32xf32>
    %149 = vector.extract_strided_slice %146 {offsets = [0, 32], sizes = [8, 32], strides = [1, 1]} : vector<8x128xf32> to vector<8x32xf32>
    %150 = vector.extract_strided_slice %147 {offsets = [0, 64], sizes = [8, 32], strides = [1, 1]} : vector<8x128xf32> to vector<8x32xf32>
    %151 = vector.extract_strided_slice %146 {offsets = [0, 96], sizes = [8, 32], strides = [1, 1]} : vector<8x128xf32> to vector<8x32xf32>
    %152 = arith.mulf %149, %104 : vector<8x32xf32>
    %153 = arith.mulf %148, %150 : vector<8x32xf32>
    %154 = arith.addf %152, %153 : vector<8x32xf32>
    %155 = math.tanh %154 : vector<8x32xf32>
    %156 = arith.mulf %151, %155 : vector<8x32xf32>
    %157 = arith.mulf %132, %156 : vector<8x32xf32>
    %cst_65 = arith.constant 1.000000e+00 : f32
    %158 = vector.broadcast %cst_65 : f32 to vector<8x32xf32>
    %159 = arith.subf %158, %132 : vector<8x32xf32>
    %160 = arith.mulf %159, %99 : vector<8x32xf32>
    %161 = arith.addf %157, %160 : vector<8x32xf32>
    %162 = arith.mulf %132, %154 : vector<8x32xf32>
    %cst_66 = arith.constant 1.000000e+00 : f32
    %163 = vector.broadcast %cst_66 : f32 to vector<8x32xf32>
    %164 = arith.subf %163, %132 : vector<8x32xf32>
    %165 = arith.mulf %164, %104 : vector<8x32xf32>
    %166 = arith.addf %162, %165 : vector<8x32xf32>
    %167 = arith.negf %141 : vector<8x128xf32>
    %168 = math.exp %167 : vector<8x128xf32>
    %cst_67 = arith.constant 1.000000e+00 : f32
    %169 = vector.broadcast %cst_67 : f32 to vector<8x128xf32>
    %170 = arith.addf %169, %168 : vector<8x128xf32>
    %171 = arith.divf %169, %170 : vector<8x128xf32>
    %172 = math.tanh %141 : vector<8x128xf32>
    %173 = vector.extract_strided_slice %171 {offsets = [0, 0], sizes = [8, 32], strides = [1, 1]} : vector<8x128xf32> to vector<8x32xf32>
    %174 = vector.extract_strided_slice %171 {offsets = [0, 32], sizes = [8, 32], strides = [1, 1]} : vector<8x128xf32> to vector<8x32xf32>
    %175 = vector.extract_strided_slice %172 {offsets = [0, 64], sizes = [8, 32], strides = [1, 1]} : vector<8x128xf32> to vector<8x32xf32>
    %176 = vector.extract_strided_slice %171 {offsets = [0, 96], sizes = [8, 32], strides = [1, 1]} : vector<8x128xf32> to vector<8x32xf32>
    %177 = arith.mulf %174, %129 : vector<8x32xf32>
    %178 = arith.mulf %173, %175 : vector<8x32xf32>
    %179 = arith.addf %177, %178 : vector<8x32xf32>
    %180 = math.tanh %179 : vector<8x32xf32>
    %181 = arith.mulf %176, %180 : vector<8x32xf32>
    %182 = arith.mulf %133, %181 : vector<8x32xf32>
    %cst_68 = arith.constant 1.000000e+00 : f32
    %183 = vector.broadcast %cst_68 : f32 to vector<8x32xf32>
    %184 = arith.subf %183, %133 : vector<8x32xf32>
    %185 = arith.mulf %184, %124 : vector<8x32xf32>
    %186 = arith.addf %182, %185 : vector<8x32xf32>
    %187 = arith.mulf %133, %179 : vector<8x32xf32>
    %cst_69 = arith.constant 1.000000e+00 : f32
    %188 = vector.broadcast %cst_69 : f32 to vector<8x32xf32>
    %189 = arith.subf %188, %133 : vector<8x32xf32>
    %190 = arith.mulf %189, %129 : vector<8x32xf32>
    %191 = arith.addf %187, %190 : vector<8x32xf32>
    %c16_70 = arith.constant 16 : index
    %c0_71 = arith.constant 0 : index
    %192 = vector.load %arg18[%c16_70, %c0_71] : memref<64x32xf32, #tpu.memory_space<vmem>>, vector<8x32xf32>
    tpu.vector_store %arg18[%c16_70, %c0_71], %157 {strides = array<i32>} : memref<64x32xf32, #tpu.memory_space<vmem>>, vector<8x32xf32>,
    %c40_72 = arith.constant 40 : index
    %c0_73 = arith.constant 0 : index
    %193 = vector.load %arg19[%c40_72, %c0_73] : memref<64x32xf32, #tpu.memory_space<vmem>>, vector<8x32xf32>
    tpu.vector_store %arg19[%c40_72, %c0_73], %182 {strides = array<i32>} : memref<64x32xf32, #tpu.memory_space<vmem>>, vector<8x32xf32>,
    %c24 = arith.constant 24 : index
    %c0_74 = arith.constant 0 : index
    %194 = vector.load %arg2[%c24, %c0_74] : memref<64x32xf32, #tpu.memory_space<vmem>>, vector<8x32xf32>
    %c32 = arith.constant 32 : index
    %c0_75 = arith.constant 0 : index
    %195 = vector.load %arg2[%c32, %c0_75] : memref<64x32xf32, #tpu.memory_space<vmem>>, vector<8x32xf32>
    %c24_76 = arith.constant 24 : index
    %c0_77 = arith.constant 0 : index
    %196 = vector.load %arg17[%c24_76, %c0_77] : memref<64x256xf32, #tpu.memory_space<vmem>>, vector<8x128xf32>
    %c0_78 = arith.constant 0 : index
    %c0_79 = arith.constant 0 : index
    %197 = vector.load %arg6[%c0_78, %c0_79] : memref<32x128xf32, #tpu.memory_space<vmem>>, vector<32x128xf32>
    %cst_80 = arith.constant dense<0.000000e+00> : vector<8x128xf32>
    %198 = tpu.matmul %161, %197, %cst_80 {dimension_numbers = #tpu.dot_dimension_numbers<[1], [0], [0], [1], [0, 0, 1, 1], [], []>} : vector<8x32xf32>, vector<32x128xf32>, vector<8x128xf32> -> vector<8x128xf32>
    %199 = arith.addf %196, %198 : vector<8x128xf32>
    %c32_81 = arith.constant 32 : index
    %c128_82 = arith.constant 128 : index
    %200 = vector.load %arg17[%c32_81, %c128_82] : memref<64x256xf32, #tpu.memory_space<vmem>>, vector<8x128xf32>
    %c0_83 = arith.constant 0 : index
    %c0_84 = arith.constant 0 : index
    %201 = vector.load %arg7[%c0_83, %c0_84] : memref<32x128xf32, #tpu.memory_space<vmem>>, vector<32x128xf32>
    %cst_85 = arith.constant dense<0.000000e+00> : vector<8x128xf32>
    %202 = tpu.matmul %186, %201, %cst_85 {dimension_numbers = #tpu.dot_dimension_numbers<[1], [0], [0], [1], [0, 0, 1, 1], [], []>} : vector<8x32xf32>, vector<32x128xf32>, vector<8x128xf32> -> vector<8x128xf32>
    %203 = arith.addf %200, %202 : vector<8x128xf32>
    %204 = arith.negf %199 : vector<8x128xf32>
    %205 = math.exp %204 : vector<8x128xf32>
    %cst_86 = arith.constant 1.000000e+00 : f32
    %206 = vector.broadcast %cst_86 : f32 to vector<8x128xf32>
    %207 = arith.addf %206, %205 : vector<8x128xf32>
    %208 = arith.divf %206, %207 : vector<8x128xf32>
    %209 = math.tanh %199 : vector<8x128xf32>
    %210 = vector.extract_strided_slice %208 {offsets = [0, 0], sizes = [8, 32], strides = [1, 1]} : vector<8x128xf32> to vector<8x32xf32>
    %211 = vector.extract_strided_slice %208 {offsets = [0, 32], sizes = [8, 32], strides = [1, 1]} : vector<8x128xf32> to vector<8x32xf32>
    %212 = vector.extract_strided_slice %209 {offsets = [0, 64], sizes = [8, 32], strides = [1, 1]} : vector<8x128xf32> to vector<8x32xf32>
    %213 = vector.extract_strided_slice %208 {offsets = [0, 96], sizes = [8, 32], strides = [1, 1]} : vector<8x128xf32> to vector<8x32xf32>
    %214 = arith.mulf %211, %166 : vector<8x32xf32>
    %215 = arith.mulf %210, %212 : vector<8x32xf32>
    %216 = arith.addf %214, %215 : vector<8x32xf32>
    %217 = math.tanh %216 : vector<8x32xf32>
    %218 = arith.mulf %213, %217 : vector<8x32xf32>
    %219 = arith.mulf %194, %218 : vector<8x32xf32>
    %cst_87 = arith.constant 1.000000e+00 : f32
    %220 = vector.broadcast %cst_87 : f32 to vector<8x32xf32>
    %221 = arith.subf %220, %194 : vector<8x32xf32>
    %222 = arith.mulf %221, %161 : vector<8x32xf32>
    %223 = arith.addf %219, %222 : vector<8x32xf32>
    %224 = arith.mulf %194, %216 : vector<8x32xf32>
    %cst_88 = arith.constant 1.000000e+00 : f32
    %225 = vector.broadcast %cst_88 : f32 to vector<8x32xf32>
    %226 = arith.subf %225, %194 : vector<8x32xf32>
    %227 = arith.mulf %226, %166 : vector<8x32xf32>
    %228 = arith.addf %224, %227 : vector<8x32xf32>
    %229 = arith.negf %203 : vector<8x128xf32>
    %230 = math.exp %229 : vector<8x128xf32>
    %cst_89 = arith.constant 1.000000e+00 : f32
    %231 = vector.broadcast %cst_89 : f32 to vector<8x128xf32>
    %232 = arith.addf %231, %230 : vector<8x128xf32>
    %233 = arith.divf %231, %232 : vector<8x128xf32>
    %234 = math.tanh %203 : vector<8x128xf32>
    %235 = vector.extract_strided_slice %233 {offsets = [0, 0], sizes = [8, 32], strides = [1, 1]} : vector<8x128xf32> to vector<8x32xf32>
    %236 = vector.extract_strided_slice %233 {offsets = [0, 32], sizes = [8, 32], strides = [1, 1]} : vector<8x128xf32> to vector<8x32xf32>
    %237 = vector.extract_strided_slice %234 {offsets = [0, 64], sizes = [8, 32], strides = [1, 1]} : vector<8x128xf32> to vector<8x32xf32>
    %238 = vector.extract_strided_slice %233 {offsets = [0, 96], sizes = [8, 32], strides = [1, 1]} : vector<8x128xf32> to vector<8x32xf32>
    %239 = arith.mulf %236, %191 : vector<8x32xf32>
    %240 = arith.mulf %235, %237 : vector<8x32xf32>
    %241 = arith.addf %239, %240 : vector<8x32xf32>
    %242 = math.tanh %241 : vector<8x32xf32>
    %243 = arith.mulf %238, %242 : vector<8x32xf32>
    %244 = arith.mulf %195, %243 : vector<8x32xf32>
    %cst_90 = arith.constant 1.000000e+00 : f32
    %245 = vector.broadcast %cst_90 : f32 to vector<8x32xf32>
    %246 = arith.subf %245, %195 : vector<8x32xf32>
    %247 = arith.mulf %246, %186 : vector<8x32xf32>
    %248 = arith.addf %244, %247 : vector<8x32xf32>
    %249 = arith.mulf %195, %241 : vector<8x32xf32>
    %cst_91 = arith.constant 1.000000e+00 : f32
    %250 = vector.broadcast %cst_91 : f32 to vector<8x32xf32>
    %251 = arith.subf %250, %195 : vector<8x32xf32>
    %252 = arith.mulf %251, %191 : vector<8x32xf32>
    %253 = arith.addf %249, %252 : vector<8x32xf32>
    %c24_92 = arith.constant 24 : index
    %c0_93 = arith.constant 0 : index
    %254 = vector.load %arg18[%c24_92, %c0_93] : memref<64x32xf32, #tpu.memory_space<vmem>>, vector<8x32xf32>
    tpu.vector_store %arg18[%c24_92, %c0_93], %219 {strides = array<i32>} : memref<64x32xf32, #tpu.memory_space<vmem>>, vector<8x32xf32>,
    %c32_94 = arith.constant 32 : index
    %c0_95 = arith.constant 0 : index
    %255 = vector.load %arg19[%c32_94, %c0_95] : memref<64x32xf32, #tpu.memory_space<vmem>>, vector<8x32xf32>
    tpu.vector_store %arg19[%c32_94, %c0_95], %244 {strides = array<i32>} : memref<64x32xf32, #tpu.memory_space<vmem>>, vector<8x32xf32>,
    %c32_96 = arith.constant 32 : index
    %c0_97 = arith.constant 0 : index
    %256 = vector.load %arg2[%c32_96, %c0_97] : memref<64x32xf32, #tpu.memory_space<vmem>>, vector<8x32xf32>
    %c24_98 = arith.constant 24 : index
    %c0_99 = arith.constant 0 : index
    %257 = vector.load %arg2[%c24_98, %c0_99] : memref<64x32xf32, #tpu.memory_space<vmem>>, vector<8x32xf32>
    %c32_100 = arith.constant 32 : index
    %c0_101 = arith.constant 0 : index
    %258 = vector.load %arg17[%c32_100, %c0_101] : memref<64x256xf32, #tpu.memory_space<vmem>>, vector<8x128xf32>
    %c0_102 = arith.constant 0 : index
    %c0_103 = arith.constant 0 : index
    %259 = vector.load %arg6[%c0_102, %c0_103] : memref<32x128xf32, #tpu.memory_space<vmem>>, vector<32x128xf32>
    %cst_104 = arith.constant dense<0.000000e+00> : vector<8x128xf32>
    %260 = tpu.matmul %223, %259, %cst_104 {dimension_numbers = #tpu.dot_dimension_numbers<[1], [0], [0], [1], [0, 0, 1, 1], [], []>} : vector<8x32xf32>, vector<32x128xf32>, vector<8x128xf32> -> vector<8x128xf32>
    %261 = arith.addf %258, %260 : vector<8x128xf32>
    %c24_105 = arith.constant 24 : index
    %c128_106 = arith.constant 128 : index
    %262 = vector.load %arg17[%c24_105, %c128_106] : memref<64x256xf32, #tpu.memory_space<vmem>>, vector<8x128xf32>
    %c0_107 = arith.constant 0 : index
    %c0_108 = arith.constant 0 : index
    %263 = vector.load %arg7[%c0_107, %c0_108] : memref<32x128xf32, #tpu.memory_space<vmem>>, vector<32x128xf32>
    %cst_109 = arith.constant dense<0.000000e+00> : vector<8x128xf32>
    %264 = tpu.matmul %248, %263, %cst_109 {dimension_numbers = #tpu.dot_dimension_numbers<[1], [0], [0], [1], [0, 0, 1, 1], [], []>} : vector<8x32xf32>, vector<32x128xf32>, vector<8x128xf32> -> vector<8x128xf32>
    %265 = arith.addf %262, %264 : vector<8x128xf32>
    %266 = arith.negf %261 : vector<8x128xf32>
    %267 = math.exp %266 : vector<8x128xf32>
    %cst_110 = arith.constant 1.000000e+00 : f32
    %268 = vector.broadcast %cst_110 : f32 to vector<8x128xf32>
    %269 = arith.addf %268, %267 : vector<8x128xf32>
    %270 = arith.divf %268, %269 : vector<8x128xf32>
    %271 = math.tanh %261 : vector<8x128xf32>
    %272 = vector.extract_strided_slice %270 {offsets = [0, 0], sizes = [8, 32], strides = [1, 1]} : vector<8x128xf32> to vector<8x32xf32>
    %273 = vector.extract_strided_slice %270 {offsets = [0, 32], sizes = [8, 32], strides = [1, 1]} : vector<8x128xf32> to vector<8x32xf32>
    %274 = vector.extract_strided_slice %271 {offsets = [0, 64], sizes = [8, 32], strides = [1, 1]} : vector<8x128xf32> to vector<8x32xf32>
    %275 = vector.extract_strided_slice %270 {offsets = [0, 96], sizes = [8, 32], strides = [1, 1]} : vector<8x128xf32> to vector<8x32xf32>
    %276 = arith.mulf %273, %228 : vector<8x32xf32>
    %277 = arith.mulf %272, %274 : vector<8x32xf32>
    %278 = arith.addf %276, %277 : vector<8x32xf32>
    %279 = math.tanh %278 : vector<8x32xf32>
    %280 = arith.mulf %275, %279 : vector<8x32xf32>
    %281 = arith.mulf %256, %280 : vector<8x32xf32>
    %cst_111 = arith.constant 1.000000e+00 : f32
    %282 = vector.broadcast %cst_111 : f32 to vector<8x32xf32>
    %283 = arith.subf %282, %256 : vector<8x32xf32>
    %284 = arith.mulf %283, %223 : vector<8x32xf32>
    %285 = arith.addf %281, %284 : vector<8x32xf32>
    %286 = arith.mulf %256, %278 : vector<8x32xf32>
    %cst_112 = arith.constant 1.000000e+00 : f32
    %287 = vector.broadcast %cst_112 : f32 to vector<8x32xf32>
    %288 = arith.subf %287, %256 : vector<8x32xf32>
    %289 = arith.mulf %288, %228 : vector<8x32xf32>
    %290 = arith.addf %286, %289 : vector<8x32xf32>
    %291 = arith.negf %265 : vector<8x128xf32>
    %292 = math.exp %291 : vector<8x128xf32>
    %cst_113 = arith.constant 1.000000e+00 : f32
    %293 = vector.broadcast %cst_113 : f32 to vector<8x128xf32>
    %294 = arith.addf %293, %292 : vector<8x128xf32>
    %295 = arith.divf %293, %294 : vector<8x128xf32>
    %296 = math.tanh %265 : vector<8x128xf32>
    %297 = vector.extract_strided_slice %295 {offsets = [0, 0], sizes = [8, 32], strides = [1, 1]} : vector<8x128xf32> to vector<8x32xf32>
    %298 = vector.extract_strided_slice %295 {offsets = [0, 32], sizes = [8, 32], strides = [1, 1]} : vector<8x128xf32> to vector<8x32xf32>
    %299 = vector.extract_strided_slice %296 {offsets = [0, 64], sizes = [8, 32], strides = [1, 1]} : vector<8x128xf32> to vector<8x32xf32>
    %300 = vector.extract_strided_slice %295 {offsets = [0, 96], sizes = [8, 32], strides = [1, 1]} : vector<8x128xf32> to vector<8x32xf32>
    %301 = arith.mulf %298, %253 : vector<8x32xf32>
    %302 = arith.mulf %297, %299 : vector<8x32xf32>
    %303 = arith.addf %301, %302 : vector<8x32xf32>
    %304 = math.tanh %303 : vector<8x32xf32>
    %305 = arith.mulf %300, %304 : vector<8x32xf32>
    %306 = arith.mulf %257, %305 : vector<8x32xf32>
    %cst_114 = arith.constant 1.000000e+00 : f32
    %307 = vector.broadcast %cst_114 : f32 to vector<8x32xf32>
    %308 = arith.subf %307, %257 : vector<8x32xf32>
    %309 = arith.mulf %308, %248 : vector<8x32xf32>
    %310 = arith.addf %306, %309 : vector<8x32xf32>
    %311 = arith.mulf %257, %303 : vector<8x32xf32>
    %cst_115 = arith.constant 1.000000e+00 : f32
    %312 = vector.broadcast %cst_115 : f32 to vector<8x32xf32>
    %313 = arith.subf %312, %257 : vector<8x32xf32>
    %314 = arith.mulf %313, %253 : vector<8x32xf32>
    %315 = arith.addf %311, %314 : vector<8x32xf32>
    %c32_116 = arith.constant 32 : index
    %c0_117 = arith.constant 0 : index
    %316 = vector.load %arg18[%c32_116, %c0_117] : memref<64x32xf32, #tpu.memory_space<vmem>>, vector<8x32xf32>
    tpu.vector_store %arg18[%c32_116, %c0_117], %281 {strides = array<i32>} : memref<64x32xf32, #tpu.memory_space<vmem>>, vector<8x32xf32>,
    %c24_118 = arith.constant 24 : index
    %c0_119 = arith.constant 0 : index
    %317 = vector.load %arg19[%c24_118, %c0_119] : memref<64x32xf32, #tpu.memory_space<vmem>>, vector<8x32xf32>
    tpu.vector_store %arg19[%c24_118, %c0_119], %306 {strides = array<i32>} : memref<64x32xf32, #tpu.memory_space<vmem>>, vector<8x32xf32>,
    %c40_120 = arith.constant 40 : index
    %c0_121 = arith.constant 0 : index
    %318 = vector.load %arg2[%c40_120, %c0_121] : memref<64x32xf32, #tpu.memory_space<vmem>>, vector<8x32xf32>
    %c16_122 = arith.constant 16 : index
    %c0_123 = arith.constant 0 : index
    %319 = vector.load %arg2[%c16_122, %c0_123] : memref<64x32xf32, #tpu.memory_space<vmem>>, vector<8x32xf32>
    %c40_124 = arith.constant 40 : index
    %c0_125 = arith.constant 0 : index
    %320 = vector.load %arg17[%c40_124, %c0_125] : memref<64x256xf32, #tpu.memory_space<vmem>>, vector<8x128xf32>
    %c0_126 = arith.constant 0 : index
    %c0_127 = arith.constant 0 : index
    %321 = vector.load %arg6[%c0_126, %c0_127] : memref<32x128xf32, #tpu.memory_space<vmem>>, vector<32x128xf32>
    %cst_128 = arith.constant dense<0.000000e+00> : vector<8x128xf32>
    %322 = tpu.matmul %285, %321, %cst_128 {dimension_numbers = #tpu.dot_dimension_numbers<[1], [0], [0], [1], [0, 0, 1, 1], [], []>} : vector<8x32xf32>, vector<32x128xf32>, vector<8x128xf32> -> vector<8x128xf32>
    %323 = arith.addf %320, %322 : vector<8x128xf32>
    %c16_129 = arith.constant 16 : index
    %c128_130 = arith.constant 128 : index
    %324 = vector.load %arg17[%c16_129, %c128_130] : memref<64x256xf32, #tpu.memory_space<vmem>>, vector<8x128xf32>
    %c0_131 = arith.constant 0 : index
    %c0_132 = arith.constant 0 : index
    %325 = vector.load %arg7[%c0_131, %c0_132] : memref<32x128xf32, #tpu.memory_space<vmem>>, vector<32x128xf32>
    %cst_133 = arith.constant dense<0.000000e+00> : vector<8x128xf32>
    %326 = tpu.matmul %310, %325, %cst_133 {dimension_numbers = #tpu.dot_dimension_numbers<[1], [0], [0], [1], [0, 0, 1, 1], [], []>} : vector<8x32xf32>, vector<32x128xf32>, vector<8x128xf32> -> vector<8x128xf32>
    %327 = arith.addf %324, %326 : vector<8x128xf32>
    %328 = arith.negf %323 : vector<8x128xf32>
    %329 = math.exp %328 : vector<8x128xf32>
    %cst_134 = arith.constant 1.000000e+00 : f32
    %330 = vector.broadcast %cst_134 : f32 to vector<8x128xf32>
    %331 = arith.addf %330, %329 : vector<8x128xf32>
    %332 = arith.divf %330, %331 : vector<8x128xf32>
    %333 = math.tanh %323 : vector<8x128xf32>
    %334 = vector.extract_strided_slice %332 {offsets = [0, 0], sizes = [8, 32], strides = [1, 1]} : vector<8x128xf32> to vector<8x32xf32>
    %335 = vector.extract_strided_slice %332 {offsets = [0, 32], sizes = [8, 32], strides = [1, 1]} : vector<8x128xf32> to vector<8x32xf32>
    %336 = vector.extract_strided_slice %333 {offsets = [0, 64], sizes = [8, 32], strides = [1, 1]} : vector<8x128xf32> to vector<8x32xf32>
    %337 = vector.extract_strided_slice %332 {offsets = [0, 96], sizes = [8, 32], strides = [1, 1]} : vector<8x128xf32> to vector<8x32xf32>
    %338 = arith.mulf %335, %290 : vector<8x32xf32>
    %339 = arith.mulf %334, %336 : vector<8x32xf32>
    %340 = arith.addf %338, %339 : vector<8x32xf32>
    %341 = math.tanh %340 : vector<8x32xf32>
    %342 = arith.mulf %337, %341 : vector<8x32xf32>
    %343 = arith.mulf %318, %342 : vector<8x32xf32>
    %cst_135 = arith.constant 1.000000e+00 : f32
    %344 = vector.broadcast %cst_135 : f32 to vector<8x32xf32>
    %345 = arith.subf %344, %318 : vector<8x32xf32>
    %346 = arith.mulf %345, %285 : vector<8x32xf32>
    %347 = arith.addf %343, %346 : vector<8x32xf32>
    %348 = arith.mulf %318, %340 : vector<8x32xf32>
    %cst_136 = arith.constant 1.000000e+00 : f32
    %349 = vector.broadcast %cst_136 : f32 to vector<8x32xf32>
    %350 = arith.subf %349, %318 : vector<8x32xf32>
    %351 = arith.mulf %350, %290 : vector<8x32xf32>
    %352 = arith.addf %348, %351 : vector<8x32xf32>
    %353 = arith.negf %327 : vector<8x128xf32>
    %354 = math.exp %353 : vector<8x128xf32>
    %cst_137 = arith.constant 1.000000e+00 : f32
    %355 = vector.broadcast %cst_137 : f32 to vector<8x128xf32>
    %356 = arith.addf %355, %354 : vector<8x128xf32>
    %357 = arith.divf %355, %356 : vector<8x128xf32>
    %358 = math.tanh %327 : vector<8x128xf32>
    %359 = vector.extract_strided_slice %357 {offsets = [0, 0], sizes = [8, 32], strides = [1, 1]} : vector<8x128xf32> to vector<8x32xf32>
    %360 = vector.extract_strided_slice %357 {offsets = [0, 32], sizes = [8, 32], strides = [1, 1]} : vector<8x128xf32> to vector<8x32xf32>
    %361 = vector.extract_strided_slice %358 {offsets = [0, 64], sizes = [8, 32], strides = [1, 1]} : vector<8x128xf32> to vector<8x32xf32>
    %362 = vector.extract_strided_slice %357 {offsets = [0, 96], sizes = [8, 32], strides = [1, 1]} : vector<8x128xf32> to vector<8x32xf32>
    %363 = arith.mulf %360, %315 : vector<8x32xf32>
    %364 = arith.mulf %359, %361 : vector<8x32xf32>
    %365 = arith.addf %363, %364 : vector<8x32xf32>
    %366 = math.tanh %365 : vector<8x32xf32>
    %367 = arith.mulf %362, %366 : vector<8x32xf32>
    %368 = arith.mulf %319, %367 : vector<8x32xf32>
    %cst_138 = arith.constant 1.000000e+00 : f32
    %369 = vector.broadcast %cst_138 : f32 to vector<8x32xf32>
    %370 = arith.subf %369, %319 : vector<8x32xf32>
    %371 = arith.mulf %370, %310 : vector<8x32xf32>
    %372 = arith.addf %368, %371 : vector<8x32xf32>
    %373 = arith.mulf %319, %365 : vector<8x32xf32>
    %cst_139 = arith.constant 1.000000e+00 : f32
    %374 = vector.broadcast %cst_139 : f32 to vector<8x32xf32>
    %375 = arith.subf %374, %319 : vector<8x32xf32>
    %376 = arith.mulf %375, %315 : vector<8x32xf32>
    %377 = arith.addf %373, %376 : vector<8x32xf32>
    %c40_140 = arith.constant 40 : index
    %c0_141 = arith.constant 0 : index
    %378 = vector.load %arg18[%c40_140, %c0_141] : memref<64x32xf32, #tpu.memory_space<vmem>>, vector<8x32xf32>
    tpu.vector_store %arg18[%c40_140, %c0_141], %343 {strides = array<i32>} : memref<64x32xf32, #tpu.memory_space<vmem>>, vector<8x32xf32>,
    %c16_142 = arith.constant 16 : index
    %c0_143 = arith.constant 0 : index
    %379 = vector.load %arg19[%c16_142, %c0_143] : memref<64x32xf32, #tpu.memory_space<vmem>>, vector<8x32xf32>
    tpu.vector_store %arg19[%c16_142, %c0_143], %368 {strides = array<i32>} : memref<64x32xf32, #tpu.memory_space<vmem>>, vector<8x32xf32>,
    %c48_144 = arith.constant 48 : index
    %c0_145 = arith.constant 0 : index
    %380 = vector.load %arg2[%c48_144, %c0_145] : memref<64x32xf32, #tpu.memory_space<vmem>>, vector<8x32xf32>
    %c8_146 = arith.constant 8 : index
    %c0_147 = arith.constant 0 : index
    %381 = vector.load %arg2[%c8_146, %c0_147] : memref<64x32xf32, #tpu.memory_space<vmem>>, vector<8x32xf32>
    %c48_148 = arith.constant 48 : index
    %c0_149 = arith.constant 0 : index
    %382 = vector.load %arg17[%c48_148, %c0_149] : memref<64x256xf32, #tpu.memory_space<vmem>>, vector<8x128xf32>
    %c0_150 = arith.constant 0 : index
    %c0_151 = arith.constant 0 : index
    %383 = vector.load %arg6[%c0_150, %c0_151] : memref<32x128xf32, #tpu.memory_space<vmem>>, vector<32x128xf32>
    %cst_152 = arith.constant dense<0.000000e+00> : vector<8x128xf32>
    %384 = tpu.matmul %347, %383, %cst_152 {dimension_numbers = #tpu.dot_dimension_numbers<[1], [0], [0], [1], [0, 0, 1, 1], [], []>} : vector<8x32xf32>, vector<32x128xf32>, vector<8x128xf32> -> vector<8x128xf32>
    %385 = arith.addf %382, %384 : vector<8x128xf32>
    %c8_153 = arith.constant 8 : index
    %c128_154 = arith.constant 128 : index
    %386 = vector.load %arg17[%c8_153, %c128_154] : memref<64x256xf32, #tpu.memory_space<vmem>>, vector<8x128xf32>
    %c0_155 = arith.constant 0 : index
    %c0_156 = arith.constant 0 : index
    %387 = vector.load %arg7[%c0_155, %c0_156] : memref<32x128xf32, #tpu.memory_space<vmem>>, vector<32x128xf32>
    %cst_157 = arith.constant dense<0.000000e+00> : vector<8x128xf32>
    %388 = tpu.matmul %372, %387, %cst_157 {dimension_numbers = #tpu.dot_dimension_numbers<[1], [0], [0], [1], [0, 0, 1, 1], [], []>} : vector<8x32xf32>, vector<32x128xf32>, vector<8x128xf32> -> vector<8x128xf32>
    %389 = arith.addf %386, %388 : vector<8x128xf32>
    %390 = arith.negf %385 : vector<8x128xf32>
    %391 = math.exp %390 : vector<8x128xf32>
    %cst_158 = arith.constant 1.000000e+00 : f32
    %392 = vector.broadcast %cst_158 : f32 to vector<8x128xf32>
    %393 = arith.addf %392, %391 : vector<8x128xf32>
    %394 = arith.divf %392, %393 : vector<8x128xf32>
    %395 = math.tanh %385 : vector<8x128xf32>
    %396 = vector.extract_strided_slice %394 {offsets = [0, 0], sizes = [8, 32], strides = [1, 1]} : vector<8x128xf32> to vector<8x32xf32>
    %397 = vector.extract_strided_slice %394 {offsets = [0, 32], sizes = [8, 32], strides = [1, 1]} : vector<8x128xf32> to vector<8x32xf32>
    %398 = vector.extract_strided_slice %395 {offsets = [0, 64], sizes = [8, 32], strides = [1, 1]} : vector<8x128xf32> to vector<8x32xf32>
    %399 = vector.extract_strided_slice %394 {offsets = [0, 96], sizes = [8, 32], strides = [1, 1]} : vector<8x128xf32> to vector<8x32xf32>
    %400 = arith.mulf %397, %352 : vector<8x32xf32>
    %401 = arith.mulf %396, %398 : vector<8x32xf32>
    %402 = arith.addf %400, %401 : vector<8x32xf32>
    %403 = math.tanh %402 : vector<8x32xf32>
    %404 = arith.mulf %399, %403 : vector<8x32xf32>
    %405 = arith.mulf %380, %404 : vector<8x32xf32>
    %cst_159 = arith.constant 1.000000e+00 : f32
    %406 = vector.broadcast %cst_159 : f32 to vector<8x32xf32>
    %407 = arith.subf %406, %380 : vector<8x32xf32>
    %408 = arith.mulf %407, %347 : vector<8x32xf32>
    %409 = arith.addf %405, %408 : vector<8x32xf32>
    %410 = arith.mulf %380, %402 : vector<8x32xf32>
    %cst_160 = arith.constant 1.000000e+00 : f32
    %411 = vector.broadcast %cst_160 : f32 to vector<8x32xf32>
    %412 = arith.subf %411, %380 : vector<8x32xf32>
    %413 = arith.mulf %412, %352 : vector<8x32xf32>
    %414 = arith.addf %410, %413 : vector<8x32xf32>
    %415 = arith.negf %389 : vector<8x128xf32>
    %416 = math.exp %415 : vector<8x128xf32>
    %cst_161 = arith.constant 1.000000e+00 : f32
    %417 = vector.broadcast %cst_161 : f32 to vector<8x128xf32>
    %418 = arith.addf %417, %416 : vector<8x128xf32>
    %419 = arith.divf %417, %418 : vector<8x128xf32>
    %420 = math.tanh %389 : vector<8x128xf32>
    %421 = vector.extract_strided_slice %419 {offsets = [0, 0], sizes = [8, 32], strides = [1, 1]} : vector<8x128xf32> to vector<8x32xf32>
    %422 = vector.extract_strided_slice %419 {offsets = [0, 32], sizes = [8, 32], strides = [1, 1]} : vector<8x128xf32> to vector<8x32xf32>
    %423 = vector.extract_strided_slice %420 {offsets = [0, 64], sizes = [8, 32], strides = [1, 1]} : vector<8x128xf32> to vector<8x32xf32>
    %424 = vector.extract_strided_slice %419 {offsets = [0, 96], sizes = [8, 32], strides = [1, 1]} : vector<8x128xf32> to vector<8x32xf32>
    %425 = arith.mulf %422, %377 : vector<8x32xf32>
    %426 = arith.mulf %421, %423 : vector<8x32xf32>
    %427 = arith.addf %425, %426 : vector<8x32xf32>
    %428 = math.tanh %427 : vector<8x32xf32>
    %429 = arith.mulf %424, %428 : vector<8x32xf32>
    %430 = arith.mulf %381, %429 : vector<8x32xf32>
    %cst_162 = arith.constant 1.000000e+00 : f32
    %431 = vector.broadcast %cst_162 : f32 to vector<8x32xf32>
    %432 = arith.subf %431, %381 : vector<8x32xf32>
    %433 = arith.mulf %432, %372 : vector<8x32xf32>
    %434 = arith.addf %430, %433 : vector<8x32xf32>
    %435 = arith.mulf %381, %427 : vector<8x32xf32>
    %cst_163 = arith.constant 1.000000e+00 : f32
    %436 = vector.broadcast %cst_163 : f32 to vector<8x32xf32>
    %437 = arith.subf %436, %381 : vector<8x32xf32>
    %438 = arith.mulf %437, %377 : vector<8x32xf32>
    %439 = arith.addf %435, %438 : vector<8x32xf32>
    %c48_164 = arith.constant 48 : index
    %c0_165 = arith.constant 0 : index
    %440 = vector.load %arg18[%c48_164, %c0_165] : memref<64x32xf32, #tpu.memory_space<vmem>>, vector<8x32xf32>
    tpu.vector_store %arg18[%c48_164, %c0_165], %405 {strides = array<i32>} : memref<64x32xf32, #tpu.memory_space<vmem>>, vector<8x32xf32>,
    %c8_166 = arith.constant 8 : index
    %c0_167 = arith.constant 0 : index
    %441 = vector.load %arg19[%c8_166, %c0_167] : memref<64x32xf32, #tpu.memory_space<vmem>>, vector<8x32xf32>
    tpu.vector_store %arg19[%c8_166, %c0_167], %430 {strides = array<i32>} : memref<64x32xf32, #tpu.memory_space<vmem>>, vector<8x32xf32>,
    %c56_168 = arith.constant 56 : index
    %c0_169 = arith.constant 0 : index
    %442 = vector.load %arg2[%c56_168, %c0_169] : memref<64x32xf32, #tpu.memory_space<vmem>>, vector<8x32xf32>
    %c0_170 = arith.constant 0 : index
    %c0_171 = arith.constant 0 : index
    %443 = vector.load %arg2[%c0_170, %c0_171] : memref<64x32xf32, #tpu.memory_space<vmem>>, vector<8x32xf32>
    %c56_172 = arith.constant 56 : index
    %c0_173 = arith.constant 0 : index
    %444 = vector.load %arg17[%c56_172, %c0_173] : memref<64x256xf32, #tpu.memory_space<vmem>>, vector<8x128xf32>
    %c0_174 = arith.constant 0 : index
    %c0_175 = arith.constant 0 : index
    %445 = vector.load %arg6[%c0_174, %c0_175] : memref<32x128xf32, #tpu.memory_space<vmem>>, vector<32x128xf32>
    %cst_176 = arith.constant dense<0.000000e+00> : vector<8x128xf32>
    %446 = tpu.matmul %409, %445, %cst_176 {dimension_numbers = #tpu.dot_dimension_numbers<[1], [0], [0], [1], [0, 0, 1, 1], [], []>} : vector<8x32xf32>, vector<32x128xf32>, vector<8x128xf32> -> vector<8x128xf32>
    %447 = arith.addf %444, %446 : vector<8x128xf32>
    %c0_177 = arith.constant 0 : index
    %c128_178 = arith.constant 128 : index
    %448 = vector.load %arg17[%c0_177, %c128_178] : memref<64x256xf32, #tpu.memory_space<vmem>>, vector<8x128xf32>
    %c0_179 = arith.constant 0 : index
    %c0_180 = arith.constant 0 : index
    %449 = vector.load %arg7[%c0_179, %c0_180] : memref<32x128xf32, #tpu.memory_space<vmem>>, vector<32x128xf32>
    %cst_181 = arith.constant dense<0.000000e+00> : vector<8x128xf32>
    %450 = tpu.matmul %434, %449, %cst_181 {dimension_numbers = #tpu.dot_dimension_numbers<[1], [0], [0], [1], [0, 0, 1, 1], [], []>} : vector<8x32xf32>, vector<32x128xf32>, vector<8x128xf32> -> vector<8x128xf32>
    %451 = arith.addf %448, %450 : vector<8x128xf32>
    %452 = arith.negf %447 : vector<8x128xf32>
    %453 = math.exp %452 : vector<8x128xf32>
    %cst_182 = arith.constant 1.000000e+00 : f32
    %454 = vector.broadcast %cst_182 : f32 to vector<8x128xf32>
    %455 = arith.addf %454, %453 : vector<8x128xf32>
    %456 = arith.divf %454, %455 : vector<8x128xf32>
    %457 = math.tanh %447 : vector<8x128xf32>
    %458 = vector.extract_strided_slice %456 {offsets = [0, 0], sizes = [8, 32], strides = [1, 1]} : vector<8x128xf32> to vector<8x32xf32>
    %459 = vector.extract_strided_slice %456 {offsets = [0, 32], sizes = [8, 32], strides = [1, 1]} : vector<8x128xf32> to vector<8x32xf32>
    %460 = vector.extract_strided_slice %457 {offsets = [0, 64], sizes = [8, 32], strides = [1, 1]} : vector<8x128xf32> to vector<8x32xf32>
    %461 = vector.extract_strided_slice %456 {offsets = [0, 96], sizes = [8, 32], strides = [1, 1]} : vector<8x128xf32> to vector<8x32xf32>
    %462 = arith.mulf %459, %414 : vector<8x32xf32>
    %463 = arith.mulf %458, %460 : vector<8x32xf32>
    %464 = arith.addf %462, %463 : vector<8x32xf32>
    %465 = math.tanh %464 : vector<8x32xf32>
    %466 = arith.mulf %461, %465 : vector<8x32xf32>
    %467 = arith.mulf %442, %466 : vector<8x32xf32>
    %468 = arith.negf %451 : vector<8x128xf32>
    %469 = math.exp %468 : vector<8x128xf32>
    %cst_183 = arith.constant 1.000000e+00 : f32
    %470 = vector.broadcast %cst_183 : f32 to vector<8x128xf32>
    %471 = arith.addf %470, %469 : vector<8x128xf32>
    %472 = arith.divf %470, %471 : vector<8x128xf32>
    %473 = math.tanh %451 : vector<8x128xf32>
    %474 = vector.extract_strided_slice %472 {offsets = [0, 0], sizes = [8, 32], strides = [1, 1]} : vector<8x128xf32> to vector<8x32xf32>
    %475 = vector.extract_strided_slice %472 {offsets = [0, 32], sizes = [8, 32], strides = [1, 1]} : vector<8x128xf32> to vector<8x32xf32>
    %476 = vector.extract_strided_slice %473 {offsets = [0, 64], sizes = [8, 32], strides = [1, 1]} : vector<8x128xf32> to vector<8x32xf32>
    %477 = vector.extract_strided_slice %472 {offsets = [0, 96], sizes = [8, 32], strides = [1, 1]} : vector<8x128xf32> to vector<8x32xf32>
    %478 = arith.mulf %475, %439 : vector<8x32xf32>
    %479 = arith.mulf %474, %476 : vector<8x32xf32>
    %480 = arith.addf %478, %479 : vector<8x32xf32>
    %481 = math.tanh %480 : vector<8x32xf32>
    %482 = arith.mulf %477, %481 : vector<8x32xf32>
    %483 = arith.mulf %443, %482 : vector<8x32xf32>
    %c56_184 = arith.constant 56 : index
    %c0_185 = arith.constant 0 : index
    %484 = vector.load %arg18[%c56_184, %c0_185] : memref<64x32xf32, #tpu.memory_space<vmem>>, vector<8x32xf32>
    tpu.vector_store %arg18[%c56_184, %c0_185], %467 {strides = array<i32>} : memref<64x32xf32, #tpu.memory_space<vmem>>, vector<8x32xf32>,
    %c0_186 = arith.constant 0 : index
    %c0_187 = arith.constant 0 : index
    %485 = vector.load %arg19[%c0_186, %c0_187] : memref<64x32xf32, #tpu.memory_space<vmem>>, vector<8x32xf32>
    tpu.vector_store %arg19[%c0_186, %c0_187], %483 {strides = array<i32>} : memref<64x32xf32, #tpu.memory_space<vmem>>, vector<8x32xf32>,
    %c0_188 = arith.constant 0 : index
    %c0_189 = arith.constant 0 : index
    %486 = vector.load %arg18[%c0_188, %c0_189] : memref<64x32xf32, #tpu.memory_space<vmem>>, vector<64x32xf32>
    %c0_190 = arith.constant 0 : index
    %c0_191 = arith.constant 0 : index
    %487 = vector.load %arg8[%c0_190, %c0_191] : memref<32x256xf32, #tpu.memory_space<vmem>>, vector<32x256xf32>
    %cst_192 = arith.constant dense<0.000000e+00> : vector<64x256xf32>
    %488 = tpu.matmul %486, %487, %cst_192 {dimension_numbers = #tpu.dot_dimension_numbers<[1], [0], [0], [1], [0, 0, 1, 1], [], []>} : vector<64x32xf32>, vector<32x256xf32>, vector<64x256xf32> -> vector<64x256xf32>
    %c0_193 = arith.constant 0 : index
    %c0_194 = arith.constant 0 : index
    %489 = vector.load %arg19[%c0_193, %c0_194] : memref<64x32xf32, #tpu.memory_space<vmem>>, vector<64x32xf32>
    %c0_195 = arith.constant 0 : index
    %c0_196 = arith.constant 0 : index
    %490 = vector.load %arg9[%c0_195, %c0_196] : memref<32x256xf32, #tpu.memory_space<vmem>>, vector<32x256xf32>
    %cst_197 = arith.constant dense<0.000000e+00> : vector<64x256xf32>
    %491 = tpu.matmul %489, %490, %cst_197 {dimension_numbers = #tpu.dot_dimension_numbers<[1], [0], [0], [1], [0, 0, 1, 1], [], []>} : vector<64x32xf32>, vector<32x256xf32>, vector<64x256xf32> -> vector<64x256xf32>
    %492 = arith.addf %488, %491 : vector<64x256xf32>
    %c0_198 = arith.constant 0 : index
    %c0_199 = arith.constant 0 : index
    %493 = vector.load %arg10[%c0_198, %c0_199] : memref<1x256xf32, #tpu.memory_space<vmem>>, vector<1x256xf32>
    %494 = vector.broadcast %493 : vector<1x256xf32> to vector<64x256xf32>
    %495 = arith.addf %492, %494 : vector<64x256xf32>
    %c0_200 = arith.constant 0 : index
    %c0_201 = arith.constant 0 : index
    %496 = vector.load %arg20[%c0_200, %c0_201] : memref<64x256xf32, #tpu.memory_space<vmem>>, vector<64x256xf32>
    tpu.vector_store %arg20[%c0_200, %c0_201], %495 {strides = array<i32>} : memref<64x256xf32, #tpu.memory_space<vmem>>, vector<64x256xf32>,
    %c0_202 = arith.constant 0 : index
    %c0_203 = arith.constant 0 : index
    %497 = vector.load %arg2[%c0_202, %c0_203] : memref<64x32xf32, #tpu.memory_space<vmem>>, vector<8x32xf32>
    %c56_204 = arith.constant 56 : index
    %c0_205 = arith.constant 0 : index
    %498 = vector.load %arg2[%c56_204, %c0_205] : memref<64x32xf32, #tpu.memory_space<vmem>>, vector<8x32xf32>
    %c0_206 = arith.constant 0 : index
    %c0_207 = arith.constant 0 : index
    %499 = vector.load %arg20[%c0_206, %c0_207] : memref<64x256xf32, #tpu.memory_space<vmem>>, vector<8x128xf32>
    %c0_208 = arith.constant 0 : index
    %c0_209 = arith.constant 0 : index
    %500 = vector.load %arg11[%c0_208, %c0_209] : memref<32x128xf32, #tpu.memory_space<vmem>>, vector<32x128xf32>
    %cst_210 = arith.constant dense<0.000000e+00> : vector<8x128xf32>
    %501 = tpu.matmul %7, %500, %cst_210 {dimension_numbers = #tpu.dot_dimension_numbers<[1], [0], [0], [1], [0, 0, 1, 1], [], []>} : vector<8x32xf32>, vector<32x128xf32>, vector<8x128xf32> -> vector<8x128xf32>
    %502 = arith.addf %499, %501 : vector<8x128xf32>
    %c56_211 = arith.constant 56 : index
    %c128_212 = arith.constant 128 : index
    %503 = vector.load %arg20[%c56_211, %c128_212] : memref<64x256xf32, #tpu.memory_space<vmem>>, vector<8x128xf32>
    %c0_213 = arith.constant 0 : index
    %c0_214 = arith.constant 0 : index
    %504 = vector.load %arg12[%c0_213, %c0_214] : memref<32x128xf32, #tpu.memory_space<vmem>>, vector<32x128xf32>
    %cst_215 = arith.constant dense<0.000000e+00> : vector<8x128xf32>
    %505 = tpu.matmul %7, %504, %cst_215 {dimension_numbers = #tpu.dot_dimension_numbers<[1], [0], [0], [1], [0, 0, 1, 1], [], []>} : vector<8x32xf32>, vector<32x128xf32>, vector<8x128xf32> -> vector<8x128xf32>
    %506 = arith.addf %503, %505 : vector<8x128xf32>
    %507 = arith.negf %502 : vector<8x128xf32>
    %508 = math.exp %507 : vector<8x128xf32>
    %cst_216 = arith.constant 1.000000e+00 : f32
    %509 = vector.broadcast %cst_216 : f32 to vector<8x128xf32>
    %510 = arith.addf %509, %508 : vector<8x128xf32>
    %511 = arith.divf %509, %510 : vector<8x128xf32>
    %512 = math.tanh %502 : vector<8x128xf32>
    %513 = vector.extract_strided_slice %511 {offsets = [0, 0], sizes = [8, 32], strides = [1, 1]} : vector<8x128xf32> to vector<8x32xf32>
    %514 = vector.extract_strided_slice %511 {offsets = [0, 32], sizes = [8, 32], strides = [1, 1]} : vector<8x128xf32> to vector<8x32xf32>
    %515 = vector.extract_strided_slice %512 {offsets = [0, 64], sizes = [8, 32], strides = [1, 1]} : vector<8x128xf32> to vector<8x32xf32>
    %516 = vector.extract_strided_slice %511 {offsets = [0, 96], sizes = [8, 32], strides = [1, 1]} : vector<8x128xf32> to vector<8x32xf32>
    %517 = arith.mulf %514, %7 : vector<8x32xf32>
    %518 = arith.mulf %513, %515 : vector<8x32xf32>
    %519 = arith.addf %517, %518 : vector<8x32xf32>
    %520 = math.tanh %519 : vector<8x32xf32>
    %521 = arith.mulf %516, %520 : vector<8x32xf32>
    %522 = arith.mulf %497, %521 : vector<8x32xf32>
    %cst_217 = arith.constant 1.000000e+00 : f32
    %523 = vector.broadcast %cst_217 : f32 to vector<8x32xf32>
    %524 = arith.subf %523, %497 : vector<8x32xf32>
    %525 = arith.mulf %524, %7 : vector<8x32xf32>
    %526 = arith.addf %522, %525 : vector<8x32xf32>
    %527 = arith.mulf %497, %519 : vector<8x32xf32>
    %cst_218 = arith.constant 1.000000e+00 : f32
    %528 = vector.broadcast %cst_218 : f32 to vector<8x32xf32>
    %529 = arith.subf %528, %497 : vector<8x32xf32>
    %530 = arith.mulf %529, %7 : vector<8x32xf32>
    %531 = arith.addf %527, %530 : vector<8x32xf32>
    %532 = arith.negf %506 : vector<8x128xf32>
    %533 = math.exp %532 : vector<8x128xf32>
    %cst_219 = arith.constant 1.000000e+00 : f32
    %534 = vector.broadcast %cst_219 : f32 to vector<8x128xf32>
    %535 = arith.addf %534, %533 : vector<8x128xf32>
    %536 = arith.divf %534, %535 : vector<8x128xf32>
    %537 = math.tanh %506 : vector<8x128xf32>
    %538 = vector.extract_strided_slice %536 {offsets = [0, 0], sizes = [8, 32], strides = [1, 1]} : vector<8x128xf32> to vector<8x32xf32>
    %539 = vector.extract_strided_slice %536 {offsets = [0, 32], sizes = [8, 32], strides = [1, 1]} : vector<8x128xf32> to vector<8x32xf32>
    %540 = vector.extract_strided_slice %537 {offsets = [0, 64], sizes = [8, 32], strides = [1, 1]} : vector<8x128xf32> to vector<8x32xf32>
    %541 = vector.extract_strided_slice %536 {offsets = [0, 96], sizes = [8, 32], strides = [1, 1]} : vector<8x128xf32> to vector<8x32xf32>
    %542 = arith.mulf %539, %7 : vector<8x32xf32>
    %543 = arith.mulf %538, %540 : vector<8x32xf32>
    %544 = arith.addf %542, %543 : vector<8x32xf32>
    %545 = math.tanh %544 : vector<8x32xf32>
    %546 = arith.mulf %541, %545 : vector<8x32xf32>
    %547 = arith.mulf %498, %546 : vector<8x32xf32>
    %cst_220 = arith.constant 1.000000e+00 : f32
    %548 = vector.broadcast %cst_220 : f32 to vector<8x32xf32>
    %549 = arith.subf %548, %498 : vector<8x32xf32>
    %550 = arith.mulf %549, %7 : vector<8x32xf32>
    %551 = arith.addf %547, %550 : vector<8x32xf32>
    %552 = arith.mulf %498, %544 : vector<8x32xf32>
    %cst_221 = arith.constant 1.000000e+00 : f32
    %553 = vector.broadcast %cst_221 : f32 to vector<8x32xf32>
    %554 = arith.subf %553, %498 : vector<8x32xf32>
    %555 = arith.mulf %554, %7 : vector<8x32xf32>
    %556 = arith.addf %552, %555 : vector<8x32xf32>
    %c56_222 = arith.constant 56 : index
    %c0_223 = arith.constant 0 : index
    %557 = vector.load %arg3[%c56_222, %c0_223] : memref<64x32xf32, #tpu.memory_space<vmem>>, vector<8x32xf32>
    %558 = arith.mulf %557, %547 : vector<8x32xf32>
    %559 = arith.addf %7, %558 : vector<8x32xf32>
    %c8_224 = arith.constant 8 : index
    %c0_225 = arith.constant 0 : index
    %560 = vector.load %arg2[%c8_224, %c0_225] : memref<64x32xf32, #tpu.memory_space<vmem>>, vector<8x32xf32>
    %c48_226 = arith.constant 48 : index
    %c0_227 = arith.constant 0 : index
    %561 = vector.load %arg2[%c48_226, %c0_227] : memref<64x32xf32, #tpu.memory_space<vmem>>, vector<8x32xf32>
    %c8_228 = arith.constant 8 : index
    %c0_229 = arith.constant 0 : index
    %562 = vector.load %arg20[%c8_228, %c0_229] : memref<64x256xf32, #tpu.memory_space<vmem>>, vector<8x128xf32>
    %c0_230 = arith.constant 0 : index
    %c0_231 = arith.constant 0 : index
    %563 = vector.load %arg11[%c0_230, %c0_231] : memref<32x128xf32, #tpu.memory_space<vmem>>, vector<32x128xf32>
    %cst_232 = arith.constant dense<0.000000e+00> : vector<8x128xf32>
    %564 = tpu.matmul %526, %563, %cst_232 {dimension_numbers = #tpu.dot_dimension_numbers<[1], [0], [0], [1], [0, 0, 1, 1], [], []>} : vector<8x32xf32>, vector<32x128xf32>, vector<8x128xf32> -> vector<8x128xf32>
    %565 = arith.addf %562, %564 : vector<8x128xf32>
    %c48_233 = arith.constant 48 : index
    %c128_234 = arith.constant 128 : index
    %566 = vector.load %arg20[%c48_233, %c128_234] : memref<64x256xf32, #tpu.memory_space<vmem>>, vector<8x128xf32>
    %c0_235 = arith.constant 0 : index
    %c0_236 = arith.constant 0 : index
    %567 = vector.load %arg12[%c0_235, %c0_236] : memref<32x128xf32, #tpu.memory_space<vmem>>, vector<32x128xf32>
    %cst_237 = arith.constant dense<0.000000e+00> : vector<8x128xf32>
    %568 = tpu.matmul %551, %567, %cst_237 {dimension_numbers = #tpu.dot_dimension_numbers<[1], [0], [0], [1], [0, 0, 1, 1], [], []>} : vector<8x32xf32>, vector<32x128xf32>, vector<8x128xf32> -> vector<8x128xf32>
    %569 = arith.addf %566, %568 : vector<8x128xf32>
    %570 = arith.negf %565 : vector<8x128xf32>
    %571 = math.exp %570 : vector<8x128xf32>
    %cst_238 = arith.constant 1.000000e+00 : f32
    %572 = vector.broadcast %cst_238 : f32 to vector<8x128xf32>
    %573 = arith.addf %572, %571 : vector<8x128xf32>
    %574 = arith.divf %572, %573 : vector<8x128xf32>
    %575 = math.tanh %565 : vector<8x128xf32>
    %576 = vector.extract_strided_slice %574 {offsets = [0, 0], sizes = [8, 32], strides = [1, 1]} : vector<8x128xf32> to vector<8x32xf32>
    %577 = vector.extract_strided_slice %574 {offsets = [0, 32], sizes = [8, 32], strides = [1, 1]} : vector<8x128xf32> to vector<8x32xf32>
    %578 = vector.extract_strided_slice %575 {offsets = [0, 64], sizes = [8, 32], strides = [1, 1]} : vector<8x128xf32> to vector<8x32xf32>
    %579 = vector.extract_strided_slice %574 {offsets = [0, 96], sizes = [8, 32], strides = [1, 1]} : vector<8x128xf32> to vector<8x32xf32>
    %580 = arith.mulf %577, %531 : vector<8x32xf32>
    %581 = arith.mulf %576, %578 : vector<8x32xf32>
    %582 = arith.addf %580, %581 : vector<8x32xf32>
    %583 = math.tanh %582 : vector<8x32xf32>
    %584 = arith.mulf %579, %583 : vector<8x32xf32>
    %585 = arith.mulf %560, %584 : vector<8x32xf32>
    %cst_239 = arith.constant 1.000000e+00 : f32
    %586 = vector.broadcast %cst_239 : f32 to vector<8x32xf32>
    %587 = arith.subf %586, %560 : vector<8x32xf32>
    %588 = arith.mulf %587, %526 : vector<8x32xf32>
    %589 = arith.addf %585, %588 : vector<8x32xf32>
    %590 = arith.mulf %560, %582 : vector<8x32xf32>
    %cst_240 = arith.constant 1.000000e+00 : f32
    %591 = vector.broadcast %cst_240 : f32 to vector<8x32xf32>
    %592 = arith.subf %591, %560 : vector<8x32xf32>
    %593 = arith.mulf %592, %531 : vector<8x32xf32>
    %594 = arith.addf %590, %593 : vector<8x32xf32>
    %595 = arith.negf %569 : vector<8x128xf32>
    %596 = math.exp %595 : vector<8x128xf32>
    %cst_241 = arith.constant 1.000000e+00 : f32
    %597 = vector.broadcast %cst_241 : f32 to vector<8x128xf32>
    %598 = arith.addf %597, %596 : vector<8x128xf32>
    %599 = arith.divf %597, %598 : vector<8x128xf32>
    %600 = math.tanh %569 : vector<8x128xf32>
    %601 = vector.extract_strided_slice %599 {offsets = [0, 0], sizes = [8, 32], strides = [1, 1]} : vector<8x128xf32> to vector<8x32xf32>
    %602 = vector.extract_strided_slice %599 {offsets = [0, 32], sizes = [8, 32], strides = [1, 1]} : vector<8x128xf32> to vector<8x32xf32>
    %603 = vector.extract_strided_slice %600 {offsets = [0, 64], sizes = [8, 32], strides = [1, 1]} : vector<8x128xf32> to vector<8x32xf32>
    %604 = vector.extract_strided_slice %599 {offsets = [0, 96], sizes = [8, 32], strides = [1, 1]} : vector<8x128xf32> to vector<8x32xf32>
    %605 = arith.mulf %602, %556 : vector<8x32xf32>
    %606 = arith.mulf %601, %603 : vector<8x32xf32>
    %607 = arith.addf %605, %606 : vector<8x32xf32>
    %608 = math.tanh %607 : vector<8x32xf32>
    %609 = arith.mulf %604, %608 : vector<8x32xf32>
    %610 = arith.mulf %561, %609 : vector<8x32xf32>
    %cst_242 = arith.constant 1.000000e+00 : f32
    %611 = vector.broadcast %cst_242 : f32 to vector<8x32xf32>
    %612 = arith.subf %611, %561 : vector<8x32xf32>
    %613 = arith.mulf %612, %551 : vector<8x32xf32>
    %614 = arith.addf %610, %613 : vector<8x32xf32>
    %615 = arith.mulf %561, %607 : vector<8x32xf32>
    %cst_243 = arith.constant 1.000000e+00 : f32
    %616 = vector.broadcast %cst_243 : f32 to vector<8x32xf32>
    %617 = arith.subf %616, %561 : vector<8x32xf32>
    %618 = arith.mulf %617, %556 : vector<8x32xf32>
    %619 = arith.addf %615, %618 : vector<8x32xf32>
    %c48_244 = arith.constant 48 : index
    %c0_245 = arith.constant 0 : index
    %620 = vector.load %arg3[%c48_244, %c0_245] : memref<64x32xf32, #tpu.memory_space<vmem>>, vector<8x32xf32>
    %621 = arith.mulf %620, %610 : vector<8x32xf32>
    %622 = arith.addf %559, %621 : vector<8x32xf32>
    %c16_246 = arith.constant 16 : index
    %c0_247 = arith.constant 0 : index
    %623 = vector.load %arg2[%c16_246, %c0_247] : memref<64x32xf32, #tpu.memory_space<vmem>>, vector<8x32xf32>
    %c40_248 = arith.constant 40 : index
    %c0_249 = arith.constant 0 : index
    %624 = vector.load %arg2[%c40_248, %c0_249] : memref<64x32xf32, #tpu.memory_space<vmem>>, vector<8x32xf32>
    %c16_250 = arith.constant 16 : index
    %c0_251 = arith.constant 0 : index
    %625 = vector.load %arg20[%c16_250, %c0_251] : memref<64x256xf32, #tpu.memory_space<vmem>>, vector<8x128xf32>
    %c0_252 = arith.constant 0 : index
    %c0_253 = arith.constant 0 : index
    %626 = vector.load %arg11[%c0_252, %c0_253] : memref<32x128xf32, #tpu.memory_space<vmem>>, vector<32x128xf32>
    %cst_254 = arith.constant dense<0.000000e+00> : vector<8x128xf32>
    %627 = tpu.matmul %589, %626, %cst_254 {dimension_numbers = #tpu.dot_dimension_numbers<[1], [0], [0], [1], [0, 0, 1, 1], [], []>} : vector<8x32xf32>, vector<32x128xf32>, vector<8x128xf32> -> vector<8x128xf32>
    %628 = arith.addf %625, %627 : vector<8x128xf32>
    %c40_255 = arith.constant 40 : index
    %c128_256 = arith.constant 128 : index
    %629 = vector.load %arg20[%c40_255, %c128_256] : memref<64x256xf32, #tpu.memory_space<vmem>>, vector<8x128xf32>
    %c0_257 = arith.constant 0 : index
    %c0_258 = arith.constant 0 : index
    %630 = vector.load %arg12[%c0_257, %c0_258] : memref<32x128xf32, #tpu.memory_space<vmem>>, vector<32x128xf32>
    %cst_259 = arith.constant dense<0.000000e+00> : vector<8x128xf32>
    %631 = tpu.matmul %614, %630, %cst_259 {dimension_numbers = #tpu.dot_dimension_numbers<[1], [0], [0], [1], [0, 0, 1, 1], [], []>} : vector<8x32xf32>, vector<32x128xf32>, vector<8x128xf32> -> vector<8x128xf32>
    %632 = arith.addf %629, %631 : vector<8x128xf32>
    %633 = arith.negf %628 : vector<8x128xf32>
    %634 = math.exp %633 : vector<8x128xf32>
    %cst_260 = arith.constant 1.000000e+00 : f32
    %635 = vector.broadcast %cst_260 : f32 to vector<8x128xf32>
    %636 = arith.addf %635, %634 : vector<8x128xf32>
    %637 = arith.divf %635, %636 : vector<8x128xf32>
    %638 = math.tanh %628 : vector<8x128xf32>
    %639 = vector.extract_strided_slice %637 {offsets = [0, 0], sizes = [8, 32], strides = [1, 1]} : vector<8x128xf32> to vector<8x32xf32>
    %640 = vector.extract_strided_slice %637 {offsets = [0, 32], sizes = [8, 32], strides = [1, 1]} : vector<8x128xf32> to vector<8x32xf32>
    %641 = vector.extract_strided_slice %638 {offsets = [0, 64], sizes = [8, 32], strides = [1, 1]} : vector<8x128xf32> to vector<8x32xf32>
    %642 = vector.extract_strided_slice %637 {offsets = [0, 96], sizes = [8, 32], strides = [1, 1]} : vector<8x128xf32> to vector<8x32xf32>
    %643 = arith.mulf %640, %594 : vector<8x32xf32>
    %644 = arith.mulf %639, %641 : vector<8x32xf32>
    %645 = arith.addf %643, %644 : vector<8x32xf32>
    %646 = math.tanh %645 : vector<8x32xf32>
    %647 = arith.mulf %642, %646 : vector<8x32xf32>
    %648 = arith.mulf %623, %647 : vector<8x32xf32>
    %cst_261 = arith.constant 1.000000e+00 : f32
    %649 = vector.broadcast %cst_261 : f32 to vector<8x32xf32>
    %650 = arith.subf %649, %623 : vector<8x32xf32>
    %651 = arith.mulf %650, %589 : vector<8x32xf32>
    %652 = arith.addf %648, %651 : vector<8x32xf32>
    %653 = arith.mulf %623, %645 : vector<8x32xf32>
    %cst_262 = arith.constant 1.000000e+00 : f32
    %654 = vector.broadcast %cst_262 : f32 to vector<8x32xf32>
    %655 = arith.subf %654, %623 : vector<8x32xf32>
    %656 = arith.mulf %655, %594 : vector<8x32xf32>
    %657 = arith.addf %653, %656 : vector<8x32xf32>
    %658 = arith.negf %632 : vector<8x128xf32>
    %659 = math.exp %658 : vector<8x128xf32>
    %cst_263 = arith.constant 1.000000e+00 : f32
    %660 = vector.broadcast %cst_263 : f32 to vector<8x128xf32>
    %661 = arith.addf %660, %659 : vector<8x128xf32>
    %662 = arith.divf %660, %661 : vector<8x128xf32>
    %663 = math.tanh %632 : vector<8x128xf32>
    %664 = vector.extract_strided_slice %662 {offsets = [0, 0], sizes = [8, 32], strides = [1, 1]} : vector<8x128xf32> to vector<8x32xf32>
    %665 = vector.extract_strided_slice %662 {offsets = [0, 32], sizes = [8, 32], strides = [1, 1]} : vector<8x128xf32> to vector<8x32xf32>
    %666 = vector.extract_strided_slice %663 {offsets = [0, 64], sizes = [8, 32], strides = [1, 1]} : vector<8x128xf32> to vector<8x32xf32>
    %667 = vector.extract_strided_slice %662 {offsets = [0, 96], sizes = [8, 32], strides = [1, 1]} : vector<8x128xf32> to vector<8x32xf32>
    %668 = arith.mulf %665, %619 : vector<8x32xf32>
    %669 = arith.mulf %664, %666 : vector<8x32xf32>
    %670 = arith.addf %668, %669 : vector<8x32xf32>
    %671 = math.tanh %670 : vector<8x32xf32>
    %672 = arith.mulf %667, %671 : vector<8x32xf32>
    %673 = arith.mulf %624, %672 : vector<8x32xf32>
    %cst_264 = arith.constant 1.000000e+00 : f32
    %674 = vector.broadcast %cst_264 : f32 to vector<8x32xf32>
    %675 = arith.subf %674, %624 : vector<8x32xf32>
    %676 = arith.mulf %675, %614 : vector<8x32xf32>
    %677 = arith.addf %673, %676 : vector<8x32xf32>
    %678 = arith.mulf %624, %670 : vector<8x32xf32>
    %cst_265 = arith.constant 1.000000e+00 : f32
    %679 = vector.broadcast %cst_265 : f32 to vector<8x32xf32>
    %680 = arith.subf %679, %624 : vector<8x32xf32>
    %681 = arith.mulf %680, %619 : vector<8x32xf32>
    %682 = arith.addf %678, %681 : vector<8x32xf32>
    %c40_266 = arith.constant 40 : index
    %c0_267 = arith.constant 0 : index
    %683 = vector.load %arg3[%c40_266, %c0_267] : memref<64x32xf32, #tpu.memory_space<vmem>>, vector<8x32xf32>
    %684 = arith.mulf %683, %673 : vector<8x32xf32>
    %685 = arith.addf %622, %684 : vector<8x32xf32>
    %c24_268 = arith.constant 24 : index
    %c0_269 = arith.constant 0 : index
    %686 = vector.load %arg2[%c24_268, %c0_269] : memref<64x32xf32, #tpu.memory_space<vmem>>, vector<8x32xf32>
    %c32_270 = arith.constant 32 : index
    %c0_271 = arith.constant 0 : index
    %687 = vector.load %arg2[%c32_270, %c0_271] : memref<64x32xf32, #tpu.memory_space<vmem>>, vector<8x32xf32>
    %c24_272 = arith.constant 24 : index
    %c0_273 = arith.constant 0 : index
    %688 = vector.load %arg20[%c24_272, %c0_273] : memref<64x256xf32, #tpu.memory_space<vmem>>, vector<8x128xf32>
    %c0_274 = arith.constant 0 : index
    %c0_275 = arith.constant 0 : index
    %689 = vector.load %arg11[%c0_274, %c0_275] : memref<32x128xf32, #tpu.memory_space<vmem>>, vector<32x128xf32>
    %cst_276 = arith.constant dense<0.000000e+00> : vector<8x128xf32>
    %690 = tpu.matmul %652, %689, %cst_276 {dimension_numbers = #tpu.dot_dimension_numbers<[1], [0], [0], [1], [0, 0, 1, 1], [], []>} : vector<8x32xf32>, vector<32x128xf32>, vector<8x128xf32> -> vector<8x128xf32>
    %691 = arith.addf %688, %690 : vector<8x128xf32>
    %c32_277 = arith.constant 32 : index
    %c128_278 = arith.constant 128 : index
    %692 = vector.load %arg20[%c32_277, %c128_278] : memref<64x256xf32, #tpu.memory_space<vmem>>, vector<8x128xf32>
    %c0_279 = arith.constant 0 : index
    %c0_280 = arith.constant 0 : index
    %693 = vector.load %arg12[%c0_279, %c0_280] : memref<32x128xf32, #tpu.memory_space<vmem>>, vector<32x128xf32>
    %cst_281 = arith.constant dense<0.000000e+00> : vector<8x128xf32>
    %694 = tpu.matmul %677, %693, %cst_281 {dimension_numbers = #tpu.dot_dimension_numbers<[1], [0], [0], [1], [0, 0, 1, 1], [], []>} : vector<8x32xf32>, vector<32x128xf32>, vector<8x128xf32> -> vector<8x128xf32>
    %695 = arith.addf %692, %694 : vector<8x128xf32>
    %696 = arith.negf %691 : vector<8x128xf32>
    %697 = math.exp %696 : vector<8x128xf32>
    %cst_282 = arith.constant 1.000000e+00 : f32
    %698 = vector.broadcast %cst_282 : f32 to vector<8x128xf32>
    %699 = arith.addf %698, %697 : vector<8x128xf32>
    %700 = arith.divf %698, %699 : vector<8x128xf32>
    %701 = math.tanh %691 : vector<8x128xf32>
    %702 = vector.extract_strided_slice %700 {offsets = [0, 0], sizes = [8, 32], strides = [1, 1]} : vector<8x128xf32> to vector<8x32xf32>
    %703 = vector.extract_strided_slice %700 {offsets = [0, 32], sizes = [8, 32], strides = [1, 1]} : vector<8x128xf32> to vector<8x32xf32>
    %704 = vector.extract_strided_slice %701 {offsets = [0, 64], sizes = [8, 32], strides = [1, 1]} : vector<8x128xf32> to vector<8x32xf32>
    %705 = vector.extract_strided_slice %700 {offsets = [0, 96], sizes = [8, 32], strides = [1, 1]} : vector<8x128xf32> to vector<8x32xf32>
    %706 = arith.mulf %703, %657 : vector<8x32xf32>
    %707 = arith.mulf %702, %704 : vector<8x32xf32>
    %708 = arith.addf %706, %707 : vector<8x32xf32>
    %709 = math.tanh %708 : vector<8x32xf32>
    %710 = arith.mulf %705, %709 : vector<8x32xf32>
    %711 = arith.mulf %686, %710 : vector<8x32xf32>
    %cst_283 = arith.constant 1.000000e+00 : f32
    %712 = vector.broadcast %cst_283 : f32 to vector<8x32xf32>
    %713 = arith.subf %712, %686 : vector<8x32xf32>
    %714 = arith.mulf %713, %652 : vector<8x32xf32>
    %715 = arith.addf %711, %714 : vector<8x32xf32>
    %716 = arith.mulf %686, %708 : vector<8x32xf32>
    %cst_284 = arith.constant 1.000000e+00 : f32
    %717 = vector.broadcast %cst_284 : f32 to vector<8x32xf32>
    %718 = arith.subf %717, %686 : vector<8x32xf32>
    %719 = arith.mulf %718, %657 : vector<8x32xf32>
    %720 = arith.addf %716, %719 : vector<8x32xf32>
    %721 = arith.negf %695 : vector<8x128xf32>
    %722 = math.exp %721 : vector<8x128xf32>
    %cst_285 = arith.constant 1.000000e+00 : f32
    %723 = vector.broadcast %cst_285 : f32 to vector<8x128xf32>
    %724 = arith.addf %723, %722 : vector<8x128xf32>
    %725 = arith.divf %723, %724 : vector<8x128xf32>
    %726 = math.tanh %695 : vector<8x128xf32>
    %727 = vector.extract_strided_slice %725 {offsets = [0, 0], sizes = [8, 32], strides = [1, 1]} : vector<8x128xf32> to vector<8x32xf32>
    %728 = vector.extract_strided_slice %725 {offsets = [0, 32], sizes = [8, 32], strides = [1, 1]} : vector<8x128xf32> to vector<8x32xf32>
    %729 = vector.extract_strided_slice %726 {offsets = [0, 64], sizes = [8, 32], strides = [1, 1]} : vector<8x128xf32> to vector<8x32xf32>
    %730 = vector.extract_strided_slice %725 {offsets = [0, 96], sizes = [8, 32], strides = [1, 1]} : vector<8x128xf32> to vector<8x32xf32>
    %731 = arith.mulf %728, %682 : vector<8x32xf32>
    %732 = arith.mulf %727, %729 : vector<8x32xf32>
    %733 = arith.addf %731, %732 : vector<8x32xf32>
    %734 = math.tanh %733 : vector<8x32xf32>
    %735 = arith.mulf %730, %734 : vector<8x32xf32>
    %736 = arith.mulf %687, %735 : vector<8x32xf32>
    %cst_286 = arith.constant 1.000000e+00 : f32
    %737 = vector.broadcast %cst_286 : f32 to vector<8x32xf32>
    %738 = arith.subf %737, %687 : vector<8x32xf32>
    %739 = arith.mulf %738, %677 : vector<8x32xf32>
    %740 = arith.addf %736, %739 : vector<8x32xf32>
    %741 = arith.mulf %687, %733 : vector<8x32xf32>
    %cst_287 = arith.constant 1.000000e+00 : f32
    %742 = vector.broadcast %cst_287 : f32 to vector<8x32xf32>
    %743 = arith.subf %742, %687 : vector<8x32xf32>
    %744 = arith.mulf %743, %682 : vector<8x32xf32>
    %745 = arith.addf %741, %744 : vector<8x32xf32>
    %c32_288 = arith.constant 32 : index
    %c0_289 = arith.constant 0 : index
    %746 = vector.load %arg3[%c32_288, %c0_289] : memref<64x32xf32, #tpu.memory_space<vmem>>, vector<8x32xf32>
    %747 = arith.mulf %746, %736 : vector<8x32xf32>
    %748 = arith.addf %685, %747 : vector<8x32xf32>
    %c32_290 = arith.constant 32 : index
    %c0_291 = arith.constant 0 : index
    %749 = vector.load %arg2[%c32_290, %c0_291] : memref<64x32xf32, #tpu.memory_space<vmem>>, vector<8x32xf32>
    %c24_292 = arith.constant 24 : index
    %c0_293 = arith.constant 0 : index
    %750 = vector.load %arg2[%c24_292, %c0_293] : memref<64x32xf32, #tpu.memory_space<vmem>>, vector<8x32xf32>
    %c32_294 = arith.constant 32 : index
    %c0_295 = arith.constant 0 : index
    %751 = vector.load %arg20[%c32_294, %c0_295] : memref<64x256xf32, #tpu.memory_space<vmem>>, vector<8x128xf32>
    %c0_296 = arith.constant 0 : index
    %c0_297 = arith.constant 0 : index
    %752 = vector.load %arg11[%c0_296, %c0_297] : memref<32x128xf32, #tpu.memory_space<vmem>>, vector<32x128xf32>
    %cst_298 = arith.constant dense<0.000000e+00> : vector<8x128xf32>
    %753 = tpu.matmul %715, %752, %cst_298 {dimension_numbers = #tpu.dot_dimension_numbers<[1], [0], [0], [1], [0, 0, 1, 1], [], []>} : vector<8x32xf32>, vector<32x128xf32>, vector<8x128xf32> -> vector<8x128xf32>
    %754 = arith.addf %751, %753 : vector<8x128xf32>
    %c24_299 = arith.constant 24 : index
    %c128_300 = arith.constant 128 : index
    %755 = vector.load %arg20[%c24_299, %c128_300] : memref<64x256xf32, #tpu.memory_space<vmem>>, vector<8x128xf32>
    %c0_301 = arith.constant 0 : index
    %c0_302 = arith.constant 0 : index
    %756 = vector.load %arg12[%c0_301, %c0_302] : memref<32x128xf32, #tpu.memory_space<vmem>>, vector<32x128xf32>
    %cst_303 = arith.constant dense<0.000000e+00> : vector<8x128xf32>
    %757 = tpu.matmul %740, %756, %cst_303 {dimension_numbers = #tpu.dot_dimension_numbers<[1], [0], [0], [1], [0, 0, 1, 1], [], []>} : vector<8x32xf32>, vector<32x128xf32>, vector<8x128xf32> -> vector<8x128xf32>
    %758 = arith.addf %755, %757 : vector<8x128xf32>
    %759 = arith.negf %754 : vector<8x128xf32>
    %760 = math.exp %759 : vector<8x128xf32>
    %cst_304 = arith.constant 1.000000e+00 : f32
    %761 = vector.broadcast %cst_304 : f32 to vector<8x128xf32>
    %762 = arith.addf %761, %760 : vector<8x128xf32>
    %763 = arith.divf %761, %762 : vector<8x128xf32>
    %764 = math.tanh %754 : vector<8x128xf32>
    %765 = vector.extract_strided_slice %763 {offsets = [0, 0], sizes = [8, 32], strides = [1, 1]} : vector<8x128xf32> to vector<8x32xf32>
    %766 = vector.extract_strided_slice %763 {offsets = [0, 32], sizes = [8, 32], strides = [1, 1]} : vector<8x128xf32> to vector<8x32xf32>
    %767 = vector.extract_strided_slice %764 {offsets = [0, 64], sizes = [8, 32], strides = [1, 1]} : vector<8x128xf32> to vector<8x32xf32>
    %768 = vector.extract_strided_slice %763 {offsets = [0, 96], sizes = [8, 32], strides = [1, 1]} : vector<8x128xf32> to vector<8x32xf32>
    %769 = arith.mulf %766, %720 : vector<8x32xf32>
    %770 = arith.mulf %765, %767 : vector<8x32xf32>
    %771 = arith.addf %769, %770 : vector<8x32xf32>
    %772 = math.tanh %771 : vector<8x32xf32>
    %773 = arith.mulf %768, %772 : vector<8x32xf32>
    %774 = arith.mulf %749, %773 : vector<8x32xf32>
    %cst_305 = arith.constant 1.000000e+00 : f32
    %775 = vector.broadcast %cst_305 : f32 to vector<8x32xf32>
    %776 = arith.subf %775, %749 : vector<8x32xf32>
    %777 = arith.mulf %776, %715 : vector<8x32xf32>
    %778 = arith.addf %774, %777 : vector<8x32xf32>
    %779 = arith.mulf %749, %771 : vector<8x32xf32>
    %cst_306 = arith.constant 1.000000e+00 : f32
    %780 = vector.broadcast %cst_306 : f32 to vector<8x32xf32>
    %781 = arith.subf %780, %749 : vector<8x32xf32>
    %782 = arith.mulf %781, %720 : vector<8x32xf32>
    %783 = arith.addf %779, %782 : vector<8x32xf32>
    %784 = arith.negf %758 : vector<8x128xf32>
    %785 = math.exp %784 : vector<8x128xf32>
    %cst_307 = arith.constant 1.000000e+00 : f32
    %786 = vector.broadcast %cst_307 : f32 to vector<8x128xf32>
    %787 = arith.addf %786, %785 : vector<8x128xf32>
    %788 = arith.divf %786, %787 : vector<8x128xf32>
    %789 = math.tanh %758 : vector<8x128xf32>
    %790 = vector.extract_strided_slice %788 {offsets = [0, 0], sizes = [8, 32], strides = [1, 1]} : vector<8x128xf32> to vector<8x32xf32>
    %791 = vector.extract_strided_slice %788 {offsets = [0, 32], sizes = [8, 32], strides = [1, 1]} : vector<8x128xf32> to vector<8x32xf32>
    %792 = vector.extract_strided_slice %789 {offsets = [0, 64], sizes = [8, 32], strides = [1, 1]} : vector<8x128xf32> to vector<8x32xf32>
    %793 = vector.extract_strided_slice %788 {offsets = [0, 96], sizes = [8, 32], strides = [1, 1]} : vector<8x128xf32> to vector<8x32xf32>
    %794 = arith.mulf %791, %745 : vector<8x32xf32>
    %795 = arith.mulf %790, %792 : vector<8x32xf32>
    %796 = arith.addf %794, %795 : vector<8x32xf32>
    %797 = math.tanh %796 : vector<8x32xf32>
    %798 = arith.mulf %793, %797 : vector<8x32xf32>
    %799 = arith.mulf %750, %798 : vector<8x32xf32>
    %cst_308 = arith.constant 1.000000e+00 : f32
    %800 = vector.broadcast %cst_308 : f32 to vector<8x32xf32>
    %801 = arith.subf %800, %750 : vector<8x32xf32>
    %802 = arith.mulf %801, %740 : vector<8x32xf32>
    %803 = arith.addf %799, %802 : vector<8x32xf32>
    %804 = arith.mulf %750, %796 : vector<8x32xf32>
    %cst_309 = arith.constant 1.000000e+00 : f32
    %805 = vector.broadcast %cst_309 : f32 to vector<8x32xf32>
    %806 = arith.subf %805, %750 : vector<8x32xf32>
    %807 = arith.mulf %806, %745 : vector<8x32xf32>
    %808 = arith.addf %804, %807 : vector<8x32xf32>
    %c24_310 = arith.constant 24 : index
    %c0_311 = arith.constant 0 : index
    %809 = vector.load %arg3[%c24_310, %c0_311] : memref<64x32xf32, #tpu.memory_space<vmem>>, vector<8x32xf32>
    %810 = arith.mulf %809, %799 : vector<8x32xf32>
    %811 = arith.addf %748, %810 : vector<8x32xf32>
    %c40_312 = arith.constant 40 : index
    %c0_313 = arith.constant 0 : index
    %812 = vector.load %arg2[%c40_312, %c0_313] : memref<64x32xf32, #tpu.memory_space<vmem>>, vector<8x32xf32>
    %c16_314 = arith.constant 16 : index
    %c0_315 = arith.constant 0 : index
    %813 = vector.load %arg2[%c16_314, %c0_315] : memref<64x32xf32, #tpu.memory_space<vmem>>, vector<8x32xf32>
    %c40_316 = arith.constant 40 : index
    %c0_317 = arith.constant 0 : index
    %814 = vector.load %arg20[%c40_316, %c0_317] : memref<64x256xf32, #tpu.memory_space<vmem>>, vector<8x128xf32>
    %c0_318 = arith.constant 0 : index
    %c0_319 = arith.constant 0 : index
    %815 = vector.load %arg11[%c0_318, %c0_319] : memref<32x128xf32, #tpu.memory_space<vmem>>, vector<32x128xf32>
    %cst_320 = arith.constant dense<0.000000e+00> : vector<8x128xf32>
    %816 = tpu.matmul %778, %815, %cst_320 {dimension_numbers = #tpu.dot_dimension_numbers<[1], [0], [0], [1], [0, 0, 1, 1], [], []>} : vector<8x32xf32>, vector<32x128xf32>, vector<8x128xf32> -> vector<8x128xf32>
    %817 = arith.addf %814, %816 : vector<8x128xf32>
    %c16_321 = arith.constant 16 : index
    %c128_322 = arith.constant 128 : index
    %818 = vector.load %arg20[%c16_321, %c128_322] : memref<64x256xf32, #tpu.memory_space<vmem>>, vector<8x128xf32>
    %c0_323 = arith.constant 0 : index
    %c0_324 = arith.constant 0 : index
    %819 = vector.load %arg12[%c0_323, %c0_324] : memref<32x128xf32, #tpu.memory_space<vmem>>, vector<32x128xf32>
    %cst_325 = arith.constant dense<0.000000e+00> : vector<8x128xf32>
    %820 = tpu.matmul %803, %819, %cst_325 {dimension_numbers = #tpu.dot_dimension_numbers<[1], [0], [0], [1], [0, 0, 1, 1], [], []>} : vector<8x32xf32>, vector<32x128xf32>, vector<8x128xf32> -> vector<8x128xf32>
    %821 = arith.addf %818, %820 : vector<8x128xf32>
    %822 = arith.negf %817 : vector<8x128xf32>
    %823 = math.exp %822 : vector<8x128xf32>
    %cst_326 = arith.constant 1.000000e+00 : f32
    %824 = vector.broadcast %cst_326 : f32 to vector<8x128xf32>
    %825 = arith.addf %824, %823 : vector<8x128xf32>
    %826 = arith.divf %824, %825 : vector<8x128xf32>
    %827 = math.tanh %817 : vector<8x128xf32>
    %828 = vector.extract_strided_slice %826 {offsets = [0, 0], sizes = [8, 32], strides = [1, 1]} : vector<8x128xf32> to vector<8x32xf32>
    %829 = vector.extract_strided_slice %826 {offsets = [0, 32], sizes = [8, 32], strides = [1, 1]} : vector<8x128xf32> to vector<8x32xf32>
    %830 = vector.extract_strided_slice %827 {offsets = [0, 64], sizes = [8, 32], strides = [1, 1]} : vector<8x128xf32> to vector<8x32xf32>
    %831 = vector.extract_strided_slice %826 {offsets = [0, 96], sizes = [8, 32], strides = [1, 1]} : vector<8x128xf32> to vector<8x32xf32>
    %832 = arith.mulf %829, %783 : vector<8x32xf32>
    %833 = arith.mulf %828, %830 : vector<8x32xf32>
    %834 = arith.addf %832, %833 : vector<8x32xf32>
    %835 = math.tanh %834 : vector<8x32xf32>
    %836 = arith.mulf %831, %835 : vector<8x32xf32>
    %837 = arith.mulf %812, %836 : vector<8x32xf32>
    %cst_327 = arith.constant 1.000000e+00 : f32
    %838 = vector.broadcast %cst_327 : f32 to vector<8x32xf32>
    %839 = arith.subf %838, %812 : vector<8x32xf32>
    %840 = arith.mulf %839, %778 : vector<8x32xf32>
    %841 = arith.addf %837, %840 : vector<8x32xf32>
    %842 = arith.mulf %812, %834 : vector<8x32xf32>
    %cst_328 = arith.constant 1.000000e+00 : f32
    %843 = vector.broadcast %cst_328 : f32 to vector<8x32xf32>
    %844 = arith.subf %843, %812 : vector<8x32xf32>
    %845 = arith.mulf %844, %783 : vector<8x32xf32>
    %846 = arith.addf %842, %845 : vector<8x32xf32>
    %847 = arith.negf %821 : vector<8x128xf32>
    %848 = math.exp %847 : vector<8x128xf32>
    %cst_329 = arith.constant 1.000000e+00 : f32
    %849 = vector.broadcast %cst_329 : f32 to vector<8x128xf32>
    %850 = arith.addf %849, %848 : vector<8x128xf32>
    %851 = arith.divf %849, %850 : vector<8x128xf32>
    %852 = math.tanh %821 : vector<8x128xf32>
    %853 = vector.extract_strided_slice %851 {offsets = [0, 0], sizes = [8, 32], strides = [1, 1]} : vector<8x128xf32> to vector<8x32xf32>
    %854 = vector.extract_strided_slice %851 {offsets = [0, 32], sizes = [8, 32], strides = [1, 1]} : vector<8x128xf32> to vector<8x32xf32>
    %855 = vector.extract_strided_slice %852 {offsets = [0, 64], sizes = [8, 32], strides = [1, 1]} : vector<8x128xf32> to vector<8x32xf32>
    %856 = vector.extract_strided_slice %851 {offsets = [0, 96], sizes = [8, 32], strides = [1, 1]} : vector<8x128xf32> to vector<8x32xf32>
    %857 = arith.mulf %854, %808 : vector<8x32xf32>
    %858 = arith.mulf %853, %855 : vector<8x32xf32>
    %859 = arith.addf %857, %858 : vector<8x32xf32>
    %860 = math.tanh %859 : vector<8x32xf32>
    %861 = arith.mulf %856, %860 : vector<8x32xf32>
    %862 = arith.mulf %813, %861 : vector<8x32xf32>
    %cst_330 = arith.constant 1.000000e+00 : f32
    %863 = vector.broadcast %cst_330 : f32 to vector<8x32xf32>
    %864 = arith.subf %863, %813 : vector<8x32xf32>
    %865 = arith.mulf %864, %803 : vector<8x32xf32>
    %866 = arith.addf %862, %865 : vector<8x32xf32>
    %867 = arith.mulf %813, %859 : vector<8x32xf32>
    %cst_331 = arith.constant 1.000000e+00 : f32
    %868 = vector.broadcast %cst_331 : f32 to vector<8x32xf32>
    %869 = arith.subf %868, %813 : vector<8x32xf32>
    %870 = arith.mulf %869, %808 : vector<8x32xf32>
    %871 = arith.addf %867, %870 : vector<8x32xf32>
    %c16_332 = arith.constant 16 : index
    %c0_333 = arith.constant 0 : index
    %872 = vector.load %arg3[%c16_332, %c0_333] : memref<64x32xf32, #tpu.memory_space<vmem>>, vector<8x32xf32>
    %873 = arith.mulf %872, %862 : vector<8x32xf32>
    %874 = arith.addf %811, %873 : vector<8x32xf32>
    %c48_334 = arith.constant 48 : index
    %c0_335 = arith.constant 0 : index
    %875 = vector.load %arg2[%c48_334, %c0_335] : memref<64x32xf32, #tpu.memory_space<vmem>>, vector<8x32xf32>
    %c8_336 = arith.constant 8 : index
    %c0_337 = arith.constant 0 : index
    %876 = vector.load %arg2[%c8_336, %c0_337] : memref<64x32xf32, #tpu.memory_space<vmem>>, vector<8x32xf32>
    %c48_338 = arith.constant 48 : index
    %c0_339 = arith.constant 0 : index
    %877 = vector.load %arg20[%c48_338, %c0_339] : memref<64x256xf32, #tpu.memory_space<vmem>>, vector<8x128xf32>
    %c0_340 = arith.constant 0 : index
    %c0_341 = arith.constant 0 : index
    %878 = vector.load %arg11[%c0_340, %c0_341] : memref<32x128xf32, #tpu.memory_space<vmem>>, vector<32x128xf32>
    %cst_342 = arith.constant dense<0.000000e+00> : vector<8x128xf32>
    %879 = tpu.matmul %841, %878, %cst_342 {dimension_numbers = #tpu.dot_dimension_numbers<[1], [0], [0], [1], [0, 0, 1, 1], [], []>} : vector<8x32xf32>, vector<32x128xf32>, vector<8x128xf32> -> vector<8x128xf32>
    %880 = arith.addf %877, %879 : vector<8x128xf32>
    %c8_343 = arith.constant 8 : index
    %c128_344 = arith.constant 128 : index
    %881 = vector.load %arg20[%c8_343, %c128_344] : memref<64x256xf32, #tpu.memory_space<vmem>>, vector<8x128xf32>
    %c0_345 = arith.constant 0 : index
    %c0_346 = arith.constant 0 : index
    %882 = vector.load %arg12[%c0_345, %c0_346] : memref<32x128xf32, #tpu.memory_space<vmem>>, vector<32x128xf32>
    %cst_347 = arith.constant dense<0.000000e+00> : vector<8x128xf32>
    %883 = tpu.matmul %866, %882, %cst_347 {dimension_numbers = #tpu.dot_dimension_numbers<[1], [0], [0], [1], [0, 0, 1, 1], [], []>} : vector<8x32xf32>, vector<32x128xf32>, vector<8x128xf32> -> vector<8x128xf32>
    %884 = arith.addf %881, %883 : vector<8x128xf32>
    %885 = arith.negf %880 : vector<8x128xf32>
    %886 = math.exp %885 : vector<8x128xf32>
    %cst_348 = arith.constant 1.000000e+00 : f32
    %887 = vector.broadcast %cst_348 : f32 to vector<8x128xf32>
    %888 = arith.addf %887, %886 : vector<8x128xf32>
    %889 = arith.divf %887, %888 : vector<8x128xf32>
    %890 = math.tanh %880 : vector<8x128xf32>
    %891 = vector.extract_strided_slice %889 {offsets = [0, 0], sizes = [8, 32], strides = [1, 1]} : vector<8x128xf32> to vector<8x32xf32>
    %892 = vector.extract_strided_slice %889 {offsets = [0, 32], sizes = [8, 32], strides = [1, 1]} : vector<8x128xf32> to vector<8x32xf32>
    %893 = vector.extract_strided_slice %890 {offsets = [0, 64], sizes = [8, 32], strides = [1, 1]} : vector<8x128xf32> to vector<8x32xf32>
    %894 = vector.extract_strided_slice %889 {offsets = [0, 96], sizes = [8, 32], strides = [1, 1]} : vector<8x128xf32> to vector<8x32xf32>
    %895 = arith.mulf %892, %846 : vector<8x32xf32>
    %896 = arith.mulf %891, %893 : vector<8x32xf32>
    %897 = arith.addf %895, %896 : vector<8x32xf32>
    %898 = math.tanh %897 : vector<8x32xf32>
    %899 = arith.mulf %894, %898 : vector<8x32xf32>
    %900 = arith.mulf %875, %899 : vector<8x32xf32>
    %cst_349 = arith.constant 1.000000e+00 : f32
    %901 = vector.broadcast %cst_349 : f32 to vector<8x32xf32>
    %902 = arith.subf %901, %875 : vector<8x32xf32>
    %903 = arith.mulf %902, %841 : vector<8x32xf32>
    %904 = arith.addf %900, %903 : vector<8x32xf32>
    %905 = arith.mulf %875, %897 : vector<8x32xf32>
    %cst_350 = arith.constant 1.000000e+00 : f32
    %906 = vector.broadcast %cst_350 : f32 to vector<8x32xf32>
    %907 = arith.subf %906, %875 : vector<8x32xf32>
    %908 = arith.mulf %907, %846 : vector<8x32xf32>
    %909 = arith.addf %905, %908 : vector<8x32xf32>
    %910 = arith.negf %884 : vector<8x128xf32>
    %911 = math.exp %910 : vector<8x128xf32>
    %cst_351 = arith.constant 1.000000e+00 : f32
    %912 = vector.broadcast %cst_351 : f32 to vector<8x128xf32>
    %913 = arith.addf %912, %911 : vector<8x128xf32>
    %914 = arith.divf %912, %913 : vector<8x128xf32>
    %915 = math.tanh %884 : vector<8x128xf32>
    %916 = vector.extract_strided_slice %914 {offsets = [0, 0], sizes = [8, 32], strides = [1, 1]} : vector<8x128xf32> to vector<8x32xf32>
    %917 = vector.extract_strided_slice %914 {offsets = [0, 32], sizes = [8, 32], strides = [1, 1]} : vector<8x128xf32> to vector<8x32xf32>
    %918 = vector.extract_strided_slice %915 {offsets = [0, 64], sizes = [8, 32], strides = [1, 1]} : vector<8x128xf32> to vector<8x32xf32>
    %919 = vector.extract_strided_slice %914 {offsets = [0, 96], sizes = [8, 32], strides = [1, 1]} : vector<8x128xf32> to vector<8x32xf32>
    %920 = arith.mulf %917, %871 : vector<8x32xf32>
    %921 = arith.mulf %916, %918 : vector<8x32xf32>
    %922 = arith.addf %920, %921 : vector<8x32xf32>
    %923 = math.tanh %922 : vector<8x32xf32>
    %924 = arith.mulf %919, %923 : vector<8x32xf32>
    %925 = arith.mulf %876, %924 : vector<8x32xf32>
    %cst_352 = arith.constant 1.000000e+00 : f32
    %926 = vector.broadcast %cst_352 : f32 to vector<8x32xf32>
    %927 = arith.subf %926, %876 : vector<8x32xf32>
    %928 = arith.mulf %927, %866 : vector<8x32xf32>
    %929 = arith.addf %925, %928 : vector<8x32xf32>
    %930 = arith.mulf %876, %922 : vector<8x32xf32>
    %cst_353 = arith.constant 1.000000e+00 : f32
    %931 = vector.broadcast %cst_353 : f32 to vector<8x32xf32>
    %932 = arith.subf %931, %876 : vector<8x32xf32>
    %933 = arith.mulf %932, %871 : vector<8x32xf32>
    %934 = arith.addf %930, %933 : vector<8x32xf32>
    %c8_354 = arith.constant 8 : index
    %c0_355 = arith.constant 0 : index
    %935 = vector.load %arg3[%c8_354, %c0_355] : memref<64x32xf32, #tpu.memory_space<vmem>>, vector<8x32xf32>
    %936 = arith.mulf %935, %925 : vector<8x32xf32>
    %937 = arith.addf %874, %936 : vector<8x32xf32>
    %c56_356 = arith.constant 56 : index
    %c0_357 = arith.constant 0 : index
    %938 = vector.load %arg2[%c56_356, %c0_357] : memref<64x32xf32, #tpu.memory_space<vmem>>, vector<8x32xf32>
    %c0_358 = arith.constant 0 : index
    %c0_359 = arith.constant 0 : index
    %939 = vector.load %arg2[%c0_358, %c0_359] : memref<64x32xf32, #tpu.memory_space<vmem>>, vector<8x32xf32>
    %c56_360 = arith.constant 56 : index
    %c0_361 = arith.constant 0 : index
    %940 = vector.load %arg20[%c56_360, %c0_361] : memref<64x256xf32, #tpu.memory_space<vmem>>, vector<8x128xf32>
    %c0_362 = arith.constant 0 : index
    %c0_363 = arith.constant 0 : index
    %941 = vector.load %arg11[%c0_362, %c0_363] : memref<32x128xf32, #tpu.memory_space<vmem>>, vector<32x128xf32>
    %cst_364 = arith.constant dense<0.000000e+00> : vector<8x128xf32>
    %942 = tpu.matmul %904, %941, %cst_364 {dimension_numbers = #tpu.dot_dimension_numbers<[1], [0], [0], [1], [0, 0, 1, 1], [], []>} : vector<8x32xf32>, vector<32x128xf32>, vector<8x128xf32> -> vector<8x128xf32>
    %943 = arith.addf %940, %942 : vector<8x128xf32>
    %c0_365 = arith.constant 0 : index
    %c128_366 = arith.constant 128 : index
    %944 = vector.load %arg20[%c0_365, %c128_366] : memref<64x256xf32, #tpu.memory_space<vmem>>, vector<8x128xf32>
    %c0_367 = arith.constant 0 : index
    %c0_368 = arith.constant 0 : index
    %945 = vector.load %arg12[%c0_367, %c0_368] : memref<32x128xf32, #tpu.memory_space<vmem>>, vector<32x128xf32>
    %cst_369 = arith.constant dense<0.000000e+00> : vector<8x128xf32>
    %946 = tpu.matmul %929, %945, %cst_369 {dimension_numbers = #tpu.dot_dimension_numbers<[1], [0], [0], [1], [0, 0, 1, 1], [], []>} : vector<8x32xf32>, vector<32x128xf32>, vector<8x128xf32> -> vector<8x128xf32>
    %947 = arith.addf %944, %946 : vector<8x128xf32>
    %948 = arith.negf %943 : vector<8x128xf32>
    %949 = math.exp %948 : vector<8x128xf32>
    %cst_370 = arith.constant 1.000000e+00 : f32
    %950 = vector.broadcast %cst_370 : f32 to vector<8x128xf32>
    %951 = arith.addf %950, %949 : vector<8x128xf32>
    %952 = arith.divf %950, %951 : vector<8x128xf32>
    %953 = math.tanh %943 : vector<8x128xf32>
    %954 = vector.extract_strided_slice %952 {offsets = [0, 0], sizes = [8, 32], strides = [1, 1]} : vector<8x128xf32> to vector<8x32xf32>
    %955 = vector.extract_strided_slice %952 {offsets = [0, 32], sizes = [8, 32], strides = [1, 1]} : vector<8x128xf32> to vector<8x32xf32>
    %956 = vector.extract_strided_slice %953 {offsets = [0, 64], sizes = [8, 32], strides = [1, 1]} : vector<8x128xf32> to vector<8x32xf32>
    %957 = vector.extract_strided_slice %952 {offsets = [0, 96], sizes = [8, 32], strides = [1, 1]} : vector<8x128xf32> to vector<8x32xf32>
    %958 = arith.mulf %955, %909 : vector<8x32xf32>
    %959 = arith.mulf %954, %956 : vector<8x32xf32>
    %960 = arith.addf %958, %959 : vector<8x32xf32>
    %961 = math.tanh %960 : vector<8x32xf32>
    %962 = arith.mulf %957, %961 : vector<8x32xf32>
    %963 = arith.mulf %938, %962 : vector<8x32xf32>
    %cst_371 = arith.constant 1.000000e+00 : f32
    %964 = vector.broadcast %cst_371 : f32 to vector<8x32xf32>
    %965 = arith.subf %964, %938 : vector<8x32xf32>
    %966 = arith.mulf %965, %904 : vector<8x32xf32>
    %967 = arith.addf %963, %966 : vector<8x32xf32>
    %968 = arith.negf %947 : vector<8x128xf32>
    %969 = math.exp %968 : vector<8x128xf32>
    %cst_372 = arith.constant 1.000000e+00 : f32
    %970 = vector.broadcast %cst_372 : f32 to vector<8x128xf32>
    %971 = arith.addf %970, %969 : vector<8x128xf32>
    %972 = arith.divf %970, %971 : vector<8x128xf32>
    %973 = math.tanh %947 : vector<8x128xf32>
    %974 = vector.extract_strided_slice %972 {offsets = [0, 0], sizes = [8, 32], strides = [1, 1]} : vector<8x128xf32> to vector<8x32xf32>
    %975 = vector.extract_strided_slice %972 {offsets = [0, 32], sizes = [8, 32], strides = [1, 1]} : vector<8x128xf32> to vector<8x32xf32>
    %976 = vector.extract_strided_slice %973 {offsets = [0, 64], sizes = [8, 32], strides = [1, 1]} : vector<8x128xf32> to vector<8x32xf32>
    %977 = vector.extract_strided_slice %972 {offsets = [0, 96], sizes = [8, 32], strides = [1, 1]} : vector<8x128xf32> to vector<8x32xf32>
    %978 = arith.mulf %975, %934 : vector<8x32xf32>
    %979 = arith.mulf %974, %976 : vector<8x32xf32>
    %980 = arith.addf %978, %979 : vector<8x32xf32>
    %981 = math.tanh %980 : vector<8x32xf32>
    %982 = arith.mulf %977, %981 : vector<8x32xf32>
    %983 = arith.mulf %939, %982 : vector<8x32xf32>
    %c0_373 = arith.constant 0 : index
    %c0_374 = arith.constant 0 : index
    %984 = vector.load %arg3[%c0_373, %c0_374] : memref<64x32xf32, #tpu.memory_space<vmem>>, vector<8x32xf32>
    %985 = arith.mulf %984, %983 : vector<8x32xf32>
    %986 = arith.addf %937, %985 : vector<8x32xf32>
    %c0_375 = arith.constant 0 : index
    %c0_376 = arith.constant 0 : index
    %987 = vector.load %arg13[%c0_375, %c0_376] : memref<32x2xf32, #tpu.memory_space<vmem>>, vector<32x2xf32>
    %cst_377 = arith.constant dense<0.000000e+00> : vector<8x2xf32>
    %988 = tpu.matmul %967, %987, %cst_377 {dimension_numbers = #tpu.dot_dimension_numbers<[1], [0], [0], [1], [0, 0, 1, 1], [], []>} : vector<8x32xf32>, vector<32x2xf32>, vector<8x2xf32> -> vector<8x2xf32>
    %c0_378 = arith.constant 0 : index
    %c0_379 = arith.constant 0 : index
    %989 = vector.load %arg14[%c0_378, %c0_379] : memref<32x2xf32, #tpu.memory_space<vmem>>, vector<32x2xf32>
    %cst_380 = arith.constant dense<0.000000e+00> : vector<8x2xf32>
    %990 = tpu.matmul %986, %989, %cst_380 {dimension_numbers = #tpu.dot_dimension_numbers<[1], [0], [0], [1], [0, 0, 1, 1], [], []>} : vector<8x32xf32>, vector<32x2xf32>, vector<8x2xf32> -> vector<8x2xf32>
    %991 = arith.addf %988, %990 : vector<8x2xf32>
    %c0_381 = arith.constant 0 : index
    %c0_382 = arith.constant 0 : index
    %992 = vector.load %arg15[%c0_381, %c0_382] : memref<1x2xf32, #tpu.memory_space<vmem>>, vector<1x2xf32>
    %993 = vector.broadcast %992 : vector<1x2xf32> to vector<8x2xf32>
    %994 = arith.addf %991, %993 : vector<8x2xf32>
    %c0_383 = arith.constant 0 : index
    %c0_384 = arith.constant 0 : index
    %995 = vector.load %arg16[%c0_383, %c0_384] : memref<8x2xf32, #tpu.memory_space<vmem>>, vector<8x2xf32>
    tpu.vector_store %arg16[%c0_383, %c0_384], %994 {strides = array<i32>} : memref<8x2xf32, #tpu.memory_space<vmem>>, vector<8x2xf32>,
    return
  }
  func.func @transform_0(%arg0: i32) -> (i32, i32) {
    %c0_i32 = arith.constant 0 : i32
    %c0_i32_0 = arith.constant 0 : i32
    %c0_i32_1 = arith.constant 0 : i32
    return %c0_i32, %c0_i32_0 : i32, i32
  }
  func.func @transform_1(%arg0: i32) -> (i32, i32) {
    %c0_i32 = arith.constant 0 : i32
    %c0_i32_0 = arith.constant 0 : i32
    %c0_i32_1 = arith.constant 0 : i32
    return %c0_i32, %c0_i32_0 : i32, i32
  }
  func.func @transform_2(%arg0: i32) -> (i32, i32) {
    %c0_i32 = arith.constant 0 : i32
    %c0_i32_0 = arith.constant 0 : i32
    %c0_i32_1 = arith.constant 0 : i32
    return %c0_i32, %c0_i32_0 : i32, i32
  }
  func.func @transform_3(%arg0: i32) -> (i32, i32) {
    %c0_i32 = arith.constant 0 : i32
    %c0_i32_0 = arith.constant 0 : i32
    %c0_i32_1 = arith.constant 0 : i32
    return %c0_i32, %c0_i32_0 : i32, i32
  }
  func.func @transform_4(%arg0: i32) -> (i32, i32) {
    %c0_i32 = arith.constant 0 : i32
    %c0_i32_0 = arith.constant 0 : i32
    %c0_i32_1 = arith.constant 0 : i32
    return %c0_i32, %c0_i32_0 : i32, i32
  }
  func.func @transform_5(%arg0: i32) -> (i32, i32) {
    %c0_i32 = arith.constant 0 : i32
    %c0_i32_0 = arith.constant 0 : i32
    %c0_i32_1 = arith.constant 0 : i32
    return %c0_i32, %c0_i32_0 : i32, i32
  }
  func.func @transform_6(%arg0: i32) -> (i32, i32) {
    %c0_i32 = arith.constant 0 : i32
    %c0_i32_0 = arith.constant 0 : i32
    %c0_i32_1 = arith.constant 0 : i32
    return %c0_i32, %c0_i32_0 : i32, i32
  }
  func.func @transform_7(%arg0: i32) -> (i32, i32) {
    %c0_i32 = arith.constant 0 : i32
    %c0_i32_0 = arith.constant 0 : i32
    %c0_i32_1 = arith.constant 0 : i32
    return %c0_i32, %c0_i32_0 : i32, i32
  }
  func.func @transform_8(%arg0: i32) -> (i32, i32) {
    %c0_i32 = arith.constant 0 : i32
    %c0_i32_0 = arith.constant 0 : i32
    %c0_i32_1 = arith.constant 0 : i32
    return %c0_i32, %c0_i32_0 : i32, i32
  }
  func.func @transform_9(%arg0: i32) -> (i32, i32) {
    %c0_i32 = arith.constant 0 : i32
    %c0_i32_0 = arith.constant 0 : i32
    %c0_i32_1 = arith.constant 0 : i32
    return %c0_i32, %c0_i32_0 : i32, i32
  }
  func.func @transform_10(%arg0: i32) -> (i32, i32) {
    %c0_i32 = arith.constant 0 : i32
    %c0_i32_0 = arith.constant 0 : i32
    %c0_i32_1 = arith.constant 0 : i32
    return %c0_i32, %c0_i32_0 : i32, i32
  }
  func.func @transform_11(%arg0: i32) -> (i32, i32) {
    %c0_i32 = arith.constant 0 : i32
    %c0_i32_0 = arith.constant 0 : i32
    %c0_i32_1 = arith.constant 0 : i32
    return %c0_i32, %c0_i32_0 : i32, i32
  }
  func.func @transform_12(%arg0: i32) -> (i32, i32) {
    %c0_i32 = arith.constant 0 : i32
    %c0_i32_0 = arith.constant 0 : i32
    %c0_i32_1 = arith.constant 0 : i32
    return %c0_i32, %c0_i32_0 : i32, i32
  }
  func.func @transform_13(%arg0: i32) -> (i32, i32) {
    %c0_i32 = arith.constant 0 : i32
    %c0_i32_0 = arith.constant 0 : i32
    %c0_i32_1 = arith.constant 0 : i32
    return %c0_i32, %c0_i32_0 : i32, i32
  }
  func.func @transform_14(%arg0: i32) -> (i32, i32) {
    %c0_i32 = arith.constant 0 : i32
    %c0_i32_0 = arith.constant 0 : i32
    %c0_i32_1 = arith.constant 0 : i32
    return %c0_i32, %c0_i32_0 : i32, i32
  }
  func.func @transform_15(%arg0: i32) -> (i32, i32) {
    %c0_i32 = arith.constant 0 : i32
    %c0_i32_0 = arith.constant 0 : i32
    %c0_i32_1 = arith.constant 0 : i32
    return %c0_i32, %c0_i32_0 : i32, i32
  }
}

</mosaic_0001>

<bundles_post_ra>
// kernel: lstm_wo_attention_forward.1
= control target key start
LH: loop header
LB: loop body
LE: loop exit
PB: predicated region body
PF: predicated region fallthrough
CT: control target
= control target key end

     0   :  { %v3556_v24 = vmov 0.0   ;;  %vm201_vm8 = vcmask 261120   ;;  %s4933_s3 = inlined_call_operand.vmem [shape: f32[128,256], index: 3, kind: input, shape index: {}]   ;;  %s4934_s5 = inlined_call_operand.vmem [shape: f32[32,128], index: 5, kind: input, shape index: {}]   ;;  %s4935_s0 = inlined_call_operand.vmem [shape: f32[64,128], index: 0, kind: input, shape index: {}]   ;;  %s4936_s6 = inlined_call_operand.vmem [shape: f32[32,128], index: 6, kind: input, shape index: {}]   ;;  %s4937_s4 = inlined_call_operand.vmem [shape: f32[1,256], index: 4, kind: input, shape index: {}]   ;;  %s4938_s7 = inlined_call_operand.vmem [shape: f32[32,256], index: 7, kind: input, shape index: {}]   ;;  %s4939_s1 = inlined_call_operand.vmem [shape: f32[64,32], index: 1, kind: input, shape index: {}]   ;;  %s4940_s8 = inlined_call_operand.vmem [shape: f32[32,256], index: 8, kind: input, shape index: {}]   ;;  %s4941_s10 = inlined_call_operand.vmem [shape: f32[32,128], index: 10, kind: input, shape index: {}]   ;;  %s4942_s9 = inlined_call_operand.vmem [shape: f32[1,256], index: 9, kind: input, shape index: {}]   ;;  %s4943_s11 = inlined_call_operand.vmem [shape: f32[32,128], index: 11, kind: input, shape index: {}]   ;;  %s4944_s2 = inlined_call_operand.vmem [shape: f32[64,32], index: 2, kind: input, shape index: {}]   ;;  %s4945_s12 = inlined_call_operand.vmem [shape: f32[32,2], index: 12, kind: input, shape index: {}]   ;;  %s4946_s13 = inlined_call_operand.vmem [shape: f32[32,2], index: 13, kind: input, shape index: {}]   ;;  %s4947_s14 = inlined_call_operand.vmem [shape: f32[1,2], index: 14, kind: input, shape index: {}]   ;;  %s4948_s15 = inlined_call_operand.vmem [shape: f32[8,2], index: 15, kind: output, shape index: {}]  }
   0x1   :  { %v88_v0 = vld [vmem:[%s4933_s3 + $0xf0] sm:$0xff]  ;;  %v89_v1 = vld [vmem:[%s4933_s3 + $0xf8] sm:$0xff]  ;;  %v86_v2 = vld [vmem:[%s4933_s3 + $0xe0] sm:$0xff] }
   0x2   :  { %96 = vmatpush.msra.mxu0 %v88_v0  ;;  %137 = vmatpush.msra.mxu1 %v89_v1  ;;  %v87_v3 = vld [vmem:[%s4933_s3 + $0xe8] sm:$0xff]  ;;  %v84_v4 = vld [vmem:[%s4933_s3 + $0xd0] sm:$0xff]  ;;  %v85_v5 = vld [vmem:[%s4933_s3 + $0xd8] sm:$0xff] }
   0x3   :  { %v82_v6 = vld [vmem:[%s4933_s3 + $0xc0] sm:$0xff]  ;;  %v83_v7 = vld [vmem:[%s4933_s3 + $0xc8] sm:$0xff]  ;;  %v80_v8 = vld [vmem:[%s4933_s3 + $0xb0] sm:$0xff] }
   0x4   :  { %97 = vmatpush.msra.mxu0 %v86_v2  ;;  %138 = vmatpush.msra.mxu1 %v87_v3  ;;  %v81_v9 = vld [vmem:[%s4933_s3 + $0xb8] sm:$0xff]  ;;  %v78_v11 = vld [vmem:[%s4933_s3 + $0xa0] sm:$0xff]  ;;  %v79_v12 = vld [vmem:[%s4933_s3 + $0xa8] sm:$0xff] }
   0x5   :  { %v3673_v10 = vld [vmem:[%s4934_s5 + $0x18] sm:$0xff]  ;;  %v3685_v13 = vld [vmem:[%s4934_s5 + $0x10] sm:$0xff]  ;;  %v3690_v14 = vld [vmem:[%s4934_s5 + $0x8] sm:$0xff] }
   0x6   :  { %98 = vmatpush.msra.mxu0 %v84_v4  ;;  %139 = vmatpush.msra.mxu1 %v85_v5  ;;  %v76_v15 = vld [vmem:[%s4933_s3 + $0x90] sm:$0xff]  ;;  %v77_v16 = vld [vmem:[%s4933_s3 + $0x98] sm:$0xff]  ;;  %v3702_v17 = vld [vmem:[%s4934_s5] sm:$0xff] }
   0x7   :  { %217 = vmatpush.msra.mxu2 %v3673_v10  ;;  %v74_v18 = vld [vmem:[%s4933_s3 + $0x80] sm:$0xff]  ;;  %v75_v19 = vld [vmem:[%s4933_s3 + $0x88] sm:$0xff]  ;;  %v72_v20 = vld [vmem:[%s4933_s3 + $0x70] sm:$0xff] }
   0x8   :  { %99 = vmatpush.msra.mxu0 %v82_v6  ;;  %140 = vmatpush.msra.mxu1 %v83_v7  ;;  %v73_v21 = vld [vmem:[%s4933_s3 + $0x78] sm:$0xff]  ;;  %v70_v22 = vld [vmem:[%s4933_s3 + $0x60] sm:$0xff]  ;;  %v71_v23 = vld [vmem:[%s4933_s3 + $0x68] sm:$0xff] }
   0x9   :  { %218 = vmatpush.msra.mxu2 %v3685_v13  ;;  %v68_v25 = vld [vmem:[%s4933_s3 + $0x50] sm:$0xff]  ;;  %v69_v26 = vld [vmem:[%s4933_s3 + $0x58] sm:$0xff]  ;;  %v66_v27 = vld [vmem:[%s4933_s3 + $0x40] sm:$0xff] }
   0xa   :  { %100 = vmatpush.msra.mxu0 %v80_v8  ;;  %141 = vmatpush.msra.mxu1 %v81_v9  ;;  %v67_v28 = vld [vmem:[%s4933_s3 + $0x48] sm:$0xff]  ;;  %v64_v29 = vld [vmem:[%s4933_s3 + $0x30] sm:$0xff]  ;;  %v65_v30 = vld [vmem:[%s4933_s3 + $0x38] sm:$0xff] }
   0xb   :  { %219 = vmatpush.msra.mxu2 %v3690_v14  ;;  %v62_v31 = vld [vmem:[%s4933_s3 + $0x20] sm:$0xff]  ;;  %v63_v32 = vld [vmem:[%s4933_s3 + $0x28] sm:$0xff]  ;;  %v60_v33 = vld [vmem:[%s4933_s3 + $0x10] sm:$0xff] }
   0xc   :  { %101 = vmatpush.msra.mxu0 %v78_v11  ;;  %142 = vmatpush.msra.mxu1 %v79_v12  ;;  %v61_v34 = vld [vmem:[%s4933_s3 + $0x18] sm:$0xff]  ;;  %v58_v35 = vld [vmem:[%s4933_s3] sm:$0xff]  ;;  %v59_v36 = vld [vmem:[%s4933_s3 + $0x8] sm:$0xff]  ;;  %s3559_s3 = smov 96  }
   0xd   :  { %220 = vmatpush.msra.mxu2 %v3702_v17  ;;  %v50_v37 = vld [vmem:[%s4935_s0] sm:$0xff]  ;;  %v51_v38 = vld [vmem:[%s4935_s0 + $0x8] sm:$0xff]  ;;  %v3778_v39 = vld [vmem:[%s4936_s6 + $0x18] sm:$0xff] }
   0xe   :  { %102 = vmatpush.msra.mxu0 %v76_v15  ;;  %143 = vmatpush.msra.mxu1 %v77_v16  ;;  %v3783_v40 = vld [vmem:[%s4936_s6 + $0x10] sm:$0xff]  ;;  %v3793_v42 = vld [vmem:[%s4936_s6 + $0x8] sm:$0xff]  ;;  %v3798_v43 = vld [vmem:[%s4936_s6] sm:$0xff] }
   0xf   :  { %221 = vmatmul.f32.vlgmr.msra.gmra.mxu2 %v3556_v24  ;;  %243 = vmatpush.msra.mxu3 %v3778_v39  ;;  %v52_v41 = vld [vmem:[%s4935_s0 + $0x10] sm:$0xff]  ;;  %v53_v44 = vld [vmem:[%s4935_s0 + $0x18] sm:$0xff]  ;;  %v54_v45 = vld [vmem:[%s4935_s0 + $0x20] sm:$0xff] }
  0x10   :  { %103 = vmatpush.msra.mxu0 %v74_v18  ;;  %144 = vmatpush.msra.mxu1 %v75_v19  ;;  %v55_v46 = vld [vmem:[%s4935_s0 + $0x28] sm:$0xff]  ;;  %v56_v47 = vld [vmem:[%s4935_s0 + $0x30] sm:$0xff]  ;;  %v57_v48 = vld [vmem:[%s4935_s0 + $0x38] sm:$0xff]  ;;  %s3557_s0 = smov 64  }
  0x11   :  { %378 = vmatpush.msrb.mxu2 %v3673_v10  ;;  %244 = vmatpush.msra.mxu3 %v3783_v40  ;;  %v90_v49 = vld [vmem:[%s4937_s4] sm:$0x3]  ;;  %s3558_s4 = smov 32  }
  0x12   :  { %104 = vmatpush.msra.mxu0 %v72_v20  ;;  %145 = vmatpush.msra.mxu1 %v73_v21  ;;  %v3829_v50 = vperm.slane %v90_v49, 0  ;;  %v93_v51 = vperm.slane %v90_v49, 1 }
  0x13   :  { %379 = vmatpush.msrb.mxu2 %v3685_v13  ;;  %245 = vmatpush.msra.mxu3 %v3793_v42 }
  0x14   :  { %105 = vmatpush.msra.mxu0 %v70_v22  ;;  %146 = vmatpush.msra.mxu1 %v71_v23 }
  0x15   :  { %380 = vmatpush.msrb.mxu2 %v3690_v14  ;;  %246 = vmatpush.msra.mxu3 %v3798_v43 }
  0x16   :  { %106 = vmatpush.msra.mxu0 %v68_v25  ;;  %147 = vmatpush.msra.mxu1 %v69_v26 }
  0x17   :  { %381 = vmatpush.msrb.mxu2 %v3702_v17  ;;  %247 = vmatmul.f32.vlgmr.msra.gmra.mxu3 %v3556_v24 }
  0x18   :  { %107 = vmatpush.msra.mxu0 %v66_v27  ;;  %148 = vmatpush.msra.mxu1 %v67_v28 }
  0x19   :  { %552 = vmatpush.msra.mxu2 %v3673_v10  ;;  %407 = vmatpush.msrb.mxu3 %v3778_v39 }
  0x1a   :  { %108 = vmatpush.msra.mxu0 %v64_v29  ;;  %149 = vmatpush.msra.mxu1 %v65_v30 }
  0x1b   :  { %553 = vmatpush.msra.mxu2 %v3685_v13  ;;  %408 = vmatpush.msrb.mxu3 %v3783_v40 }
  0x1c   :  { %109 = vmatpush.msra.mxu0 %v62_v31  ;;  %150 = vmatpush.msra.mxu1 %v63_v32 }
  0x1d   :  { %554 = vmatpush.msra.mxu2 %v3690_v14  ;;  %409 = vmatpush.msrb.mxu3 %v3793_v42 }
  0x1e   :  { %110 = vmatpush.msra.mxu0 %v60_v33  ;;  %151 = vmatpush.msra.mxu1 %v61_v34 }
  0x1f   :  { %555 = vmatpush.msra.mxu2 %v3702_v17  ;;  %410 = vmatpush.msrb.mxu3 %v3798_v43 }
  0x20   :  { %111 = vmatpush.msra.mxu0 %v58_v35  ;;  %152 = vmatpush.msra.mxu1 %v59_v36 }
  0x21   :  { %112 = vmatmul.f32.vlgmr.msra.gmra.mxu0 %v50_v37  ;;  %153 = vmatmul.f32.vlgmr.msra.gmra.mxu1 %v50_v37 }
  0x22   :  { %581 = vmatpush.msra.mxu3 %v3778_v39 }
  0x24   :  { %582 = vmatpush.msra.mxu3 %v3783_v40 }
  0x26   :  { %583 = vmatpush.msra.mxu3 %v3793_v42 }
  0x28   :  { %584 = vmatpush.msra.mxu3 %v3798_v43 }
  0x29   :  { %156 = vmatmul.f32.gmra.mxu1 %v51_v38  ;;  %115 = vmatmul.f32.gmra.mxu0 %v51_v38 }
  0x31   :  { %159 = vmatmul.f32.gmra.mxu1 %v52_v41  ;;  %118 = vmatmul.f32.gmra.mxu0 %v52_v41 }
  0x39   :  { %162 = vmatmul.f32.gmra.mxu1 %v53_v44  ;;  %121 = vmatmul.f32.gmra.mxu0 %v53_v44 }
  0x41   :  { %165 = vmatmul.f32.gmra.mxu1 %v54_v45  ;;  %124 = vmatmul.f32.gmra.mxu0 %v54_v45 }
  0x49   :  { %168 = vmatmul.f32.gmra.mxu1 %v55_v46  ;;  %127 = vmatmul.f32.gmra.mxu0 %v55_v46 }
  0x51   :  { %171 = vmatmul.f32.gmra.mxu1 %v56_v47  ;;  %130 = vmatmul.f32.gmra.mxu0 %v56_v47 }
  0x59   :  { %174 = vmatmul.f32.gmra.mxu1 %v57_v48  ;;  %133 = vmatmul.f32.gmra.mxu0 %v57_v48 }
  0x92   :  { %v222_v52 = vpop.f32.mrf.mxu2 }
  0x9a   :  { %v248_v8 = vpop.f32.mrf.mxu3 }
  0x9e   :  { %v113_v53 = vpop.f32.mrf.mxu0  ;;  %v154_v54 = vpop.f32.mrf.mxu1 }
  0x9f   :  { %v114_v55 = vadd.f32 %v113_v53, %v3829_v50  ;;  %v3832_v56 = vadd.f32 %v154_v54, %v93_v51 }
  0xa1   :  { %v225_v57 = vadd.f32 %v222_v52, %v114_v55 }
  0xa3   :  { %3296 = vtanh.f32 %v225_v57  ;;  %v3197_v15 = vmul.f32 -1.442695, %v225_v57 }
  0xa6   :  { %v157_v58 = vpop.f32.mrf.mxu1 }
  0xa7   :  { %v3834_v59 = vadd.f32 %v157_v58, %v93_v51 }
  0xa9   :  { %v3297_v60 = vpop.eup %3296 }
  0xaa   :  { %274 = vrot.lane.b32.xlu1 %v3297_v60, %s3557_s0 }
  0xae   :  { %v160_v61 = vpop.f32.mrf.mxu1 }
  0xaf   :  { %v3837_v62 = vadd.f32 %v160_v61, %v93_v51 }
  0xb6   :  { %v163_v63 = vpop.f32.mrf.mxu1 }
  0xb7   :  { %v3839_v0 = vadd.f32 %v163_v63, %v93_v51 }
  0xbe   :  { %v166_v1 = vpop.f32.mrf.mxu1 }
  0xbf   :  { %v3841_v2 = vadd.f32 %v166_v1, %v93_v51 }
  0xc6   :  { %v169_v3 = vpop.f32.mrf.mxu1 }
  0xc7   :  { %v3843_v4 = vadd.f32 %v169_v3, %v93_v51 }
  0xce   :  { %v172_v5 = vpop.f32.mrf.mxu1 }
  0xcf   :  { %v3845_v6 = vadd.f32 %v172_v5, %v93_v51 }
  0xd6   :  { %v175_v7 = vpop.f32.mrf.mxu1 }
  0xd7   :  { %v176_v9 = vadd.f32 %v175_v7, %v93_v51  ;;  %v1568_v7 = vld [vmem:[%s4938_s7 + $0x30] sm:$0xff] }
  0xd8   :  { %1728 = vmatpush.msrb.mxu0 %v1568_v7 }
  0xd9   :  { %v251_v11 = vadd.f32 %v248_v8, %v176_v9  ;;  %v1569_v8 = vld [vmem:[%s4938_s7 + $0x38] sm:$0xff]  ;;  %v1566_v9 = vld [vmem:[%s4938_s7 + $0x20] sm:$0xff] }
  0xda   :  { %1769 = vmatpush.msrb.mxu1 %v1569_v8  ;;  %1729 = vmatpush.msrb.mxu0 %v1566_v9 }
  0xdb   :  { %3298 = vtanh.f32 %v251_v11  ;;  %v3198_v32 = vmul.f32 -1.442695, %v251_v11  ;;  %v1567_v11 = vld [vmem:[%s4938_s7 + $0x28] sm:$0xff] }
  0xdc   :  { %3300 = vpow2.f32 %v3197_v15  ;;  %v1565_v15 = vld [vmem:[%s4938_s7 + $0x18] sm:$0xff]  ;;  %1770 = vmatpush.msrb.mxu1 %v1567_v11 }
  0xde   :  { %1771 = vmatpush.msrb.mxu1 %v1565_v15 }
  0xe1   :  { %v3299_v12 = vpop.eup %3298 }
  0xe2   :  { %325 = vrot.lane.b32.xlu0 %v3299_v12, %s3557_s0  ;;  %v3301_v16 = vpop.eup %3300  ;;  %v1564_v12 = vld [vmem:[%s4938_s7 + $0x10] sm:$0xff] }
  0xe3   :  { %v255_v18 = vadd.f32 1.0, %v3301_v16  ;;  %v1562_v16 = vld [vmem:[%s4938_s7] sm:$0xff]  ;;  %1730 = vmatpush.msrb.mxu0 %v1564_v12 }
  0xe5   :  { %3302 = vrcp.f32 %v255_v18  ;;  %vm261_vm0 = vweird.f32 %v255_v18  ;;  %v267_v23 = vand.u32 2147483648, %v255_v18  ;;  %v265_v26 = vand.u32 2147483647, %v255_v18  ;;  %1731 = vmatpush.msrb.mxu0 %v1562_v16 }
  0xe6   :  { %3304 = vpow2.f32 %v3198_v32  ;;  %v116_v32 = vpop.f32.mrf.mxu0 }
  0xe7   :  { %v268_v27 = vor.u32 1.1754944e-38, %v267_v23  ;;  %vm266_vm3 = vcmp.eq.f32.partialorder %v265_v26, 8.507059e+37 }
  0xeb   :  { %v3303_v19 = vpop.eup %3302 }
  0xec   :  { %v257_v20 = vmul.f32 %v3303_v19, %v255_v18  ;;  %vm262_vm1 = vweird.f32 %v3303_v19  ;;  %v3305_v33 = vpop.eup %3304  ;;  %v1563_v18 = vld [vmem:[%s4938_s7 + $0x8] sm:$0xff] }
  0xed   :  { %vm263_vm2 = vmor %vm261_vm0, %vm262_vm1  ;;  %v306_v34 = vadd.f32 1.0, %v3305_v33  ;;  %1772 = vmatpush.msrb.mxu1 %v1563_v18  ;;  %v117_v33 = vadd.f32 %v116_v32, %v3829_v50 }
  0xee   :  { %v258_v21 = vsub.f32 1.0, %v257_v20 }
  0xef   :  { %3306 = vrcp.f32 %v306_v34  ;;  %v318_v44 = vand.u32 2147483648, %v306_v34  ;;  %vm312_vm5 = vweird.f32 %v306_v34  ;;  %v316_v45 = vand.u32 2147483647, %v306_v34 }
  0xf0   :  { %v259_v22 = vmul.f32 %v3303_v19, %v258_v21 }
  0xf1   :  { %v319_v47 = vor.u32 1.1754944e-38, %v318_v44  ;;  %vm317_vm7 = vcmp.eq.f32.partialorder %v316_v45, 8.507059e+37 }
  0xf2   :  { %v260_v25 = vadd.f32 %v3303_v19, %v259_v22 }
  0xf4   :  { %v264_v28 = vsel %vm263_vm2, %v3303_v19, %v260_v25  ;;  %v3885_v19 = vld [vmem:[%s4939_s1] sm:$0xff] }
  0xf5   :  { %v269_v30 = vsel %vm266_vm3, %v268_v27, %v264_v28  ;;  %v3307_v35 = vpop.eup %3306  ;;  %v294_v20 = vsub.f32 1.0, %v3885_v19  ;;  %v195_v27 = vld [vmem:[%s4939_s1 + $0x38] sm:$0xff] }
  0xf6   :  { %v308_v36 = vmul.f32 %v3307_v35, %v306_v34  ;;  %vm313_vm4 = vweird.f32 %v3307_v35  ;;  %v272_v52 = vmul.f32 0.0, %v269_v30  ;;  %v345_v28 = vsub.f32 1.0, %v195_v27 }
  0xf7   :  { %vm314_vm6 = vmor %vm312_vm5, %vm313_vm4  ;;  %v3888_v21 = vmul.f32 0.0, %v294_v20 }
  0xf8   :  { %v309_v37 = vsub.f32 1.0, %v308_v36 }
  0xfa   :  { %v310_v38 = vmul.f32 %v3307_v35, %v309_v37 }
  0xfc   :  { %v311_v41 = vadd.f32 %v3307_v35, %v310_v38 }
  0xfe   :  { %v315_v46 = vsel %vm314_vm6, %v3307_v35, %v311_v41 }
  0xff   :  { %v320_v49 = vsel %vm317_vm7, %v319_v47, %v315_v46 }
 0x100   :  { %v323_v57 = vmul.f32 0.0, %v320_v49 }
 0x11c   :  { %v275_v29 = vpop.permute.xlu1 %274 }
 0x11d   :  { %v277_v31 = vmul.f32 %v275_v29, %v269_v30  ;;  %v346_v29 = vmul.f32 0.0, %v345_v28 }
 0x11f   :  { %279 = vrot.lane.b32.xlu2 %v277_v31, %s3558_s4 }
 0x154   :  { %v326_v48 = vpop.permute.xlu0 %325 }
 0x155   :  { %v328_v51 = vmul.f32 %v326_v48, %v320_v49 }
 0x157   :  { %330 = vrot.lane.b32.xlu0 %v328_v51, %s3558_s4 }
 0x179   :  { %v280_v53 = vpop.permute.xlu2 %279 }
 0x17a   :  { %v3850_v54 = vadd.f32 %v280_v53, %v272_v52 }
 0x17c   :  { %3308 = vtanh.f32 %v3850_v54 }
 0x182   :  { %v3309_v55 = vpop.eup %3308 }
 0x183   :  { %285 = vrot.lane.b32.xlu0 %v3309_v55, %s3557_s0 }
 0x1c9   :  { %v331_v58 = vpop.permute.xlu0 %330 }
 0x1ca   :  { %v333_v60 = vadd.f32 %v331_v58, %v323_v57 }
 0x1cc   :  { %3310 = vtanh.f32 %v333_v60 }
 0x1d2   :  { %v3311_v61 = vpop.eup %3310 }
 0x1d3   :  { %336 = vrot.lane.b32.xlu1 %v3311_v61, %s3557_s0 }
 0x1f5   :  { %v286_v63 = vpop.permute.xlu0 %285 }
 0x1f6   :  { %v288_v1 = vmul.f32 %v286_v63, %v269_v30 }
 0x1f8   :  { %290 = vrot.lane.b32.xlu1 %v288_v1, %s3558_s4 }
 0x245   :  { %v337_v3 = vpop.permute.xlu1 %336 }
 0x246   :  { %v339_v5 = vmul.f32 %v337_v3, %v320_v49 }
 0x248   :  { %341 = vrot.lane.b32.xlu2 %v339_v5, %s3558_s4 }
 0x250   :  { %349 = vrot.lane.b32.xlu2 %v333_v60, %s3559_s3 }
 0x26a   :  { %v291_v22 = vpop.permute.xlu1 %290 }
 0x26b   :  { %v293_v23 = vmul.f32 %v291_v22, %v3885_v19 }
 0x26d   :  { %v3892_v25 = vadd.f32 %v3888_v21, %v293_v23  ;;  %354 = vst.msk [vmem:[#allocation3] sm:$0xff] %vm201_vm8, %v293_v23 }
 0x26f   :  { %3199 = vmatmul.msk.f32.vlgmr.msrb.gmra.mxu2 %vm201_vm8, %v3892_v25 }
 0x270   :  { %726 = vmatpush.msrb.mxu2 %v3673_v10 }
 0x272   :  { %727 = vmatpush.msrb.mxu2 %v3685_v13 }
 0x274   :  { %v1554_v26 = vld [vmem:[#allocation3] sm:$0xff]  ;;  %728 = vmatpush.msrb.mxu2 %v3690_v14 }
 0x275   :  { %3243 = vmatmul.msk.f32.vlgmr.msrb.gmra.mxu0 %vm201_vm8, %v1554_v26  ;;  %3251 = vmatmul.msk.f32.vlgmr.msrb.gmra.mxu1 %vm201_vm8, %v1554_v26 }
 0x276   :  { %729 = vmatpush.msrb.mxu2 %v3702_v17 }
 0x2a2   :  { %v342_v30 = vpop.permute.xlu2 %341 }
 0x2a3   :  { %v344_v31 = vmul.f32 %v342_v30, %v195_v27 }
 0x2a5   :  { %v3906_v10 = vadd.f32 %v346_v29, %v344_v31  ;;  %355 = vst.msk [vmem:[#allocation4 + $0x38] sm:$0xff] %vm201_vm8, %v344_v31 }
 0x2a7   :  { %3200 = vmatmul.msk.f32.vlgmr.msrb.gmra.mxu3 %vm201_vm8, %v3906_v10 }
 0x2a8   :  { %755 = vmatpush.msrb.mxu3 %v3778_v39 }
 0x2aa   :  { %v350_v13 = vpop.permute.xlu2 %349  ;;  %756 = vmatpush.msrb.mxu3 %v3783_v40 }
 0x2ab   :  { %v352_v14 = vmul.f32 %v350_v13, %v195_v27 }
 0x2ac   :  { %757 = vmatpush.msrb.mxu3 %v3793_v42 }
 0x2ad   :  { %v3914_v17 = vadd.f32 %v352_v14, %v346_v29 }
 0x2ae   :  { %758 = vmatpush.msrb.mxu3 %v3798_v43 }
 0x2af   :  { %493 = vrot.lane.b32.xlu1 %v3914_v17, %s3558_s4 }
 0x2f2   :  { %v383_v34 = vpop.f32.mrf.mxu2 }
 0x2f3   :  { %v386_v35 = vadd.f32 %v383_v34, %v117_v33 }
 0x2f5   :  { %3312 = vtanh.f32 %v386_v35  ;;  %v3201_v44 = vmul.f32 -1.442695, %v386_v35 }
 0x2fb   :  { %v3313_v36 = vpop.eup %3312 }
 0x2fc   :  { %442 = vrot.lane.b32.xlu1 %v3313_v36, %s3557_s0 }
 0x321   :  { %v494_v52 = vpop.permute.xlu1 %493 }
 0x32a   :  { %v412_v37 = vpop.f32.mrf.mxu3 }
 0x32b   :  { %v415_v38 = vadd.f32 %v412_v37, %v3845_v6 }
 0x32d   :  { %3314 = vtanh.f32 %v415_v38  ;;  %v3202_v63 = vmul.f32 -1.442695, %v415_v38  ;;  %v357_v38 = vld [vmem:[%s4939_s1 + $0x30] sm:$0xff] }
 0x32e   :  { %3316 = vpow2.f32 %v3201_v44 }
 0x333   :  { %v3315_v41 = vpop.eup %3314 }
 0x334   :  { %498 = vrot.lane.b32.xlu0 %v3315_v41, %s3557_s0  ;;  %v3317_v45 = vpop.eup %3316  ;;  %v518_v41 = vsub.f32 1.0, %v357_v38 }
 0x335   :  { %v419_v46 = vadd.f32 1.0, %v3317_v45 }
 0x336   :  { %v519_v45 = vmul.f32 %v518_v41, %v3906_v10  ;;  %v356_v10 = vld [vmem:[%s4939_s1 + $0x8] sm:$0xff] }
 0x337   :  { %3318 = vrcp.f32 %v419_v46  ;;  %v431_v6 = vand.u32 2147483648, %v419_v46  ;;  %vm425_vm10 = vweird.f32 %v419_v46  ;;  %v429_v55 = vand.u32 2147483647, %v419_v46 }
 0x338   :  { %3320 = vpow2.f32 %v3202_v63 }
 0x339   :  { %v432_v58 = vor.u32 1.1754944e-38, %v431_v6  ;;  %vm430_vm12 = vcmp.eq.f32.partialorder %v429_v55, 8.507059e+37 }
 0x33c   :  { %298 = vrot.lane.b32.xlu0 %v3850_v54, %s3559_s3 }
 0x33d   :  { %v3319_v47 = vpop.eup %3318 }
 0x33e   :  { %v421_v48 = vmul.f32 %v3319_v47, %v419_v46  ;;  %vm426_vm9 = vweird.f32 %v3319_v47  ;;  %v3321_v1 = vpop.eup %3320 }
 0x33f   :  { %vm427_vm11 = vmor %vm425_vm10, %vm426_vm9  ;;  %v475_v3 = vadd.f32 1.0, %v3321_v1 }
 0x340   :  { %v422_v49 = vsub.f32 1.0, %v421_v48 }
 0x341   :  { %3322 = vrcp.f32 %v475_v3  ;;  %v487_v12 = vand.u32 2147483648, %v475_v3  ;;  %vm481_vm14 = vweird.f32 %v475_v3  ;;  %v485_v15 = vand.u32 2147483647, %v475_v3 }
 0x342   :  { %v423_v51 = vmul.f32 %v3319_v47, %v422_v49  ;;  %v526_v49 = vmul.f32 %v518_v41, %v3914_v17 }
 0x343   :  { %v488_v18 = vor.u32 1.1754944e-38, %v487_v12  ;;  %vm486_vm0 = vcmp.eq.f32.partialorder %v485_v15, 8.507059e+37 }
 0x344   :  { %v424_v53 = vadd.f32 %v3319_v47, %v423_v51 }
 0x346   :  { %v428_v57 = vsel %vm427_vm11, %v3319_v47, %v424_v53 }
 0x347   :  { %v433_v54 = vsel %vm430_vm12, %v432_v58, %v428_v57  ;;  %v3323_v5 = vpop.eup %3322  ;;  %v119_v58 = vpop.f32.mrf.mxu0 }
 0x348   :  { %v477_v7 = vmul.f32 %v3323_v5, %v475_v3  ;;  %vm482_vm13 = vweird.f32 %v3323_v5 }
 0x349   :  { %vm483_vm15 = vmor %vm481_vm14, %vm482_vm13 }
 0x34a   :  { %v478_v8 = vsub.f32 1.0, %v477_v7 }
 0x34c   :  { %v479_v9 = vmul.f32 %v3323_v5, %v478_v8 }
 0x34e   :  { %v480_v11 = vadd.f32 %v3323_v5, %v479_v9 }
 0x350   :  { %v484_v16 = vsel %vm483_vm15, %v3323_v5, %v480_v11 }
 0x351   :  { %v489_v20 = vsel %vm486_vm0, %v488_v18, %v484_v16 }
 0x352   :  { %v496_v29 = vmul.f32 %v494_v52, %v489_v20 }
 0x36e   :  { %v443_v60 = vpop.permute.xlu1 %442 }
 0x36f   :  { %v445_v61 = vmul.f32 %v443_v60, %v433_v54 }
 0x371   :  { %447 = vrot.lane.b32.xlu1 %v445_v61, %s3558_s4 }
 0x3a6   :  { %v499_v22 = vpop.permute.xlu0 %498 }
 0x3a7   :  { %v501_v23 = vmul.f32 %v499_v22, %v489_v20 }
 0x3a9   :  { %503 = vrot.lane.b32.xlu2 %v501_v23, %s3558_s4 }
 0x3ae   :  { %v299_v26 = vpop.permute.xlu0 %298 }
 0x3af   :  { %v301_v27 = vmul.f32 %v299_v26, %v3885_v19 }
 0x3b1   :  { %v3929_v28 = vadd.f32 %v301_v27, %v3888_v21 }
 0x3b3   :  { %437 = vrot.lane.b32.xlu0 %v3929_v28, %s3558_s4 }
 0x3e3   :  { %v448_v33 = vpop.permute.xlu1 %447 }
 0x403   :  { %v504_v30 = vpop.permute.xlu2 %503 }
 0x404   :  { %v506_v31 = vadd.f32 %v504_v30, %v496_v29 }
 0x406   :  { %3324 = vtanh.f32 %v506_v31 }
 0x40c   :  { %v3325_v13 = vpop.eup %3324 }
 0x40d   :  { %509 = vrot.lane.b32.xlu2 %v3325_v13, %s3557_s0 }
 0x425   :  { %v438_v14 = vpop.permute.xlu0 %437 }
 0x426   :  { %v440_v32 = vmul.f32 %v438_v14, %v433_v54 }
 0x428   :  { %v450_v34 = vadd.f32 %v448_v33, %v440_v32 }
 0x42a   :  { %3326 = vtanh.f32 %v450_v34 }
 0x430   :  { %v3327_v35 = vpop.eup %3326 }
 0x431   :  { %453 = vrot.lane.b32.xlu0 %v3327_v35, %s3557_s0 }
 0x467   :  { %v510_v19 = vpop.permute.xlu2 %509 }
 0x468   :  { %v512_v21 = vmul.f32 %v510_v19, %v489_v20 }
 0x46a   :  { %514 = vrot.lane.b32.xlu2 %v512_v21, %s3558_s4 }
 0x472   :  { %522 = vrot.lane.b32.xlu2 %v506_v31, %s3559_s3 }
 0x4a3   :  { %v454_v36 = vpop.permute.xlu0 %453 }
 0x4a4   :  { %v456_v37 = vmul.f32 %v454_v36, %v433_v54  ;;  %v120_v54 = vadd.f32 %v119_v58, %v3829_v50 }
 0x4a6   :  { %458 = vrot.lane.b32.xlu1 %v456_v37, %s3558_s4 }
 0x4c4   :  { %v515_v44 = vpop.permute.xlu2 %514 }
 0x4c5   :  { %v517_v46 = vmul.f32 %v515_v44, %v357_v38 }
 0x4c7   :  { %v3942_v47 = vadd.f32 %v519_v45, %v517_v46  ;;  %529 = vst.msk [vmem:[#allocation4 + $0x30] sm:$0xff] %vm201_vm8, %v517_v46 }
 0x4c9   :  { %3204 = vmatmul.msk.f32.vlgmr.msra.gmra.mxu3 %vm201_vm8, %v3942_v47 }
 0x4ca   :  { %929 = vmatpush.msra.mxu3 %v3778_v39  ;;  %v462_v39 = vsub.f32 1.0, %v356_v10 }
 0x4cc   :  { %v523_v48 = vpop.permute.xlu2 %522  ;;  %930 = vmatpush.msra.mxu3 %v3783_v40  ;;  %v463_v40 = vmul.f32 %v462_v39, %v3892_v25  ;;  %v470_v27 = vmul.f32 %v462_v39, %v3929_v28 }
 0x4cd   :  { %v525_v51 = vmul.f32 %v523_v48, %v357_v38 }
 0x4ce   :  { %931 = vmatpush.msra.mxu3 %v3793_v42 }
 0x4cf   :  { %v3951_v52 = vadd.f32 %v526_v49, %v525_v51 }
 0x4d0   :  { %932 = vmatpush.msra.mxu3 %v3798_v43 }
 0x4d1   :  { %667 = vrot.lane.b32.xlu1 %v3951_v52, %s3558_s4 }
 0x518   :  { %v459_v53 = vpop.permute.xlu1 %458 }
 0x519   :  { %v461_v6 = vmul.f32 %v459_v53, %v356_v10 }
 0x51b   :  { %v3960_v17 = vadd.f32 %v463_v40, %v461_v6  ;;  %528 = vst.msk [vmem:[#allocation3 + $0x8] sm:$0xff] %vm201_vm8, %v461_v6 }
 0x51d   :  { %3203 = vmatmul.msk.f32.vlgmr.msra.gmra.mxu2 %vm201_vm8, %v3960_v17 }
 0x522   :  { %v1555_v42 = vld [vmem:[#allocation3 + $0x8] sm:$0xff] }
 0x523   :  { %3244 = vmatmul.msk.f32.gmra.mxu0 %vm201_vm8, %v1555_v42  ;;  %3252 = vmatmul.msk.f32.gmra.mxu1 %vm201_vm8, %v1555_v42 }
 0x543   :  { %v668_v35 = vpop.permute.xlu1 %667 }
 0x54c   :  { %v586_v43 = vpop.f32.mrf.mxu3 }
 0x54d   :  { %v589_v55 = vadd.f32 %v586_v43, %v3843_v4  ;;  %v3986_v43 = vld [vmem:[%s4939_s1 + $0x28] sm:$0xff] }
 0x54f   :  { %3328 = vtanh.f32 %v589_v55  ;;  %v3206_v25 = vmul.f32 -1.442695, %v589_v55  ;;  %v3989_v55 = vsub.f32 1.0, %v3986_v43 }
 0x551   :  { %3330 = vpow2.f32 %v3206_v25  ;;  %v693_v25 = vmul.f32 %v3989_v55, %v3942_v47 }
 0x555   :  { %v3329_v57 = vpop.eup %3328 }
 0x556   :  { %672 = vrot.lane.b32.xlu0 %v3329_v57, %s3557_s0 }
 0x557   :  { %v3331_v63 = vpop.eup %3330 }
 0x558   :  { %v649_v1 = vadd.f32 1.0, %v3331_v63 }
 0x55a   :  { %v661_v11 = vand.u32 2147483648, %v649_v1  ;;  %vm655_vm2 = vweird.f32 %v649_v1  ;;  %v659_v12 = vand.u32 2147483647, %v649_v1 }
 0x55c   :  { %v662_v16 = vor.u32 1.1754944e-38, %v661_v11  ;;  %vm660_vm4 = vcmp.eq.f32.partialorder %v659_v12, 8.507059e+37 }
 0x55e   :  { %466 = vrot.lane.b32.xlu0 %v450_v34, %s3559_s3 }
 0x5a0   :  { %v557_v60 = vpop.f32.mrf.mxu2 }
 0x5a1   :  { %v560_v61 = vadd.f32 %v557_v60, %v120_v54 }
 0x5a3   :  { %3332 = vtanh.f32 %v560_v61  ;;  %v3205_v30 = vmul.f32 -1.442695, %v560_v61 }
 0x5a4   :  { %3334 = vrcp.f32 %v649_v1 }
 0x5a5   :  { %3336 = vpow2.f32 %v3205_v30 }
 0x5a9   :  { %v3333_v3 = vpop.eup %3332 }
 0x5aa   :  { %616 = vrot.lane.b32.xlu1 %v3333_v3, %s3557_s0  ;;  %v3335_v4 = vpop.eup %3334  ;;  %v700_v3 = vmul.f32 %v3989_v55, %v3951_v52 }
 0x5ab   :  { %v651_v5 = vmul.f32 %v3335_v4, %v649_v1  ;;  %vm656_vm1 = vweird.f32 %v3335_v4  ;;  %v3337_v31 = vpop.eup %3336 }
 0x5ac   :  { %vm657_vm3 = vmor %vm655_vm2, %vm656_vm1  ;;  %v593_v13 = vadd.f32 1.0, %v3337_v31 }
 0x5ad   :  { %v652_v7 = vsub.f32 1.0, %v651_v5 }
 0x5ae   :  { %3338 = vrcp.f32 %v593_v13  ;;  %v605_v21 = vand.u32 2147483648, %v593_v13  ;;  %vm599_vm6 = vweird.f32 %v593_v13  ;;  %v603_v28 = vand.u32 2147483647, %v593_v13 }
 0x5af   :  { %v653_v8 = vmul.f32 %v3335_v4, %v652_v7 }
 0x5b0   :  { %v606_v37 = vor.u32 1.1754944e-38, %v605_v21  ;;  %vm604_vm9 = vcmp.eq.f32.partialorder %v603_v28, 8.507059e+37 }
 0x5b1   :  { %v654_v9 = vadd.f32 %v3335_v4, %v653_v8  ;;  %v4012_v8 = vld [vmem:[%s4939_s1 + $0x10] sm:$0xff] }
 0x5b3   :  { %v658_v15 = vsel %vm657_vm3, %v3335_v4, %v654_v9  ;;  %v4015_v9 = vsub.f32 1.0, %v4012_v8 }
 0x5b4   :  { %v663_v18 = vsel %vm660_vm4, %v662_v16, %v658_v15  ;;  %v3339_v14 = vpop.eup %3338 }
 0x5b5   :  { %v595_v32 = vmul.f32 %v3339_v14, %v593_v13  ;;  %vm600_vm5 = vweird.f32 %v3339_v14  ;;  %v670_v45 = vmul.f32 %v668_v35, %v663_v18  ;;  %v637_v11 = vmul.f32 %v4015_v9, %v3960_v17 }
 0x5b6   :  { %vm601_vm7 = vmor %vm599_vm6, %vm600_vm5 }
 0x5b7   :  { %v596_v33 = vsub.f32 1.0, %v595_v32 }
 0x5b9   :  { %v597_v34 = vmul.f32 %v3339_v14, %v596_v33 }
 0x5bb   :  { %v598_v19 = vadd.f32 %v3339_v14, %v597_v34 }
 0x5bd   :  { %v602_v36 = vsel %vm601_vm7, %v3339_v14, %v598_v19 }
 0x5be   :  { %v607_v38 = vsel %vm604_vm9, %v606_v37, %v602_v36  ;;  %v122_v36 = vpop.f32.mrf.mxu0 }
 0x5bf   :  { %v123_v37 = vadd.f32 %v122_v36, %v3829_v50 }
 0x5c8   :  { %v673_v20 = vpop.permute.xlu0 %672 }
 0x5c9   :  { %v675_v22 = vmul.f32 %v673_v20, %v663_v18 }
 0x5cb   :  { %677 = vrot.lane.b32.xlu2 %v675_v22, %s3558_s4 }
 0x5d0   :  { %v467_v23 = vpop.permute.xlu0 %466 }
 0x5d1   :  { %v469_v26 = vmul.f32 %v467_v23, %v356_v10 }
 0x5d3   :  { %v3974_v29 = vadd.f32 %v470_v27, %v469_v26 }
 0x5d5   :  { %611 = vrot.lane.b32.xlu0 %v3974_v29, %s3558_s4  ;;  %v644_v21 = vmul.f32 %v4015_v9, %v3974_v29 }
 0x61c   :  { %v617_v41 = vpop.permute.xlu1 %616 }
 0x61d   :  { %v619_v44 = vmul.f32 %v617_v41, %v607_v38 }
 0x61f   :  { %621 = vrot.lane.b32.xlu1 %v619_v44, %s3558_s4 }
 0x625   :  { %v678_v46 = vpop.permute.xlu2 %677 }
 0x626   :  { %v680_v48 = vadd.f32 %v678_v46, %v670_v45 }
 0x628   :  { %3340 = vtanh.f32 %v680_v48 }
 0x62e   :  { %v3341_v49 = vpop.eup %3340 }
 0x62f   :  { %683 = vrot.lane.b32.xlu2 %v3341_v49, %s3557_s0 }
 0x647   :  { %v612_v39 = vpop.permute.xlu0 %611 }
 0x648   :  { %v614_v53 = vmul.f32 %v612_v39, %v607_v38 }
 0x689   :  { %v684_v51 = vpop.permute.xlu2 %683 }
 0x68a   :  { %v686_v10 = vmul.f32 %v684_v51, %v663_v18 }
 0x68c   :  { %688 = vrot.lane.b32.xlu2 %v686_v10, %s3558_s4 }
 0x691   :  { %v622_v40 = vpop.permute.xlu1 %621 }
 0x692   :  { %v624_v6 = vadd.f32 %v622_v40, %v614_v53 }
 0x694   :  { %3342 = vtanh.f32 %v624_v6  ;;  %696 = vrot.lane.b32.xlu2 %v680_v48, %s3559_s3 }
 0x69a   :  { %v3343_v42 = vpop.eup %3342 }
 0x69b   :  { %627 = vrot.lane.b32.xlu0 %v3343_v42, %s3557_s0 }
 0x6e6   :  { %v689_v57 = vpop.permute.xlu2 %688 }
 0x6e7   :  { %v691_v58 = vmul.f32 %v689_v57, %v3986_v43 }
 0x6e9   :  { %v3994_v54 = vadd.f32 %v693_v25, %v691_v58  ;;  %703 = vst.msk [vmem:[#allocation4 + $0x28] sm:$0xff] %vm201_vm8, %v691_v58 }
 0x6eb   :  { %3208 = vmatmul.msk.f32.vlgmr.msrb.gmra.mxu3 %vm201_vm8, %v3994_v54 }
 0x6ee   :  { %v697_v63 = vpop.permute.xlu2 %696 }
 0x6ef   :  { %v699_v1 = vmul.f32 %v697_v63, %v3986_v43 }
 0x6f1   :  { %v4003_v47 = vadd.f32 %v700_v3, %v699_v1 }
 0x70d   :  { %v628_v60 = vpop.permute.xlu0 %627 }
 0x70e   :  { %v630_v61 = vmul.f32 %v628_v60, %v607_v38 }
 0x710   :  { %632 = vrot.lane.b32.xlu1 %v630_v61, %s3558_s4 }
 0x718   :  { %841 = vrot.lane.b32.xlu1 %v4003_v47, %s3558_s4 }
 0x76e   :  { %v760_v4 = vpop.f32.mrf.mxu3 }
 0x76f   :  { %v763_v5 = vadd.f32 %v760_v4, %v3841_v2 }
 0x771   :  { %3344 = vtanh.f32 %v763_v5  ;;  %v3210_v16 = vmul.f32 -1.442695, %v763_v5 }
 0x773   :  { %3346 = vpow2.f32 %v3210_v16 }
 0x777   :  { %v3345_v7 = vpop.eup %3344 }
 0x778   :  { %846 = vrot.lane.b32.xlu0 %v3345_v7, %s3557_s0 }
 0x779   :  { %v3347_v18 = vpop.eup %3346 }
 0x77a   :  { %v823_v20 = vadd.f32 1.0, %v3347_v18 }
 0x77c   :  { %3348 = vrcp.f32 %v823_v20  ;;  %v835_v30 = vand.u32 2147483648, %v823_v20  ;;  %vm829_vm11 = vweird.f32 %v823_v20  ;;  %v833_v31 = vand.u32 2147483647, %v823_v20 }
 0x77e   :  { %v836_v14 = vor.u32 1.1754944e-38, %v835_v30  ;;  %vm834_vm13 = vcmp.eq.f32.partialorder %v833_v31, 8.507059e+37 }
 0x780   :  { %640 = vrot.lane.b32.xlu0 %v624_v6, %s3559_s3 }
 0x782   :  { %v633_v52 = vpop.permute.xlu1 %632  ;;  %v3349_v17 = vpop.eup %3348 }
 0x783   :  { %v635_v2 = vmul.f32 %v633_v52, %v4012_v8  ;;  %v825_v22 = vmul.f32 %v3349_v17, %v823_v20  ;;  %vm830_vm10 = vweird.f32 %v3349_v17 }
 0x784   :  { %vm831_vm12 = vmor %vm829_vm11, %vm830_vm10 }
 0x785   :  { %v4021_v12 = vadd.f32 %v637_v11, %v635_v2  ;;  %702 = vst.msk [vmem:[#allocation3 + $0x10] sm:$0xff] %vm201_vm8, %v635_v2  ;;  %v826_v23 = vsub.f32 1.0, %v825_v22 }
 0x787   :  { %3207 = vmatmul.msk.f32.vlgmr.msrb.gmra.mxu2 %vm201_vm8, %v4021_v12  ;;  %v827_v26 = vmul.f32 %v3349_v17, %v826_v23 }
 0x789   :  { %v828_v27 = vadd.f32 %v3349_v17, %v827_v26 }
 0x78a   :  { %v842_v45 = vpop.permute.xlu1 %841 }
 0x78b   :  { %v832_v13 = vsel %vm831_vm12, %v3349_v17, %v828_v27 }
 0x78c   :  { %v1556_v15 = vld [vmem:[#allocation3 + $0x10] sm:$0xff]  ;;  %v837_v32 = vsel %vm834_vm13, %v836_v14, %v832_v13  ;;  %v4070_v14 = vld [vmem:[%s4934_s5 + $0x18] sm:$0xff] }
 0x78d   :  { %3245 = vmatmul.msk.f32.gmra.mxu0 %vm201_vm8, %v1556_v15  ;;  %3253 = vmatmul.msk.f32.gmra.mxu1 %vm201_vm8, %v1556_v15  ;;  %v844_v46 = vmul.f32 %v842_v45, %v837_v32  ;;  %v4045_v15 = vld [vmem:[%s4939_s1 + $0x20] sm:$0xff] }
 0x78e   :  { %v4049_v18 = vsub.f32 1.0, %v4045_v15  ;;  %900 = vmatpush.msra.mxu2 %v4070_v14 }
 0x790   :  { %v867_v17 = vmul.f32 %v4049_v18, %v3994_v54  ;;  %v874_v13 = vmul.f32 %v4049_v18, %v4003_v47 }
 0x7ea   :  { %v847_v33 = vpop.permute.xlu0 %846 }
 0x7eb   :  { %v849_v34 = vmul.f32 %v847_v33, %v837_v32 }
 0x7ed   :  { %851 = vrot.lane.b32.xlu2 %v849_v34, %s3558_s4 }
 0x7f2   :  { %v641_v35 = vpop.permute.xlu0 %640 }
 0x7f3   :  { %v643_v19 = vmul.f32 %v641_v35, %v4012_v8  ;;  %v4085_v35 = vld [vmem:[%s4934_s5 + $0x8] sm:$0xff] }
 0x7f5   :  { %v4032_v28 = vadd.f32 %v644_v21, %v643_v19  ;;  %v4091_v19 = vld [vmem:[%s4934_s5] sm:$0xff]  ;;  %v4101_v21 = vld [vmem:[%s4939_s1 + $0x18] sm:$0xff] }
 0x7f7   :  { %785 = vrot.lane.b32.xlu0 %v4032_v28, %s3558_s4 }
 0x80a   :  { %v731_v38 = vpop.f32.mrf.mxu2 }
 0x80b   :  { %v734_v41 = vadd.f32 %v731_v38, %v123_v37  ;;  %v4104_v37 = vsub.f32 1.0, %v4101_v21 }
 0x80d   :  { %3350 = vtanh.f32 %v734_v41  ;;  %v3209_v51 = vmul.f32 -1.442695, %v734_v41 }
 0x813   :  { %v3351_v44 = vpop.eup %3350 }
 0x814   :  { %790 = vrot.lane.b32.xlu1 %v3351_v44, %s3557_s0  ;;  %v811_v44 = vmul.f32 %v4104_v37, %v4021_v12 }
 0x847   :  { %v852_v48 = vpop.permute.xlu2 %851 }
 0x848   :  { %v854_v49 = vadd.f32 %v852_v48, %v844_v46 }
 0x84a   :  { %3352 = vtanh.f32 %v854_v49 }
 0x84b   :  { %3354 = vpow2.f32 %v3209_v51 }
 0x850   :  { %v3353_v29 = vpop.eup %3352 }
 0x851   :  { %857 = vrot.lane.b32.xlu2 %v3353_v29, %s3557_s0  ;;  %v3355_v10 = vpop.eup %3354 }
 0x852   :  { %v767_v39 = vadd.f32 1.0, %v3355_v10 }
 0x854   :  { %3356 = vrcp.f32 %v767_v39  ;;  %v779_v25 = vand.u32 2147483648, %v767_v39  ;;  %vm773_vm15 = vweird.f32 %v767_v39  ;;  %v777_v58 = vand.u32 2147483647, %v767_v39 }
 0x856   :  { %v780_v61 = vor.u32 1.1754944e-38, %v779_v25  ;;  %vm778_vm1 = vcmp.eq.f32.partialorder %v777_v58, 8.507059e+37 }
 0x85a   :  { %v3357_v53 = vpop.eup %3356 }
 0x85b   :  { %v769_v40 = vmul.f32 %v3357_v53, %v767_v39  ;;  %vm774_vm14 = vweird.f32 %v3357_v53 }
 0x85c   :  { %vm775_vm0 = vmor %vm773_vm15, %vm774_vm14 }
 0x85d   :  { %v770_v6 = vsub.f32 1.0, %v769_v40 }
 0x85f   :  { %v771_v42 = vmul.f32 %v3357_v53, %v770_v6 }
 0x861   :  { %v772_v57 = vadd.f32 %v3357_v53, %v771_v42 }
 0x863   :  { %v776_v60 = vsel %vm775_vm0, %v3357_v53, %v772_v57 }
 0x864   :  { %v781_v63 = vsel %vm778_vm1, %v780_v61, %v776_v60  ;;  %v818_v61 = vmul.f32 %v4104_v37, %v4032_v28 }
 0x869   :  { %v786_v7 = vpop.permute.xlu0 %785 }
 0x86a   :  { %v788_v52 = vmul.f32 %v786_v7, %v781_v63  ;;  %v125_v7 = vpop.f32.mrf.mxu0 }
 0x886   :  { %v791_v1 = vpop.permute.xlu1 %790 }
 0x887   :  { %v793_v3 = vmul.f32 %v791_v1, %v781_v63 }
 0x889   :  { %795 = vrot.lane.b32.xlu1 %v793_v3, %s3558_s4 }
 0x8ab   :  { %v858_v4 = vpop.permute.xlu2 %857 }
 0x8ac   :  { %v860_v5 = vmul.f32 %v858_v4, %v837_v32  ;;  %v4075_v32 = vld [vmem:[%s4934_s5 + $0x10] sm:$0xff] }
 0x8ad   :  { %901 = vmatpush.msra.mxu2 %v4075_v32 }
 0x8ae   :  { %862 = vrot.lane.b32.xlu2 %v860_v5, %s3558_s4 }
 0x8af   :  { %902 = vmatpush.msra.mxu2 %v4085_v35 }
 0x8b1   :  { %903 = vmatpush.msra.mxu2 %v4091_v19 }
 0x8b3   :  { %1074 = vmatpush.msrb.mxu2 %v4070_v14 }
 0x8b5   :  { %1075 = vmatpush.msrb.mxu2 %v4075_v32 }
 0x8b6   :  { %870 = vrot.lane.b32.xlu2 %v854_v49, %s3559_s3 }
 0x8b7   :  { %1076 = vmatpush.msrb.mxu2 %v4085_v35 }
 0x8b9   :  { %1077 = vmatpush.msrb.mxu2 %v4091_v19 }
 0x8fb   :  { %v796_v11 = vpop.permute.xlu1 %795 }
 0x8fc   :  { %v798_v2 = vadd.f32 %v796_v11, %v788_v52  ;;  %v126_v52 = vadd.f32 %v125_v7, %v3829_v50 }
 0x8fe   :  { %3358 = vtanh.f32 %v798_v2 }
 0x904   :  { %v3359_v16 = vpop.eup %3358 }
 0x905   :  { %801 = vrot.lane.b32.xlu0 %v3359_v16, %s3557_s0 }
 0x908   :  { %v863_v20 = vpop.permute.xlu2 %862 }
 0x909   :  { %v865_v22 = vmul.f32 %v863_v20, %v4045_v15 }
 0x90b   :  { %v4054_v23 = vadd.f32 %v867_v17, %v865_v22  ;;  %877 = vst.msk [vmem:[#allocation4 + $0x20] sm:$0xff] %vm201_vm8, %v865_v22 }
 0x90d   :  { %3212 = vmatmul.msk.f32.vlgmr.msra.gmra.mxu3 %vm201_vm8, %v4054_v23 }
 0x910   :  { %v871_v30 = vpop.permute.xlu2 %870 }
 0x911   :  { %v873_v31 = vmul.f32 %v871_v30, %v4045_v15  ;;  %v1087_v30 = vld [vmem:[%s4936_s6 + $0x18] sm:$0xff] }
 0x912   :  { %1103 = vmatpush.msrb.mxu3 %v1087_v30 }
 0x913   :  { %v4063_v54 = vadd.f32 %v874_v13, %v873_v31  ;;  %v1086_v31 = vld [vmem:[%s4936_s6 + $0x10] sm:$0xff] }
 0x914   :  { %1104 = vmatpush.msrb.mxu3 %v1086_v31 }
 0x977   :  { %v802_v26 = vpop.permute.xlu0 %801 }
 0x978   :  { %v804_v27 = vmul.f32 %v802_v26, %v781_v63 }
 0x97a   :  { %806 = vrot.lane.b32.xlu1 %v804_v27, %s3558_s4 }
 0x982   :  { %1015 = vrot.lane.b32.xlu1 %v4063_v54, %s3558_s4 }
 0x990   :  { %v934_v47 = vpop.f32.mrf.mxu3 }
 0x991   :  { %v937_v33 = vadd.f32 %v934_v47, %v3839_v0 }
 0x993   :  { %3360 = vtanh.f32 %v937_v33  ;;  %v3214_v0 = vmul.f32 -1.442695, %v937_v33 }
 0x995   :  { %3362 = vpow2.f32 %v3214_v0 }
 0x999   :  { %v3361_v34 = vpop.eup %3360 }
 0x99a   :  { %1020 = vrot.lane.b32.xlu0 %v3361_v34, %s3557_s0 }
 0x99b   :  { %v3363_v36 = vpop.eup %3362 }
 0x99c   :  { %v997_v38 = vadd.f32 1.0, %v3363_v36 }
 0x99e   :  { %3364 = vrcp.f32 %v997_v38  ;;  %v1009_v39 = vand.u32 2147483648, %v997_v38  ;;  %vm1003_vm3 = vweird.f32 %v997_v38  ;;  %v1007_v53 = vand.u32 2147483647, %v997_v38 }
 0x9a0   :  { %v1010_v6 = vor.u32 1.1754944e-38, %v1009_v39  ;;  %vm1008_vm5 = vcmp.eq.f32.partialorder %v1007_v53, 8.507059e+37 }
 0x9a2   :  { %814 = vrot.lane.b32.xlu0 %v798_v2, %s3559_s3 }
 0x9a4   :  { %v3365_v48 = vpop.eup %3364 }
 0x9a5   :  { %v999_v12 = vmul.f32 %v3365_v48, %v997_v38  ;;  %vm1004_vm2 = vweird.f32 %v3365_v48 }
 0x9a6   :  { %vm1005_vm4 = vmor %vm1003_vm3, %vm1004_vm2 }
 0x9a7   :  { %v1000_v29 = vsub.f32 1.0, %v999_v12  ;;  %v1085_v12 = vld [vmem:[%s4936_s6 + $0x8] sm:$0xff] }
 0x9a8   :  { %1105 = vmatpush.msrb.mxu3 %v1085_v12 }
 0x9a9   :  { %v1001_v51 = vmul.f32 %v3365_v48, %v1000_v29  ;;  %v1084_v29 = vld [vmem:[%s4936_s6] sm:$0xff] }
 0x9aa   :  { %1106 = vmatpush.msrb.mxu3 %v1084_v29 }
 0x9ab   :  { %v1002_v10 = vadd.f32 %v3365_v48, %v1001_v51 }
 0x9ac   :  { %1277 = vmatpush.msra.mxu3 %v1087_v30 }
 0x9ad   :  { %v1006_v40 = vsel %vm1005_vm4, %v3365_v48, %v1002_v10  ;;  %v1041_v10 = vmul.f32 %v4054_v23, %v4104_v37 }
 0x9ae   :  { %v1011_v42 = vsel %vm1008_vm5, %v1010_v6, %v1006_v40  ;;  %1278 = vmatpush.msra.mxu3 %v1086_v31 }
 0x9b0   :  { %1279 = vmatpush.msra.mxu3 %v1085_v12 }
 0x9b2   :  { %1280 = vmatpush.msra.mxu3 %v1084_v29 }
 0x9ec   :  { %v807_v41 = vpop.permute.xlu1 %806 }
 0x9ed   :  { %v809_v45 = vmul.f32 %v807_v41, %v4101_v21 }
 0x9ef   :  { %v4109_v46 = vadd.f32 %v811_v44, %v809_v45  ;;  %876 = vst.msk [vmem:[#allocation3 + $0x18] sm:$0xff] %vm201_vm8, %v809_v45 }
 0x9f1   :  { %3211 = vmatmul.msk.f32.vlgmr.msra.gmra.mxu2 %vm201_vm8, %v4109_v46 }
 0x9f2   :  { %1248 = vmatpush.msra.mxu2 %v4070_v14 }
 0x9f4   :  { %1249 = vmatpush.msra.mxu2 %v4075_v32  ;;  %v1016_v1 = vpop.permute.xlu1 %1015 }
 0x9f5   :  { %v1018_v3 = vmul.f32 %v1016_v1, %v1011_v42 }
 0x9f6   :  { %v1557_v49 = vld [vmem:[#allocation3 + $0x18] sm:$0xff]  ;;  %1250 = vmatpush.msra.mxu2 %v4085_v35 }
 0x9f7   :  { %3246 = vmatmul.msk.f32.gmra.mxu0 %vm201_vm8, %v1557_v49  ;;  %3254 = vmatmul.msk.f32.gmra.mxu1 %vm201_vm8, %v1557_v49 }
 0x9f8   :  { %1251 = vmatpush.msra.mxu2 %v4091_v19 }
 0xa0c   :  { %v1021_v57 = vpop.permute.xlu0 %1020 }
 0xa0d   :  { %v1023_v25 = vmul.f32 %v1021_v57, %v1011_v42 }
 0xa0f   :  { %1025 = vrot.lane.b32.xlu2 %v1023_v25, %s3558_s4 }
 0xa14   :  { %v815_v58 = vpop.permute.xlu0 %814 }
 0xa15   :  { %v817_v60 = vmul.f32 %v815_v58, %v4101_v21 }
 0xa17   :  { %v4124_v63 = vadd.f32 %v818_v61, %v817_v60 }
 0xa19   :  { %959 = vrot.lane.b32.xlu0 %v4124_v63, %s3558_s4 }
 0xa69   :  { %v1026_v4 = vpop.permute.xlu2 %1025 }
 0xa6a   :  { %v1028_v5 = vadd.f32 %v1026_v4, %v1018_v3 }
 0xa6c   :  { %3366 = vtanh.f32 %v1028_v5 }
 0xa72   :  { %v3367_v11 = vpop.eup %3366 }
 0xa73   :  { %1031 = vrot.lane.b32.xlu2 %v3367_v11, %s3557_s0 }
 0xa74   :  { %v905_v2 = vpop.f32.mrf.mxu2 }
 0xa75   :  { %v908_v16 = vadd.f32 %v905_v2, %v126_v52 }
 0xa77   :  { %3368 = vtanh.f32 %v908_v16  ;;  %v3213_v20 = vmul.f32 -1.442695, %v908_v16 }
 0xa79   :  { %3370 = vpow2.f32 %v3213_v20 }
 0xa7d   :  { %v3369_v28 = vpop.eup %3368 }
 0xa7e   :  { %964 = vrot.lane.b32.xlu1 %v3369_v28, %s3557_s0 }
 0xa7f   :  { %v3371_v17 = vpop.eup %3370 }
 0xa80   :  { %v941_v27 = vadd.f32 1.0, %v3371_v17 }
 0xa82   :  { %3372 = vrcp.f32 %v941_v27  ;;  %v953_v36 = vand.u32 2147483648, %v941_v27  ;;  %vm947_vm7 = vweird.f32 %v941_v27  ;;  %v951_v38 = vand.u32 2147483647, %v941_v27 }
 0xa84   :  { %v954_v44 = vor.u32 1.1754944e-38, %v953_v36  ;;  %vm952_vm10 = vcmp.eq.f32.partialorder %v951_v38, 8.507059e+37 }
 0xa88   :  { %v3373_v13 = vpop.eup %3372 }
 0xa89   :  { %v943_v47 = vmul.f32 %v3373_v13, %v941_v27  ;;  %vm948_vm6 = vweird.f32 %v3373_v13 }
 0xa8a   :  { %vm949_vm9 = vmor %vm947_vm7, %vm948_vm6 }
 0xa8b   :  { %v944_v33 = vsub.f32 1.0, %v943_v47  ;;  %v960_v40 = vpop.permute.xlu0 %959  ;;  %v992_v47 = vmul.f32 %v4049_v18, %v4124_v63 }
 0xa8d   :  { %v945_v34 = vmul.f32 %v3373_v13, %v944_v33 }
 0xa8f   :  { %v946_v0 = vadd.f32 %v3373_v13, %v945_v34 }
 0xa91   :  { %v950_v41 = vsel %vm949_vm9, %v3373_v13, %v946_v0  ;;  %v985_v0 = vmul.f32 %v4049_v18, %v4109_v46 }
 0xa92   :  { %v955_v45 = vsel %vm952_vm10, %v954_v44, %v950_v41 }
 0xa93   :  { %v962_v6 = vmul.f32 %v960_v40, %v955_v45 }
 0xacd   :  { %v1032_v22 = vpop.permute.xlu2 %1031 }
 0xace   :  { %v1034_v26 = vmul.f32 %v1032_v22, %v1011_v42 }
 0xad0   :  { %1036 = vrot.lane.b32.xlu2 %v1034_v26, %s3558_s4 }
 0xad8   :  { %1044 = vrot.lane.b32.xlu2 %v1028_v5, %s3559_s3  ;;  %v1048_v5 = vmul.f32 %v4063_v54, %v4104_v37 }
 0xaf0   :  { %v965_v48 = vpop.permute.xlu1 %964 }
 0xaf1   :  { %v967_v49 = vmul.f32 %v965_v48, %v955_v45 }
 0xaf3   :  { %969 = vrot.lane.b32.xlu1 %v967_v49, %s3558_s4 }
 0xb2a   :  { %v1037_v51 = vpop.permute.xlu2 %1036 }
 0xb2b   :  { %v1039_v39 = vmul.f32 %v1037_v51, %v4101_v21 }
 0xb2d   :  { %v4149_v53 = vadd.f32 %v1041_v10, %v1039_v39  ;;  %1051 = vst.msk [vmem:[#allocation4 + $0x18] sm:$0xff] %vm201_vm8, %v1039_v39 }
 0xb2f   :  { %3216 = vmatmul.msk.f32.vlgmr.msrb.gmra.mxu3 %vm201_vm8, %v4149_v53 }
 0xb30   :  { %1451 = vmatpush.msrb.mxu3 %v1087_v30 }
 0xb32   :  { %1452 = vmatpush.msrb.mxu3 %v1086_v31  ;;  %v1045_v3 = vpop.permute.xlu2 %1044 }
 0xb33   :  { %v1047_v4 = vmul.f32 %v1045_v3, %v4101_v21 }
 0xb34   :  { %1453 = vmatpush.msrb.mxu3 %v1085_v12 }
 0xb35   :  { %v4162_v7 = vadd.f32 %v1048_v5, %v1047_v4 }
 0xb36   :  { %1454 = vmatpush.msrb.mxu3 %v1084_v29 }
 0xb65   :  { %v970_v42 = vpop.permute.xlu1 %969 }
 0xb66   :  { %v972_v57 = vadd.f32 %v970_v42, %v962_v6  ;;  %v1215_v42 = vmul.f32 %v4149_v53, %v4015_v9 }
 0xb68   :  { %3374 = vtanh.f32 %v972_v57 }
 0xb6e   :  { %v3375_v25 = vpop.eup %3374 }
 0xb6f   :  { %975 = vrot.lane.b32.xlu0 %v3375_v25, %s3557_s0 }
 0xbb2   :  { %v1108_v23 = vpop.f32.mrf.mxu3 }
 0xbb3   :  { %v1111_v58 = vadd.f32 %v1108_v23, %v3837_v62 }
 0xbb5   :  { %3376 = vtanh.f32 %v1111_v58  ;;  %v3218_v62 = vmul.f32 -1.442695, %v1111_v58 }
 0xbb7   :  { %3378 = vpow2.f32 %v3218_v62 }
 0xbbb   :  { %v3377_v60 = vpop.eup %3376 }
 0xbbc   :  { %1194 = vrot.lane.b32.xlu0 %v3377_v60, %s3557_s0 }
 0xbbd   :  { %v3379_v52 = vpop.eup %3378 }
 0xbbe   :  { %v1171_v11 = vadd.f32 1.0, %v3379_v52 }
 0xbc0   :  { %3380 = vrcp.f32 %v1171_v11  ;;  %v1183_v21 = vand.u32 2147483648, %v1171_v11  ;;  %vm1177_vm12 = vweird.f32 %v1171_v11  ;;  %v1181_v22 = vand.u32 2147483647, %v1171_v11 }
 0xbc2   :  { %v1184_v37 = vor.u32 1.1754944e-38, %v1183_v21  ;;  %vm1182_vm14 = vcmp.eq.f32.partialorder %v1181_v22, 8.507059e+37 }
 0xbc4   :  { %988 = vrot.lane.b32.xlu0 %v972_v57, %s3559_s3 }
 0xbc6   :  { %v3381_v2 = vpop.eup %3380 }
 0xbc7   :  { %v1173_v16 = vmul.f32 %v3381_v2, %v1171_v11  ;;  %vm1178_vm11 = vweird.f32 %v3381_v2 }
 0xbc8   :  { %vm1179_vm13 = vmor %vm1177_vm12, %vm1178_vm11 }
 0xbc9   :  { %v1174_v28 = vsub.f32 1.0, %v1173_v16 }
 0xbcb   :  { %v1175_v20 = vmul.f32 %v3381_v2, %v1174_v28 }
 0xbcd   :  { %v1176_v17 = vadd.f32 %v3381_v2, %v1175_v20 }
 0xbcf   :  { %v1180_v54 = vsel %vm1179_vm13, %v3381_v2, %v1176_v17 }
 0xbd0   :  { %v1185_v26 = vsel %vm1182_vm14, %v1184_v37, %v1180_v54 }
 0xbe1   :  { %v976_v61 = vpop.permute.xlu0 %975 }
 0xbe2   :  { %v978_v1 = vmul.f32 %v976_v61, %v955_v45 }
 0xbe4   :  { %980 = vrot.lane.b32.xlu1 %v978_v1, %s3558_s4 }
 0xbec   :  { %1189 = vrot.lane.b32.xlu1 %v4162_v7, %s3558_s4 }
 0xc2e   :  { %v1195_v27 = vpop.permute.xlu0 %1194 }
 0xc2f   :  { %v1197_v30 = vmul.f32 %v1195_v27, %v1185_v26 }
 0xc31   :  { %1199 = vrot.lane.b32.xlu2 %v1197_v30, %s3558_s4 }
 0xc36   :  { %v989_v31 = vpop.permute.xlu0 %988 }
 0xc37   :  { %v991_v13 = vmul.f32 %v989_v31, %v4045_v15 }
 0xc39   :  { %v4170_v33 = vadd.f32 %v992_v47, %v991_v13 }
 0xc3b   :  { %1133 = vrot.lane.b32.xlu0 %v4170_v33, %s3558_s4 }
 0xc56   :  { %v981_v34 = vpop.permute.xlu1 %980 }
 0xc57   :  { %v983_v36 = vmul.f32 %v981_v34, %v4045_v15 }
 0xc59   :  { %v4177_v38 = vadd.f32 %v985_v0, %v983_v36  ;;  %1050 = vst.msk [vmem:[#allocation3 + $0x20] sm:$0xff] %vm201_vm8, %v983_v36 }
 0xc5b   :  { %3215 = vmatmul.msk.f32.vlgmr.msrb.gmra.mxu2 %vm201_vm8, %v4177_v38 }
 0xc5c   :  { %1422 = vmatpush.msrb.mxu2 %v4070_v14  ;;  %v128_v14 = vpop.f32.mrf.mxu0 }
 0xc5e   :  { %1423 = vmatpush.msrb.mxu2 %v4075_v32  ;;  %v1190_v15 = vpop.permute.xlu1 %1189  ;;  %v129_v32 = vadd.f32 %v128_v14, %v3829_v50 }
 0xc5f   :  { %v1192_v18 = vmul.f32 %v1190_v15, %v1185_v26 }
 0xc60   :  { %v1558_v63 = vld [vmem:[#allocation3 + $0x20] sm:$0xff]  ;;  %1424 = vmatpush.msrb.mxu2 %v4085_v35 }
 0xc61   :  { %3247 = vmatmul.msk.f32.gmra.mxu0 %vm201_vm8, %v1558_v63  ;;  %3255 = vmatmul.msk.f32.gmra.mxu1 %vm201_vm8, %v1558_v63 }
 0xc62   :  { %1425 = vmatpush.msrb.mxu2 %v4091_v19 }
 0xc8b   :  { %v1200_v46 = vpop.permute.xlu2 %1199 }
 0xc8c   :  { %v1202_v41 = vadd.f32 %v1200_v46, %v1192_v18  ;;  %v1222_v18 = vmul.f32 %v4162_v7, %v4015_v9  ;;  %v1159_v7 = vmul.f32 %v4177_v38, %v3989_v55 }
 0xc8e   :  { %3382 = vtanh.f32 %v1202_v41 }
 0xc94   :  { %v3383_v44 = vpop.eup %3382 }
 0xc95   :  { %1205 = vrot.lane.b32.xlu2 %v3383_v44, %s3557_s0 }
 0xcad   :  { %v1134_v62 = vpop.permute.xlu0 %1133 }
 0xcde   :  { %v1079_v45 = vpop.f32.mrf.mxu2 }
 0xcdf   :  { %v1082_v48 = vadd.f32 %v1079_v45, %v129_v32 }
 0xce1   :  { %3384 = vtanh.f32 %v1082_v48  ;;  %v3217_v19 = vmul.f32 -1.442695, %v1082_v48 }
 0xce3   :  { %3386 = vpow2.f32 %v3217_v19 }
 0xce7   :  { %v3385_v35 = vpop.eup %3384 }
 0xce8   :  { %1138 = vrot.lane.b32.xlu1 %v3385_v35, %s3557_s0 }
 0xce9   :  { %v3387_v29 = vpop.eup %3386 }
 0xcea   :  { %v1115_v51 = vadd.f32 1.0, %v3387_v29 }
 0xcec   :  { %3388 = vrcp.f32 %v1115_v51  ;;  %v1127_v60 = vand.u32 2147483648, %v1115_v51  ;;  %vm1121_vm0 = vweird.f32 %v1115_v51  ;;  %v1125_v61 = vand.u32 2147483647, %v1115_v51 }
 0xcee   :  { %v1128_v3 = vor.u32 1.1754944e-38, %v1127_v60  ;;  %vm1126_vm2 = vcmp.eq.f32.partialorder %v1125_v61, 8.507059e+37 }
 0xcef   :  { %v1206_v49 = vpop.permute.xlu2 %1205 }
 0xcf0   :  { %v1208_v12 = vmul.f32 %v1206_v49, %v1185_v26 }
 0xcf2   :  { %1210 = vrot.lane.b32.xlu2 %v1208_v12, %s3558_s4  ;;  %v3389_v10 = vpop.eup %3388 }
 0xcf3   :  { %v1117_v39 = vmul.f32 %v3389_v10, %v1115_v51  ;;  %vm1122_vm15 = vweird.f32 %v3389_v10 }
 0xcf4   :  { %vm1123_vm1 = vmor %vm1121_vm0, %vm1122_vm15 }
 0xcf5   :  { %v1118_v40 = vsub.f32 1.0, %v1117_v39 }
 0xcf7   :  { %v1119_v23 = vmul.f32 %v3389_v10, %v1118_v40 }
 0xcf9   :  { %v1120_v58 = vadd.f32 %v3389_v10, %v1119_v23 }
 0xcfa   :  { %1218 = vrot.lane.b32.xlu2 %v1202_v41, %s3559_s3 }
 0xcfb   :  { %v1124_v1 = vsel %vm1123_vm1, %v3389_v10, %v1120_v58  ;;  %v131_v10 = vpop.f32.mrf.mxu0 }
 0xcfc   :  { %v1129_v53 = vsel %vm1126_vm2, %v1128_v3, %v1124_v1  ;;  %v132_v39 = vadd.f32 %v131_v10, %v3829_v50 }
 0xcfd   :  { %v1136_v52 = vmul.f32 %v1134_v62, %v1129_v53 }
 0xd4c   :  { %v1211_v6 = vpop.permute.xlu2 %1210 }
 0xd4d   :  { %v1213_v57 = vmul.f32 %v1211_v6, %v4012_v8 }
 0xd4f   :  { %v4196_v25 = vadd.f32 %v1215_v42, %v1213_v57  ;;  %1225 = vst.msk [vmem:[#allocation4 + $0x10] sm:$0xff] %vm201_vm8, %v1213_v57  ;;  %v4240_v57 = vld [vmem:[%s4939_s1 + $0x8] sm:$0xff] }
 0xd50   :  { %v4243_v23 = vsub.f32 1.0, %v4240_v57 }
 0xd51   :  { %3220 = vmatmul.msk.f32.vlgmr.msra.gmra.mxu3 %vm201_vm8, %v4196_v25 }
 0xd52   :  { %v1389_v60 = vmul.f32 %v4243_v23, %v4196_v25 }
 0xd54   :  { %v1219_v47 = vpop.permute.xlu2 %1218 }
 0xd55   :  { %v1221_v36 = vmul.f32 %v1219_v47, %v4012_v8  ;;  %v1166_v8 = vmul.f32 %v4170_v33, %v3989_v55 }
 0xd57   :  { %v4210_v44 = vadd.f32 %v1222_v18, %v1221_v36 }
 0xd5a   :  { %v1139_v4 = vpop.permute.xlu1 %1138 }
 0xd5b   :  { %v1141_v5 = vmul.f32 %v1139_v4, %v1129_v53 }
 0xd5d   :  { %1143 = vrot.lane.b32.xlu1 %v1141_v5, %s3558_s4 }
 0xdcf   :  { %v1144_v11 = vpop.permute.xlu1 %1143 }
 0xdd0   :  { %v1146_v2 = vadd.f32 %v1144_v11, %v1136_v52 }
 0xdd2   :  { %3390 = vtanh.f32 %v1146_v2 }
 0xdd4   :  { %v1282_v16 = vpop.f32.mrf.mxu3 }
 0xdd5   :  { %v1285_v28 = vadd.f32 %v1282_v16, %v3834_v59 }
 0xdd7   :  { %3392 = vtanh.f32 %v1285_v28  ;;  %v3222_v21 = vmul.f32 -1.442695, %v1285_v28 }
 0xdd8   :  { %v3391_v20 = vpop.eup %3390 }
 0xdd9   :  { %1149 = vrot.lane.b32.xlu0 %v3391_v20, %s3557_s0  ;;  %3394 = vpow2.f32 %v3222_v21 }
 0xddd   :  { %v3393_v17 = vpop.eup %3392 }
 0xddf   :  { %v3395_v22 = vpop.eup %3394 }
 0xde0   :  { %v1345_v54 = vadd.f32 1.0, %v3395_v22 }
 0xde1   :  { %1368 = vrot.lane.b32.xlu0 %v3393_v17, %s3557_s0 }
 0xde2   :  { %3396 = vrcp.f32 %v1345_v54  ;;  %v1357_v34 = vand.u32 2147483648, %v1345_v54  ;;  %vm1351_vm4 = vweird.f32 %v1345_v54  ;;  %v1355_v0 = vand.u32 2147483647, %v1345_v54 }
 0xde4   :  { %v1358_v15 = vor.u32 1.1754944e-38, %v1357_v34  ;;  %vm1356_vm6 = vcmp.eq.f32.partialorder %v1355_v0, 8.507059e+37 }
 0xde8   :  { %v3397_v37 = vpop.eup %3396 }
 0xde9   :  { %1162 = vrot.lane.b32.xlu0 %v1146_v2, %s3559_s3  ;;  %v1347_v26 = vmul.f32 %v3397_v37, %v1345_v54  ;;  %vm1352_vm3 = vweird.f32 %v3397_v37 }
 0xdea   :  { %vm1353_vm5 = vmor %vm1351_vm4, %vm1352_vm3 }
 0xdeb   :  { %v1348_v27 = vsub.f32 1.0, %v1347_v26 }
 0xded   :  { %v1349_v30 = vmul.f32 %v3397_v37, %v1348_v27 }
 0xdef   :  { %v1350_v13 = vadd.f32 %v3397_v37, %v1349_v30 }
 0xdf1   :  { %v1354_v63 = vsel %vm1353_vm5, %v3397_v37, %v1350_v13 }
 0xdf2   :  { %v1359_v46 = vsel %vm1356_vm6, %v1358_v15, %v1354_v63 }
 0xe4b   :  { %v1150_v31 = vpop.permute.xlu0 %1149 }
 0xe4c   :  { %v1152_v59 = vmul.f32 %v1150_v31, %v1129_v53 }
 0xe4e   :  { %1154 = vrot.lane.b32.xlu1 %v1152_v59, %s3558_s4 }
 0xe53   :  { %v1369_v41 = vpop.permute.xlu0 %1368 }
 0xe54   :  { %v1371_v14 = vmul.f32 %v1369_v41, %v1359_v46 }
 0xe56   :  { %1363 = vrot.lane.b32.xlu1 %v4210_v44, %s3558_s4  ;;  %1373 = vrot.lane.b32.xlu2 %v1371_v14, %s3558_s4 }
 0xe5b   :  { %v1163_v32 = vpop.permute.xlu0 %1162 }
 0xe5c   :  { %v1165_v45 = vmul.f32 %v1163_v32, %v3986_v43 }
 0xe5e   :  { %v4218_v48 = vadd.f32 %v1166_v8, %v1165_v45 }
 0xe60   :  { %1307 = vrot.lane.b32.xlu0 %v4218_v48, %s3558_s4 }
 0xeb0   :  { %v1374_v19 = vpop.permute.xlu2 %1373 }
 0xec0   :  { %v1155_v9 = vpop.permute.xlu1 %1154 }
 0xec1   :  { %v1157_v35 = vmul.f32 %v1155_v9, %v3986_v43 }
 0xec3   :  { %v4225_v49 = vadd.f32 %v1159_v7, %v1157_v35  ;;  %1224 = vst.msk [vmem:[#allocation3 + $0x28] sm:$0xff] %vm201_vm8, %v1157_v35  ;;  %v1396_v35 = vmul.f32 %v4243_v23, %v4210_v44 }
 0xec5   :  { %3219 = vmatmul.msk.f32.vlgmr.msra.gmra.mxu2 %vm201_vm8, %v4225_v49 }
 0xec8   :  { %v1364_v12 = vpop.permute.xlu1 %1363 }
 0xec9   :  { %v1366_v33 = vmul.f32 %v1364_v12, %v1359_v46 }
 0xeca   :  { %v1559_v29 = vld [vmem:[#allocation3 + $0x28] sm:$0xff] }
 0xecb   :  { %v1376_v51 = vadd.f32 %v1374_v19, %v1366_v33  ;;  %3248 = vmatmul.msk.f32.gmra.mxu0 %vm201_vm8, %v1559_v29  ;;  %3256 = vmatmul.msk.f32.gmra.mxu1 %vm201_vm8, %v1559_v29 }
 0xecd   :  { %3398 = vtanh.f32 %v1376_v51 }
 0xed2   :  { %v1308_v54 = vpop.permute.xlu0 %1307 }
 0xed3   :  { %v3399_v55 = vpop.eup %3398 }
 0xed4   :  { %1379 = vrot.lane.b32.xlu2 %v3399_v55, %s3557_s0 }
 0xf2e   :  { %v1380_v43 = vpop.permute.xlu2 %1379 }
 0xf2f   :  { %v1382_v38 = vmul.f32 %v1380_v43, %v1359_v46 }
 0xf31   :  { %1384 = vrot.lane.b32.xlu2 %v1382_v38, %s3558_s4 }
 0xf39   :  { %1392 = vrot.lane.b32.xlu2 %v1376_v51, %s3559_s3  ;;  %v4262_v51 = vld [vmem:[%s4939_s1 + $0x30] sm:$0xff] }
 0xf3a   :  { %v4267_v55 = vsub.f32 1.0, %v4262_v51 }
 0xf3c   :  { %v1340_v38 = vmul.f32 %v4267_v55, %v4218_v48 }
 0xf48   :  { %v1253_v40 = vpop.f32.mrf.mxu2 }
 0xf49   :  { %v1256_v6 = vadd.f32 %v1253_v40, %v132_v39  ;;  %v1333_v40 = vmul.f32 %v4267_v55, %v4225_v49 }
 0xf4b   :  { %3400 = vtanh.f32 %v1256_v6  ;;  %v3221_v3 = vmul.f32 -1.442695, %v1256_v6 }
 0xf4d   :  { %3402 = vpow2.f32 %v3221_v3 }
 0xf51   :  { %v3401_v42 = vpop.eup %3400 }
 0xf52   :  { %1312 = vrot.lane.b32.xlu1 %v3401_v42, %s3557_s0 }
 0xf53   :  { %v3403_v53 = vpop.eup %3402 }
 0xf54   :  { %v1289_v4 = vadd.f32 1.0, %v3403_v53 }
 0xf56   :  { %3404 = vrcp.f32 %v1289_v4  ;;  %v1301_v16 = vand.u32 2147483648, %v1289_v4  ;;  %vm1295_vm9 = vweird.f32 %v1289_v4  ;;  %v1299_v25 = vand.u32 2147483647, %v1289_v4 }
 0xf58   :  { %v1302_v20 = vor.u32 1.1754944e-38, %v1301_v16  ;;  %vm1300_vm11 = vcmp.eq.f32.partialorder %v1299_v25, 8.507059e+37  ;;  %v1585_v16 = vld [vmem:[%s4940_s8 + $0x38] sm:$0xff]  ;;  %v1582_v25 = vld [vmem:[%s4940_s8 + $0x20] sm:$0xff] }
 0xf59   :  { %1663 = vmatpush.msra.mxu3 %v1585_v16 }
 0xf5c   :  { %v3405_v5 = vpop.eup %3404 }
 0xf5d   :  { %v1291_v62 = vmul.f32 %v3405_v5, %v1289_v4  ;;  %vm1296_vm7 = vweird.f32 %v3405_v5  ;;  %v134_v4 = vpop.f32.mrf.mxu0 }
 0xf5e   :  { %vm1297_vm10 = vmor %vm1295_vm9, %vm1296_vm7 }
 0xf5f   :  { %v1292_v52 = vsub.f32 1.0, %v1291_v62 }
 0xf61   :  { %v1293_v11 = vmul.f32 %v3405_v5, %v1292_v52 }
 0xf63   :  { %v1294_v2 = vadd.f32 %v3405_v5, %v1293_v11 }
 0xf65   :  { %v1298_v28 = vsel %vm1297_vm10, %v3405_v5, %v1294_v2  ;;  %v135_v5 = vadd.f32 %v134_v4, %v3829_v50  ;;  %v1584_v2 = vld [vmem:[%s4940_s8 + $0x30] sm:$0xff]  ;;  %v1583_v50 = vld [vmem:[%s4940_s8 + $0x28] sm:$0xff] }
 0xf66   :  { %v1303_v17 = vsel %vm1300_vm11, %v1302_v20, %v1298_v28  ;;  %1622 = vmatpush.msra.mxu2 %v1584_v2  ;;  %v1580_v28 = vld [vmem:[%s4940_s8 + $0x10] sm:$0xff]  ;;  %v1581_v20 = vld [vmem:[%s4940_s8 + $0x18] sm:$0xff]  ;;  %1664 = vmatpush.msra.mxu3 %v1583_v50 }
 0xf67   :  { %v1310_v37 = vmul.f32 %v1308_v54, %v1303_v17  ;;  %v4406_v50 = vld [vmem:[%s4943_s11 + $0x10] sm:$0xff] }
 0xf68   :  { %1623 = vmatpush.msra.mxu2 %v1582_v25  ;;  %1665 = vmatpush.msra.mxu3 %v1581_v20  ;;  %v4401_v25 = vld [vmem:[%s4943_s11 + $0x18] sm:$0xff]  ;;  %v4421_v20 = vld [vmem:[%s4943_s11] sm:$0xff] }
 0xf69   :  { %2372 = vmatpush.msra.mxu1 %v4401_v25 }
 0xf6a   :  { %1624 = vmatpush.msra.mxu2 %v1580_v28  ;;  %v4414_v28 = vld [vmem:[%s4943_s11 + $0x8] sm:$0xff] }
 0xf6b   :  { %2373 = vmatpush.msra.mxu1 %v4406_v50 }
 0xf6d   :  { %2374 = vmatpush.msra.mxu1 %v4414_v28 }
 0xf6f   :  { %2375 = vmatpush.msra.mxu1 %v4421_v20 }
 0xf71   :  { %2700 = vmatpush.msrb.mxu1 %v4401_v25 }
 0xf73   :  { %2701 = vmatpush.msrb.mxu1 %v4406_v50 }
 0xf75   :  { %2702 = vmatpush.msrb.mxu1 %v4414_v28 }
 0xf77   :  { %2703 = vmatpush.msrb.mxu1 %v4421_v20 }
 0xf8b   :  { %v1385_v58 = vpop.permute.xlu2 %1384 }
 0xf8c   :  { %v1387_v61 = vmul.f32 %v1385_v58, %v4240_v57 }
 0xf8e   :  { %v1390_v1 = vadd.f32 %v1389_v60, %v1387_v61  ;;  %1399 = vst.msk [vmem:[#allocation4 + $0x8] sm:$0xff] %vm201_vm8, %v1387_v61 }
 0xf90   :  { %3224 = vmatmul.msk.f32.vlgmr.msrb.gmra.mxu3 %vm201_vm8, %v1390_v1 }
 0xf93   :  { %v1393_v14 = vpop.permute.xlu2 %1392 }
 0xf94   :  { %v1395_v8 = vmul.f32 %v1393_v14, %v4240_v57  ;;  %v1575_v14 = vld [vmem:[#allocation4 + $0x28] sm:$0xff] }
 0xf96   :  { %v1397_v19 = vadd.f32 %v1396_v35, %v1395_v8 }
 0xfc4   :  { %v1313_v21 = vpop.permute.xlu1 %1312 }
 0xfc5   :  { %v1315_v22 = vmul.f32 %v1313_v21, %v1303_v17  ;;  %v1579_v21 = vld [vmem:[%s4940_s8 + $0x8] sm:$0xff] }
 0xfc6   :  { %1666 = vmatpush.msra.mxu3 %v1579_v21 }
 0xfc7   :  { %1317 = vrot.lane.b32.xlu1 %v1315_v22, %s3558_s4  ;;  %v4311_v22 = vld [vmem:[%s4939_s1] sm:$0xff] }
 0xfc8   :  { %1881 = vmatpush.msrb.mxu3 %v4401_v25 }
 0xfca   :  { %1882 = vmatpush.msrb.mxu3 %v4406_v50 }
 0xfcc   :  { %1883 = vmatpush.msrb.mxu3 %v4414_v28 }
 0xfce   :  { %1884 = vmatpush.msrb.mxu3 %v4421_v20 }
0x1013   :  { %v1456_v30 = vpop.f32.mrf.mxu3 }
0x1014   :  { %v1459_v31 = vadd.f32 %v1456_v30, %v3832_v56  ;;  %v1571_v30 = vld [vmem:[#allocation4 + $0x8] sm:$0xff] }
0x1016   :  { %v3226_v47 = vmul.f32 -1.442695, %v1459_v31 }
0x1039   :  { %v1318_v26 = vpop.permute.xlu1 %1317 }
0x103a   :  { %v1320_v27 = vadd.f32 %v1318_v26, %v1310_v37 }
0x103c   :  { %3406 = vtanh.f32 %v1320_v27 }
0x103d   :  { %3408 = vtanh.f32 %v1459_v31 }
0x103e   :  { %3410 = vpow2.f32 %v3226_v47  ;;  %v1573_v47 = vld [vmem:[#allocation4 + $0x18] sm:$0xff] }
0x1042   :  { %v3407_v59 = vpop.eup %3406 }
0x1043   :  { %1323 = vrot.lane.b32.xlu0 %v3407_v59, %s3557_s0  ;;  %v3409_v13 = vpop.eup %3408 }
0x1044   :  { %v3411_v34 = vpop.eup %3410 }
0x1045   :  { %v1509_v0 = vadd.f32 1.0, %v3411_v34 }
0x1047   :  { %3412 = vrcp.f32 %v1509_v0  ;;  %v1521_v32 = vand.u32 2147483648, %v1509_v0  ;;  %vm1515_vm13 = vweird.f32 %v1509_v0  ;;  %v1519_v45 = vand.u32 2147483647, %v1509_v0 }
0x1049   :  { %v1522_v7 = vor.u32 1.1754944e-38, %v1521_v32  ;;  %vm1520_vm15 = vcmp.eq.f32.partialorder %v1519_v45, 8.507059e+37 }
0x104b   :  { %1532 = vrot.lane.b32.xlu0 %v3409_v13, %s3557_s0  ;;  %v1572_v13 = vld [vmem:[#allocation4 + $0x10] sm:$0xff] }
0x104d   :  { %v3413_v36 = vpop.eup %3412 }
0x104e   :  { %v1511_v63 = vmul.f32 %v3413_v36, %v1509_v0  ;;  %vm1516_vm12 = vweird.f32 %v3413_v36  ;;  %v4326_v0 = vld [vmem:[%s4941_s10 + $0x18] sm:$0xff] }
0x104f   :  { %vm1517_vm14 = vmor %vm1515_vm13, %vm1516_vm12  ;;  %2347 = vmatpush.msra.mxu0 %v4326_v0 }
0x1050   :  { %v1512_v15 = vsub.f32 1.0, %v1511_v63  ;;  %v4338_v63 = vld [vmem:[%s4941_s10 + $0x8] sm:$0xff] }
0x1052   :  { %v1513_v18 = vmul.f32 %v3413_v36, %v1512_v15 }
0x1053   :  { %1336 = vrot.lane.b32.xlu0 %v1320_v27, %s3559_s3 }
0x1054   :  { %v1514_v41 = vadd.f32 %v3413_v36, %v1513_v18  ;;  %v4345_v18 = vld [vmem:[%s4941_s10] sm:$0xff] }
0x1056   :  { %v1518_v9 = vsel %vm1517_vm14, %v3413_v36, %v1514_v41  ;;  %v4331_v36 = vld [vmem:[%s4941_s10 + $0x10] sm:$0xff] }
0x1057   :  { %v1523_v12 = vsel %vm1520_vm15, %v1522_v7, %v1518_v9  ;;  %2348 = vmatpush.msra.mxu0 %v4331_v36 }
0x1059   :  { %2349 = vmatpush.msra.mxu0 %v4338_v63 }
0x105b   :  { %2350 = vmatpush.msra.mxu0 %v4345_v18 }
0x105d   :  { %2675 = vmatpush.msrb.mxu0 %v4326_v0 }
0x105f   :  { %2676 = vmatpush.msrb.mxu0 %v4331_v36 }
0x1061   :  { %2677 = vmatpush.msrb.mxu0 %v4338_v63 }
0x1063   :  { %2678 = vmatpush.msrb.mxu0 %v4345_v18 }
0x10b5   :  { %v1324_v46 = vpop.permute.xlu0 %1323 }
0x10b6   :  { %v1326_v56 = vmul.f32 %v1324_v46, %v1303_v17  ;;  %v1578_v17 = vld [vmem:[%s4940_s8] sm:$0xff] }
0x10b7   :  { %1625 = vmatpush.msra.mxu2 %v1578_v17  ;;  %v1574_v46 = vld [vmem:[#allocation4 + $0x20] sm:$0xff] }
0x10b8   :  { %1328 = vrot.lane.b32.xlu1 %v1326_v56, %s3558_s4 }
0x10bd   :  { %v1533_v33 = vpop.permute.xlu0 %1532 }
0x10be   :  { %v1535_v29 = vmul.f32 %v1533_v33, %v1523_v12 }
0x10c0   :  { %1527 = vrot.lane.b32.xlu1 %v1397_v19, %s3558_s4  ;;  %1537 = vrot.lane.b32.xlu2 %v1535_v29, %s3558_s4  ;;  %v1576_v19 = vld [vmem:[#allocation4 + $0x30] sm:$0xff]  ;;  %v1577_v29 = vld [vmem:[#allocation4 + $0x38] sm:$0xff] }
0x10c5   :  { %v1337_v43 = vpop.permute.xlu0 %1336 }
0x10c6   :  { %v1339_v44 = vmul.f32 %v1337_v43, %v4262_v51 }
0x10c8   :  { %v1341_v10 = vadd.f32 %v1340_v38, %v1339_v44 }
0x10ca   :  { %1481 = vrot.lane.b32.xlu0 %v1341_v10, %s3558_s4 }
0x111a   :  { %v1538_v61 = vpop.permute.xlu2 %1537 }
0x112a   :  { %v1329_v39 = vpop.permute.xlu1 %1328 }
0x112b   :  { %v1331_v6 = vmul.f32 %v1329_v39, %v4262_v51 }
0x112d   :  { %v1334_v42 = vadd.f32 %v1333_v40, %v1331_v6  ;;  %1398 = vst.msk [vmem:[#allocation3 + $0x30] sm:$0xff] %vm201_vm8, %v1331_v6 }
0x112f   :  { %3223 = vmatmul.msk.f32.vlgmr.msrb.gmra.mxu2 %vm201_vm8, %v1334_v42 }
0x1130   :  { %1855 = vmatpush.msrb.mxu2 %v4326_v0 }
0x1132   :  { %v1528_v58 = vpop.permute.xlu1 %1527  ;;  %1856 = vmatpush.msrb.mxu2 %v4331_v36 }
0x1133   :  { %v1530_v60 = vmul.f32 %v1528_v58, %v1523_v12 }
0x1134   :  { %v1560_v1 = vld [vmem:[#allocation3 + $0x30] sm:$0xff]  ;;  %1857 = vmatpush.msrb.mxu2 %v4338_v63 }
0x1135   :  { %v1540_v3 = vadd.f32 %v1538_v61, %v1530_v60  ;;  %3249 = vmatmul.msk.f32.gmra.mxu0 %vm201_vm8, %v1560_v1  ;;  %3257 = vmatmul.msk.f32.gmra.mxu1 %vm201_vm8, %v1560_v1 }
0x1136   :  { %1858 = vmatpush.msrb.mxu2 %v4345_v18 }
0x1137   :  { %3414 = vtanh.f32 %v1540_v3 }
0x113c   :  { %v1482_v39 = vpop.permute.xlu0 %1481 }
0x113d   :  { %v3415_v48 = vpop.eup %3414 }
0x113e   :  { %1543 = vrot.lane.b32.xlu2 %v3415_v48, %s3557_s0  ;;  %v4391_v48 = vld [vmem:[%s4942_s9] sm:$0x3] }
0x113f   :  { %v4394_v4 = vperm.slane %v4391_v48, 0 }
0x1198   :  { %v1544_v49 = vpop.permute.xlu2 %1543 }
0x1199   :  { %v1546_v53 = vmul.f32 %v1544_v49, %v1523_v12  ;;  %v1733_v49 = vpop.f32.mrf.mxu0 }
0x119b   :  { %1548 = vrot.lane.b32.xlu2 %v1546_v53, %s3558_s4 }
0x11b2   :  { %v1427_v62 = vpop.f32.mrf.mxu2 }
0x11b3   :  { %v1430_v52 = vadd.f32 %v1427_v62, %v135_v5 }
0x11b5   :  { %3416 = vtanh.f32 %v1430_v52  ;;  %v3225_v27 = vmul.f32 -1.442695, %v1430_v52 }
0x11b7   :  { %3418 = vpow2.f32 %v3225_v27  ;;  %v4453_v27 = vpop.f32.mrf.mxu1 }
0x11bb   :  { %v3417_v11 = vpop.eup %3416 }
0x11bc   :  { %1486 = vrot.lane.b32.xlu1 %v3417_v11, %s3557_s0 }
0x11bd   :  { %v3419_v31 = vpop.eup %3418 }
0x11be   :  { %v1463_v59 = vadd.f32 1.0, %v3419_v31 }
0x11bf   :  { %v4457_v31 = vpop.f32.mrf.mxu1 }
0x11c0   :  { %3420 = vrcp.f32 %v1463_v59  ;;  %v1475_v45 = vand.u32 2147483648, %v1463_v59  ;;  %vm1469_vm1 = vweird.f32 %v1463_v59  ;;  %v1473_v8 = vand.u32 2147483647, %v1463_v59 }
0x11c2   :  { %v1476_v7 = vor.u32 1.1754944e-38, %v1475_v45  ;;  %vm1474_vm3 = vcmp.eq.f32.partialorder %v1473_v8, 8.507059e+37 }
0x11c6   :  { %v3421_v34 = vpop.eup %3420 }
0x11c7   :  { %v1465_v15 = vmul.f32 %v3421_v34, %v1463_v59  ;;  %vm1470_vm0 = vweird.f32 %v3421_v34 }
0x11c8   :  { %vm1471_vm2 = vmor %vm1469_vm1, %vm1470_vm0 }
0x11c9   :  { %v1466_v56 = vsub.f32 1.0, %v1465_v15 }
0x11cb   :  { %v1467_v41 = vmul.f32 %v3421_v34, %v1466_v56 }
0x11cd   :  { %v1468_v32 = vadd.f32 %v3421_v34, %v1467_v41 }
0x11cf   :  { %v1472_v9 = vsel %vm1471_vm2, %v3421_v34, %v1468_v32 }
0x11d0   :  { %v1477_v35 = vsel %vm1474_vm3, %v1476_v7, %v1472_v9 }
0x11d1   :  { %v1484_v40 = vmul.f32 %v1482_v39, %v1477_v35 }
0x11f5   :  { %v1549_v54 = vpop.permute.xlu2 %1548 }
0x11f6   :  { %v1551_v37 = vmul.f32 %v1549_v54, %v4311_v22 }
0x11f8   :  { %1553 = vst.msk [vmem:[#allocation4] sm:$0xff] %vm201_vm8, %v1551_v37 }
0x11ff   :  { %v1570_v26 = vld [vmem:[#allocation4] sm:$0xff] }
0x1200   :  { %3227 = vmatmul.msk.f32.vlgmr.msra.gmra.mxu2 %vm201_vm8, %v1570_v26  ;;  %3235 = vmatmul.msk.f32.vlgmr.msra.gmra.mxu3 %vm201_vm8, %v1570_v26 }
0x1201   :  { %2013 = vmatpush.msra.mxu2 %v4326_v0  ;;  %2038 = vmatpush.msra.mxu3 %v4401_v25 }
0x1203   :  { %2014 = vmatpush.msra.mxu2 %v4331_v36  ;;  %2039 = vmatpush.msra.mxu3 %v4406_v50 }
0x1205   :  { %2015 = vmatpush.msra.mxu2 %v4338_v63  ;;  %2040 = vmatpush.msra.mxu3 %v4414_v28 }
0x1207   :  { %2016 = vmatpush.msra.mxu2 %v4345_v18  ;;  %2041 = vmatpush.msra.mxu3 %v4421_v20 }
0x1208   :  { %3228 = vmatmul.msk.f32.gmra.mxu2 %vm201_vm8, %v1571_v30  ;;  %3236 = vmatmul.msk.f32.gmra.mxu3 %vm201_vm8, %v1571_v30 }
0x1210   :  { %3229 = vmatmul.msk.f32.gmra.mxu2 %vm201_vm8, %v1572_v13  ;;  %3237 = vmatmul.msk.f32.gmra.mxu3 %vm201_vm8, %v1572_v13  ;;  %v4461_v13 = vpop.f32.mrf.mxu1 }
0x1218   :  { %3230 = vmatmul.msk.f32.gmra.mxu2 %vm201_vm8, %v1573_v47  ;;  %3238 = vmatmul.msk.f32.gmra.mxu3 %vm201_vm8, %v1573_v47  ;;  %v4465_v34 = vpop.f32.mrf.mxu1 }
0x1220   :  { %3231 = vmatmul.msk.f32.gmra.mxu2 %vm201_vm8, %v1574_v46  ;;  %3239 = vmatmul.msk.f32.gmra.mxu3 %vm201_vm8, %v1574_v46  ;;  %v4469_v56 = vpop.f32.mrf.mxu1 }
0x1228   :  { %3232 = vmatmul.msk.f32.gmra.mxu2 %vm201_vm8, %v1575_v14  ;;  %3240 = vmatmul.msk.f32.gmra.mxu3 %vm201_vm8, %v1575_v14  ;;  %v4471_v14 = vpop.f32.mrf.mxu1 }
0x122e   :  { %v1487_v12 = vpop.permute.xlu1 %1486 }
0x122f   :  { %v1489_v33 = vmul.f32 %v1487_v12, %v1477_v35 }
0x1230   :  { %3233 = vmatmul.msk.f32.gmra.mxu2 %vm201_vm8, %v1576_v19  ;;  %3241 = vmatmul.msk.f32.gmra.mxu3 %vm201_vm8, %v1576_v19  ;;  %v4475_v8 = vpop.f32.mrf.mxu1  ;;  %v4478_v19 = vperm.slane %v4391_v48, 1 }
0x1231   :  { %1491 = vrot.lane.b32.xlu1 %v1489_v33, %s3558_s4 }
0x1238   :  { %3234 = vmatmul.msk.f32.gmra.mxu2 %vm201_vm8, %v1577_v29  ;;  %3242 = vmatmul.msk.f32.gmra.mxu3 %vm201_vm8, %v1577_v29 }
0x1240   :  { %1859 = vmatmul.f32.vlgmr.msrb.gmra.mxu2 %v3556_v24  ;;  %1885 = vmatmul.f32.vlgmr.msrb.gmra.mxu3 %v3556_v24  ;;  %v4443_v24 = vld [vmem:[%s4939_s1 + $0x38] sm:$0xff] }
0x1241   :  { %2180 = vmatpush.msrb.mxu2 %v4326_v0  ;;  %2205 = vmatpush.msrb.mxu3 %v4401_v25 }
0x1243   :  { %2181 = vmatpush.msrb.mxu2 %v4331_v36  ;;  %2206 = vmatpush.msrb.mxu3 %v4406_v50 }
0x1245   :  { %2182 = vmatpush.msrb.mxu2 %v4338_v63  ;;  %2207 = vmatpush.msrb.mxu3 %v4414_v28 }
0x1247   :  { %2183 = vmatpush.msrb.mxu2 %v4345_v18  ;;  %2208 = vmatpush.msrb.mxu3 %v4421_v20 }
0x1283   :  { %v1627_v43 = vpop.f32.mrf.mxu2  ;;  %v4449_v37 = vpop.f32.mrf.mxu3 }
0x1284   :  { %v1734_v53 = vadd.f32 %v1733_v49, %v1627_v43 }
0x1286   :  { %v1804_v5 = vadd.f32 %v4394_v4, %v1734_v53 }
0x128b   :  { %v4373_v44 = vpop.f32.mrf.mxu2  ;;  %v4451_v26 = vpop.f32.mrf.mxu3 }
0x1293   :  { %v4375_v38 = vpop.f32.mrf.mxu2  ;;  %v4455_v30 = vpop.f32.mrf.mxu3 }
0x129b   :  { %v4377_v10 = vpop.f32.mrf.mxu2  ;;  %v4459_v59 = vpop.f32.mrf.mxu3 }
0x12a3   :  { %v1492_v6 = vpop.permute.xlu1 %1491  ;;  %v4379_v42 = vpop.f32.mrf.mxu2 }
0x12a4   :  { %v1494_v58 = vadd.f32 %v1492_v6, %v1484_v40  ;;  %v4463_v47 = vpop.f32.mrf.mxu3 }
0x12a6   :  { %3422 = vtanh.f32 %v1494_v58 }
0x12ab   :  { %v4381_v60 = vpop.f32.mrf.mxu2 }
0x12ac   :  { %v3423_v61 = vpop.eup %3422  ;;  %v4467_v15 = vpop.f32.mrf.mxu3 }
0x12ad   :  { %1497 = vrot.lane.b32.xlu0 %v3423_v61, %s3557_s0 }
0x12b3   :  { %v4384_v1 = vpop.f32.mrf.mxu2 }
0x12b4   :  { %v4473_v32 = vpop.f32.mrf.mxu3 }
0x12bb   :  { %v4386_v3 = vpop.f32.mrf.mxu2 }
0x12bc   :  { %v1689_v9 = vpop.f32.mrf.mxu3 }
0x12c3   :  { %v1860_v62 = vpop.f32.mrf.mxu2 }
0x12c4   :  { %v1863_v52 = vadd.f32 %v1860_v62, %v1804_v5  ;;  %v1886_v29 = vpop.f32.mrf.mxu3 }
0x12c6   :  { %3424 = vtanh.f32 %v1863_v52  ;;  %v3259_v46 = vmul.f32 -1.442695, %v1863_v52 }
0x12c8   :  { %3426 = vpow2.f32 %v3259_v46 }
0x12cc   :  { %v3425_v11 = vpop.eup %3424 }
0x12cd   :  { %1912 = vrot.lane.b32.xlu0 %v3425_v11, %s3557_s0 }
0x12ce   :  { %v3427_v41 = vpop.eup %3426 }
0x12cf   :  { %v1893_v45 = vadd.f32 1.0, %v3427_v41 }
0x12d1   :  { %3428 = vrcp.f32 %v1893_v45  ;;  %v1905_v49 = vand.u32 2147483648, %v1893_v45  ;;  %vm1899_vm5 = vweird.f32 %v1893_v45  ;;  %v1903_v53 = vand.u32 2147483647, %v1893_v45 }
0x12d3   :  { %v1906_v62 = vor.u32 1.1754944e-38, %v1905_v49  ;;  %vm1904_vm7 = vcmp.eq.f32.partialorder %v1903_v53, 8.507059e+37 }
0x12d7   :  { %v3429_v7 = vpop.eup %3428 }
0x12d8   :  { %vm1900_vm4 = vweird.f32 %v3429_v7 }
0x12d9   :  { %vm1901_vm6 = vmor %vm1899_vm5, %vm1900_vm4 }
0x131f   :  { %v1498_v2 = vpop.permute.xlu0 %1497 }
0x1320   :  { %v1500_v16 = vmul.f32 %v1498_v2, %v1477_v35  ;;  %v1895_v35 = vmul.f32 %v3429_v7, %v1893_v45 }
0x1322   :  { %1502 = vrot.lane.b32.xlu1 %v1500_v16, %s3558_s4  ;;  %v1896_v39 = vsub.f32 1.0, %v1895_v35 }
0x1324   :  { %v1897_v6 = vmul.f32 %v3429_v7, %v1896_v39 }
0x1326   :  { %v1898_v58 = vadd.f32 %v3429_v7, %v1897_v6 }
0x1328   :  { %v1902_v5 = vsel %vm1901_vm6, %v3429_v7, %v1898_v58 }
0x1329   :  { %v1907_v52 = vsel %vm1904_vm7, %v1906_v62, %v1902_v5 }
0x132a   :  { %v1910_v39 = vmul.f32 0.0, %v1907_v52 }
0x133f   :  { %v1913_v48 = vpop.permute.xlu0 %1912 }
0x1340   :  { %v1915_v11 = vmul.f32 %v1913_v48, %v1907_v52 }
0x1394   :  { %v1503_v17 = vpop.permute.xlu1 %1502 }
0x1395   :  { %v1505_v21 = vmul.f32 %v1503_v17, %v4443_v24 }
0x1397   :  { %1552 = vst.msk [vmem:[#allocation3 + $0x38] sm:$0xff] %vm201_vm8, %v1505_v21 }
0x139e   :  { %v1561_v54 = vld [vmem:[#allocation3 + $0x38] sm:$0xff] }
0x139f   :  { %3250 = vmatmul.msk.f32.gmra.mxu0 %vm201_vm8, %v1561_v54  ;;  %3258 = vmatmul.msk.f32.gmra.mxu1 %vm201_vm8, %v1561_v54 }
0x141c   :  { %v1795_v12 = vpop.f32.mrf.mxu1 }
0x141d   :  { %v1796_v33 = vadd.f32 %v1795_v12, %v1689_v9 }
0x141f   :  { %v1819_v43 = vadd.f32 %v4478_v19, %v1796_v33 }
0x1421   :  { %v1889_v40 = vadd.f32 %v1886_v29, %v1819_v43 }
0x1423   :  { %3430 = vtanh.f32 %v1889_v40  ;;  %v3260_v2 = vmul.f32 -1.442695, %v1889_v40 }
0x1425   :  { %3432 = vpow2.f32 %v3260_v2 }
0x1429   :  { %v3431_v61 = vpop.eup %3430 }
0x142a   :  { %1963 = vrot.lane.b32.xlu2 %v3431_v61, %s3557_s0 }
0x142b   :  { %v3433_v16 = vpop.eup %3432 }
0x142c   :  { %v1944_v17 = vadd.f32 1.0, %v3433_v16  ;;  %v1932_v16 = vsub.f32 1.0, %v4311_v22 }
0x142e   :  { %3434 = vrcp.f32 %v1944_v17  ;;  %v1956_v9 = vand.u32 2147483648, %v1944_v17  ;;  %vm1950_vm10 = vweird.f32 %v1944_v17  ;;  %v1954_v7 = vand.u32 2147483647, %v1944_v17 }
0x1430   :  { %v1957_v12 = vor.u32 1.1754944e-38, %v1956_v9  ;;  %vm1955_vm12 = vcmp.eq.f32.partialorder %v1954_v7, 8.507059e+37 }
0x1432   :  { %1917 = vrot.lane.b32.xlu2 %v1915_v11, %s3558_s4 }
0x1434   :  { %v3435_v21 = vpop.eup %3434 }
0x1435   :  { %v1946_v54 = vmul.f32 %v3435_v21, %v1944_v17  ;;  %vm1951_vm9 = vweird.f32 %v3435_v21  ;;  %v1933_v17 = vmul.f32 0.0, %v1932_v16 }
0x1436   :  { %vm1952_vm11 = vmor %vm1950_vm10, %vm1951_vm9 }
0x1437   :  { %v1947_v46 = vsub.f32 1.0, %v1946_v54  ;;  %v1983_v54 = vsub.f32 1.0, %v4443_v24 }
0x1439   :  { %v1948_v41 = vmul.f32 %v3435_v21, %v1947_v46 }
0x143b   :  { %v1949_v45 = vadd.f32 %v3435_v21, %v1948_v41 }
0x143d   :  { %v1953_v35 = vsel %vm1952_vm11, %v3435_v21, %v1949_v45 }
0x143e   :  { %v1958_v29 = vsel %vm1955_vm12, %v1957_v12, %v1953_v35 }
0x143f   :  { %v1961_v61 = vmul.f32 0.0, %v1958_v29 }
0x1484   :  { %v1964_v33 = vpop.permute.xlu2 %1963 }
0x1485   :  { %v1966_v43 = vmul.f32 %v1964_v33, %v1958_v29 }
0x1487   :  { %1968 = vrot.lane.b32.xlu1 %v1966_v43, %s3558_s4 }
0x148c   :  { %v1918_v40 = vpop.permute.xlu2 %1917 }
0x148d   :  { %v1920_v6 = vadd.f32 %v1918_v40, %v1910_v39 }
0x148f   :  { %3436 = vtanh.f32 %v1920_v6 }
0x1495   :  { %v3437_v58 = vpop.eup %3436 }
0x1496   :  { %1923 = vrot.lane.b32.xlu1 %v3437_v58, %s3557_s0 }
0x14f9   :  { %v1969_v49 = vpop.permute.xlu1 %1968 }
0x14fa   :  { %v1971_v53 = vadd.f32 %v1969_v49, %v1961_v61  ;;  %v1793_v49 = vadd.f32 %v4475_v8, %v4473_v32 }
0x14fc   :  { %3438 = vtanh.f32 %v1971_v53  ;;  %1987 = vrot.lane.b32.xlu1 %v1971_v53, %s3559_s3  ;;  %v1817_v53 = vadd.f32 %v4478_v19, %v1793_v49 }
0x1502   :  { %v3439_v5 = vpop.eup %3438 }
0x1503   :  { %1974 = vrot.lane.b32.xlu0 %v3439_v5, %s3557_s0 }
0x1508   :  { %v1924_v62 = vpop.permute.xlu1 %1923 }
0x1509   :  { %v1926_v48 = vmul.f32 %v1924_v62, %v1907_v52  ;;  %v1984_v52 = vmul.f32 0.0, %v1983_v54 }
0x150b   :  { %1928 = vrot.lane.b32.xlu0 %v1926_v48, %s3558_s4 }
0x156e   :  { %v1988_v41 = vpop.permute.xlu1 %1987 }
0x156f   :  { %v1990_v9 = vmul.f32 %v1988_v41, %v4443_v24 }
0x1571   :  { %v4502_v7 = vadd.f32 %v1990_v9, %v1984_v52 }
0x1575   :  { %v1975_v11 = vpop.permute.xlu0 %1974 }
0x1576   :  { %v1977_v2 = vmul.f32 %v1975_v11, %v1958_v29  ;;  %v1736_v29 = vpop.f32.mrf.mxu0 }
0x1577   :  { %v1737_v43 = vadd.f32 %v1736_v29, %v4373_v44 }
0x1578   :  { %1979 = vrot.lane.b32.xlu2 %v1977_v2, %s3558_s4 }
0x1579   :  { %v1806_v39 = vadd.f32 %v4394_v4, %v1737_v43 }
0x157d   :  { %v1929_v21 = vpop.permute.xlu0 %1928 }
0x157e   :  { %v1931_v46 = vmul.f32 %v1929_v21, %v4311_v22 }
0x1580   :  { %v4492_v45 = vadd.f32 %v1933_v17, %v1931_v46  ;;  %1936 = vrot.lane.b32.xlu2 %v1920_v6, %s3559_s3 }
0x1582   :  { %3261 = vmatmul.msk.f32.vlgmr.msra.gmra.mxu2 %vm201_vm8, %v4492_v45 }
0x1583   :  { %2512 = vmatpush.msra.mxu2 %v4326_v0 }
0x1585   :  { %2513 = vmatpush.msra.mxu2 %v4331_v36 }
0x1587   :  { %2514 = vmatpush.msra.mxu2 %v4338_v63 }
0x1588   :  { %2124 = vrot.lane.b32.xlu2 %v4502_v7, %s3558_s4 }
0x1589   :  { %2515 = vmatpush.msra.mxu2 %v4345_v18 }
0x15d2   :  { %v1980_v35 = vpop.permute.xlu2 %1979 }
0x15d3   :  { %v4509_v12 = vmul.f32 %v1980_v35, %v4443_v24  ;;  %v3136_v24 = vld [vmem:[%s4946_s13] sm:$0xff] }
0x15d5   :  { %v4512_v33 = vadd.f32 %v1984_v52, %v4509_v12 }
0x15d7   :  { %3262 = vmatmul.msk.f32.vlgmr.msra.gmra.mxu3 %vm201_vm8, %v4512_v33 }
0x15d8   :  { %2537 = vmatpush.msra.mxu3 %v4401_v25 }
0x15da   :  { %2538 = vmatpush.msra.mxu3 %v4406_v50  ;;  %v1937_v2 = vpop.permute.xlu2 %1936 }
0x15db   :  { %v1939_v16 = vmul.f32 %v1937_v2, %v4311_v22 }
0x15dc   :  { %2539 = vmatpush.msra.mxu3 %v4414_v28 }
0x15dd   :  { %v4528_v21 = vadd.f32 %v1939_v16, %v1933_v17 }
0x15de   :  { %2540 = vmatpush.msra.mxu3 %v4421_v20 }
0x1605   :  { %v2018_v40 = vpop.f32.mrf.mxu2 }
0x1606   :  { %v2021_v6 = vadd.f32 %v2018_v40, %v1806_v39 }
0x1608   :  { %3440 = vtanh.f32 %v2021_v6  ;;  %v3263_v61 = vmul.f32 -1.442695, %v2021_v6 }
0x160a   :  { %3442 = vpow2.f32 %v3263_v61 }
0x160e   :  { %v3441_v58 = vpop.eup %3440 }
0x160f   :  { %2073 = vrot.lane.b32.xlu1 %v3441_v58, %s3557_s0 }
0x1610   :  { %v3443_v48 = vpop.eup %3442 }
0x1611   :  { %v2050_v44 = vadd.f32 1.0, %v3443_v48 }
0x1613   :  { %v2062_v9 = vand.u32 2147483648, %v2050_v44  ;;  %vm2056_vm14 = vweird.f32 %v2050_v44  ;;  %v2060_v35 = vand.u32 2147483647, %v2050_v44 }
0x1615   :  { %v2063_v43 = vor.u32 1.1754944e-38, %v2062_v9  ;;  %vm2061_vm0 = vcmp.eq.f32.partialorder %v2060_v35, 8.507059e+37 }
0x165a   :  { %v2043_v5 = vpop.f32.mrf.mxu3 }
0x165b   :  { %v2046_v62 = vadd.f32 %v2043_v5, %v1817_v53 }
0x165d   :  { %3444 = vtanh.f32 %v2046_v62  ;;  %v3264_v40 = vmul.f32 -1.442695, %v2046_v62 }
0x165e   :  { %3446 = vrcp.f32 %v2050_v44 }
0x165f   :  { %3448 = vpow2.f32 %v3264_v40 }
0x1663   :  { %v3445_v11 = vpop.eup %3444 }
0x1664   :  { %2129 = vrot.lane.b32.xlu0 %v3445_v11, %s3557_s0  ;;  %v3447_v46 = vpop.eup %3446 }
0x1665   :  { %v2052_v32 = vmul.f32 %v3447_v46, %v2050_v44  ;;  %vm2057_vm13 = vweird.f32 %v3447_v46  ;;  %v3449_v6 = vpop.eup %3448 }
0x1666   :  { %vm2058_vm15 = vmor %vm2056_vm14, %vm2057_vm13  ;;  %v2106_v58 = vadd.f32 1.0, %v3449_v6 }
0x1667   :  { %v2053_v8 = vsub.f32 1.0, %v2052_v32 }
0x1668   :  { %3450 = vrcp.f32 %v2106_v58  ;;  %v2118_v44 = vand.u32 2147483648, %v2106_v58  ;;  %vm2112_vm2 = vweird.f32 %v2106_v58  ;;  %v2116_v11 = vand.u32 2147483647, %v2106_v58 }
0x1669   :  { %v2054_v41 = vmul.f32 %v3447_v46, %v2053_v8  ;;  %v2125_v8 = vpop.permute.xlu2 %2124 }
0x166a   :  { %v2119_v16 = vor.u32 1.1754944e-38, %v2118_v44  ;;  %vm2117_vm4 = vcmp.eq.f32.partialorder %v2116_v11, 8.507059e+37 }
0x166b   :  { %v2055_v52 = vadd.f32 %v3447_v46, %v2054_v41 }
0x166c   :  { %2068 = vrot.lane.b32.xlu0 %v4528_v21, %s3558_s4 }
0x166d   :  { %v2059_v29 = vsel %vm2058_vm15, %v3447_v46, %v2055_v52 }
0x166e   :  { %v2064_v22 = vsel %vm2061_vm0, %v2063_v43, %v2059_v29  ;;  %v3451_v61 = vpop.eup %3450 }
0x166f   :  { %v2108_v49 = vmul.f32 %v3451_v61, %v2106_v58  ;;  %vm2113_vm1 = vweird.f32 %v3451_v61 }
0x1670   :  { %vm2114_vm3 = vmor %vm2112_vm2, %vm2113_vm1 }
0x1671   :  { %v2109_v53 = vsub.f32 1.0, %v2108_v49 }
0x1673   :  { %v2110_v5 = vmul.f32 %v3451_v61, %v2109_v53 }
0x1675   :  { %v2111_v48 = vadd.f32 %v3451_v61, %v2110_v5 }
0x1677   :  { %v2115_v2 = vsel %vm2114_vm3, %v3451_v61, %v2111_v48  ;;  %v2094_v48 = vmul.f32 %v4492_v45, %v4243_v23  ;;  %v1992_v45 = vld [vmem:[%s4944_s2 + $0x38] sm:$0xff] }
0x1678   :  { %v2120_v46 = vsel %vm2117_vm4, %v2119_v16, %v2115_v2 }
0x1679   :  { %v2127_v43 = vmul.f32 %v2125_v8, %v2120_v46  ;;  %v1993_v8 = vmul.f32 %v1992_v45, %v4509_v12 }
0x1681   :  { %v2074_v39 = vpop.permute.xlu1 %2073 }
0x1682   :  { %v2076_v17 = vmul.f32 %v2074_v39, %v2064_v22 }
0x1684   :  { %2078 = vrot.lane.b32.xlu2 %v2076_v17, %s3558_s4 }
0x16d6   :  { %v2130_v32 = vpop.permute.xlu0 %2129 }
0x16d7   :  { %v2132_v62 = vmul.f32 %v2130_v32, %v2120_v46  ;;  %v2150_v32 = vmul.f32 %v4512_v33, %v4267_v55  ;;  %v1739_v33 = vpop.f32.mrf.mxu0 }
0x16d9   :  { %2134 = vrot.lane.b32.xlu1 %v2132_v62, %s3558_s4 }
0x16de   :  { %v2069_v41 = vpop.permute.xlu0 %2068  ;;  %v2079_v9 = vpop.permute.xlu2 %2078 }
0x16df   :  { %v2071_v52 = vmul.f32 %v2069_v41, %v2064_v22 }
0x16e1   :  { %v2081_v35 = vadd.f32 %v2079_v9, %v2071_v52 }
0x16e3   :  { %3452 = vtanh.f32 %v2081_v35 }
0x16e9   :  { %v3453_v29 = vpop.eup %3452 }
0x16ea   :  { %2084 = vrot.lane.b32.xlu1 %v3453_v29, %s3557_s0 }
0x174b   :  { %v2135_v39 = vpop.permute.xlu1 %2134 }
0x174c   :  { %v2137_v17 = vadd.f32 %v2135_v39, %v2127_v43  ;;  %v1790_v39 = vadd.f32 %v4471_v14, %v4467_v15 }
0x174e   :  { %3454 = vtanh.f32 %v2137_v17  ;;  %2153 = vrot.lane.b32.xlu1 %v2137_v17, %s3559_s3 }
0x1754   :  { %v3455_v40 = vpop.eup %3454 }
0x1755   :  { %2140 = vrot.lane.b32.xlu0 %v3455_v40, %s3557_s0  ;;  %v1815_v40 = vadd.f32 %v4478_v19, %v1790_v39 }
0x175c   :  { %v2085_v6 = vpop.permute.xlu1 %2084 }
0x175d   :  { %v2087_v58 = vmul.f32 %v2085_v6, %v2064_v22  ;;  %v2157_v22 = vmul.f32 %v4502_v7, %v4267_v55  ;;  %v2159_v7 = vld [vmem:[%s4944_s2 + $0x30] sm:$0xff] }
0x175f   :  { %2089 = vrot.lane.b32.xlu0 %v2087_v58, %s3558_s4 }
0x17c0   :  { %v2154_v53 = vpop.permute.xlu1 %2153 }
0x17c1   :  { %v2156_v11 = vmul.f32 %v2154_v53, %v4262_v51 }
0x17c3   :  { %v4551_v16 = vadd.f32 %v2157_v22, %v2156_v11 }
0x17c7   :  { %v2141_v61 = vpop.permute.xlu0 %2140 }
0x17c8   :  { %v2143_v49 = vmul.f32 %v2141_v61, %v2120_v46 }
0x17ca   :  { %2145 = vrot.lane.b32.xlu2 %v2143_v49, %s3558_s4 }
0x17d1   :  { %v2090_v5 = vpop.permute.xlu0 %2089 }
0x17d2   :  { %v2092_v44 = vmul.f32 %v2090_v5, %v4240_v57  ;;  %2097 = vrot.lane.b32.xlu2 %v2081_v35, %s3559_s3 }
0x17d4   :  { %v4544_v2 = vadd.f32 %v2094_v48, %v2092_v44  ;;  %v2101_v48 = vmul.f32 %v4528_v21, %v4243_v23 }
0x17d6   :  { %3265 = vmatmul.msk.f32.vlgmr.msrb.gmra.mxu2 %vm201_vm8, %v4544_v2 }
0x17d7   :  { %2838 = vmatpush.msrb.mxu2 %v4326_v0 }
0x17d9   :  { %2839 = vmatpush.msrb.mxu2 %v4331_v36 }
0x17da   :  { %2291 = vrot.lane.b32.xlu2 %v4551_v16, %s3558_s4 }
0x17db   :  { %2840 = vmatpush.msrb.mxu2 %v4338_v63 }
0x17dd   :  { %2841 = vmatpush.msrb.mxu2 %v4345_v18 }
0x1824   :  { %v2146_v46 = vpop.permute.xlu2 %2145 }
0x1825   :  { %v2148_v62 = vmul.f32 %v2146_v46, %v4262_v51  ;;  %v1740_v51 = vadd.f32 %v1739_v33, %v4375_v38 }
0x1827   :  { %v4568_v41 = vadd.f32 %v2150_v32, %v2148_v62  ;;  %v2160_v52 = vmul.f32 %v2159_v7, %v2148_v62  ;;  %v1808_v12 = vadd.f32 %v4394_v4, %v1740_v51 }
0x1829   :  { %v4570_v9 = vadd.f32 %v2160_v52, %v1993_v8  ;;  %3266 = vmatmul.msk.f32.vlgmr.msrb.gmra.mxu3 %vm201_vm8, %v4568_v41 }
0x182a   :  { %2863 = vmatpush.msrb.mxu3 %v4401_v25 }
0x182c   :  { %2864 = vmatpush.msrb.mxu3 %v4406_v50  ;;  %v2098_v49 = vpop.permute.xlu2 %2097 }
0x182d   :  { %v2100_v5 = vmul.f32 %v2098_v49, %v4240_v57 }
0x182e   :  { %2865 = vmatpush.msrb.mxu3 %v4414_v28 }
0x182f   :  { %v4588_v15 = vadd.f32 %v2101_v48, %v2100_v5 }
0x1830   :  { %2866 = vmatpush.msrb.mxu3 %v4421_v20 }
0x1859   :  { %v2185_v35 = vpop.f32.mrf.mxu2 }
0x185a   :  { %v2188_v29 = vadd.f32 %v2185_v35, %v1808_v12 }
0x185c   :  { %3456 = vtanh.f32 %v2188_v29  ;;  %v3267_v17 = vmul.f32 -1.442695, %v2188_v29 }
0x185e   :  { %3458 = vpow2.f32 %v3267_v17 }
0x1862   :  { %v3457_v43 = vpop.eup %3456 }
0x1863   :  { %2240 = vrot.lane.b32.xlu1 %v3457_v43, %s3557_s0 }
0x1864   :  { %v3459_v61 = vpop.eup %3458 }
0x1865   :  { %v2217_v53 = vadd.f32 1.0, %v3459_v61 }
0x1867   :  { %v2229_v7 = vand.u32 2147483648, %v2217_v53  ;;  %vm2223_vm6 = vweird.f32 %v2217_v53  ;;  %v2227_v46 = vand.u32 2147483647, %v2217_v53 }
0x1869   :  { %v2230_v32 = vor.u32 1.1754944e-38, %v2229_v7  ;;  %vm2228_vm9 = vcmp.eq.f32.partialorder %v2227_v46, 8.507059e+37 }
0x18ac   :  { %v2210_v6 = vpop.f32.mrf.mxu3 }
0x18ad   :  { %v2213_v58 = vadd.f32 %v2210_v6, %v1815_v40 }
0x18af   :  { %3460 = vtanh.f32 %v2213_v58  ;;  %v3268_v52 = vmul.f32 -1.442695, %v2213_v58 }
0x18b0   :  { %3462 = vrcp.f32 %v2217_v53 }
0x18b1   :  { %3464 = vpow2.f32 %v3268_v52  ;;  %v4602_v52 = vld [vmem:[%s4939_s1 + $0x10] sm:$0xff] }
0x18b5   :  { %v3461_v38 = vpop.eup %3460 }
0x18b6   :  { %2296 = vrot.lane.b32.xlu0 %v3461_v38, %s3557_s0  ;;  %v3463_v14 = vpop.eup %3462 }
0x18b7   :  { %v2219_v44 = vmul.f32 %v3463_v14, %v2217_v53  ;;  %vm2224_vm5 = vweird.f32 %v3463_v14  ;;  %v3465_v33 = vpop.eup %3464  ;;  %v2292_v53 = vpop.permute.xlu2 %2291 }
0x18b8   :  { %vm2225_vm7 = vmor %vm2223_vm6, %vm2224_vm5  ;;  %v2273_v51 = vadd.f32 1.0, %v3465_v33  ;;  %v4605_v33 = vsub.f32 1.0, %v4602_v52 }
0x18b9   :  { %v2220_v11 = vsub.f32 1.0, %v2219_v44 }
0x18ba   :  { %3466 = vrcp.f32 %v2273_v51  ;;  %v2285_v17 = vand.u32 2147483648, %v2273_v51  ;;  %vm2279_vm11 = vweird.f32 %v2273_v51  ;;  %v2283_v40 = vand.u32 2147483647, %v2273_v51 }
0x18bb   :  { %v2221_v22 = vmul.f32 %v3463_v14, %v2220_v11 }
0x18bc   :  { %v2286_v61 = vor.u32 1.1754944e-38, %v2285_v17  ;;  %vm2284_vm13 = vcmp.eq.f32.partialorder %v2283_v40, 8.507059e+37 }
0x18bd   :  { %v2222_v45 = vadd.f32 %v3463_v14, %v2221_v22 }
0x18be   :  { %2235 = vrot.lane.b32.xlu0 %v4588_v15, %s3558_s4 }
0x18bf   :  { %v2226_v57 = vsel %vm2225_vm7, %v3463_v14, %v2222_v45 }
0x18c0   :  { %v2231_v21 = vsel %vm2228_vm9, %v2230_v32, %v2226_v57  ;;  %v3467_v12 = vpop.eup %3466 }
0x18c1   :  { %v2275_v35 = vmul.f32 %v3467_v12, %v2273_v51  ;;  %vm2280_vm10 = vweird.f32 %v3467_v12  ;;  %v4610_v51 = vld [vmem:[%s4939_s1 + $0x28] sm:$0xff] }
0x18c2   :  { %vm2281_vm12 = vmor %vm2279_vm11, %vm2280_vm10 }
0x18c3   :  { %v2276_v29 = vsub.f32 1.0, %v2275_v35  ;;  %v4613_v35 = vsub.f32 1.0, %v4610_v51 }
0x18c5   :  { %v2277_v43 = vmul.f32 %v3467_v12, %v2276_v29  ;;  %v2261_v29 = vmul.f32 %v4605_v33, %v4544_v2  ;;  %v2324_v40 = vmul.f32 %v4613_v35, %v4551_v16  ;;  %v2326_v2 = vld [vmem:[%s4944_s2 + $0x28] sm:$0xff] }
0x18c7   :  { %v2278_v39 = vadd.f32 %v3467_v12, %v2277_v43 }
0x18c9   :  { %v2282_v6 = vsel %vm2281_vm12, %v3467_v12, %v2278_v39 }
0x18ca   :  { %v2287_v38 = vsel %vm2284_vm13, %v2286_v61, %v2282_v6  ;;  %v2317_v61 = vmul.f32 %v4613_v35, %v4568_v41 }
0x18cb   :  { %v2294_v22 = vmul.f32 %v2292_v53, %v2287_v38 }
0x18d5   :  { %v2241_v62 = vpop.permute.xlu1 %2240 }
0x18d6   :  { %v2243_v8 = vmul.f32 %v2241_v62, %v2231_v21 }
0x18d8   :  { %2245 = vrot.lane.b32.xlu2 %v2243_v8, %s3558_s4 }
0x1928   :  { %v2297_v49 = vpop.permute.xlu0 %2296 }
0x1929   :  { %v2299_v58 = vmul.f32 %v2297_v49, %v2287_v38 }
0x192b   :  { %2301 = vrot.lane.b32.xlu1 %v2299_v58, %s3558_s4 }
0x1930   :  { %v2236_v5 = vpop.permute.xlu0 %2235 }
0x1931   :  { %v2238_v48 = vmul.f32 %v2236_v5, %v2231_v21 }
0x1932   :  { %v2246_v14 = vpop.permute.xlu2 %2245 }
0x1933   :  { %v2248_v44 = vadd.f32 %v2246_v14, %v2238_v48 }
0x1935   :  { %3468 = vtanh.f32 %v2248_v44 }
0x193b   :  { %v3469_v11 = vpop.eup %3468 }
0x193c   :  { %2251 = vrot.lane.b32.xlu1 %v3469_v11, %s3557_s0 }
0x199d   :  { %v2302_v45 = vpop.permute.xlu1 %2301 }
0x199e   :  { %v2304_v7 = vadd.f32 %v2302_v45, %v2294_v22 }
0x19a0   :  { %3470 = vtanh.f32 %v2304_v7  ;;  %2320 = vrot.lane.b32.xlu1 %v2304_v7, %s3559_s3 }
0x19a6   :  { %v3471_v46 = vpop.eup %3470 }
0x19a7   :  { %2307 = vrot.lane.b32.xlu0 %v3471_v46, %s3557_s0 }
0x19ae   :  { %v2252_v57 = vpop.permute.xlu1 %2251 }
0x19af   :  { %v2254_v32 = vmul.f32 %v2252_v57, %v2231_v21  ;;  %v2268_v57 = vmul.f32 %v4605_v33, %v4588_v15 }
0x19b1   :  { %2256 = vrot.lane.b32.xlu0 %v2254_v32, %s3558_s4 }
0x1a12   :  { %v2321_v21 = vpop.permute.xlu1 %2320 }
0x1a13   :  { %v2323_v39 = vmul.f32 %v2321_v21, %v4610_v51 }
0x1a15   :  { %v4627_v6 = vadd.f32 %v2324_v40, %v2323_v39 }
0x1a19   :  { %v2308_v62 = vpop.permute.xlu0 %2307 }
0x1a1a   :  { %v2310_v8 = vmul.f32 %v2308_v62, %v2287_v38 }
0x1a1c   :  { %2312 = vrot.lane.b32.xlu2 %v2310_v8, %s3558_s4 }
0x1a23   :  { %v2257_v12 = vpop.permute.xlu0 %2256 }
0x1a24   :  { %v2259_v43 = vmul.f32 %v2257_v12, %v4602_v52  ;;  %2264 = vrot.lane.b32.xlu2 %v2248_v44, %s3559_s3 }
0x1a26   :  { %v4620_v17 = vadd.f32 %v2261_v29, %v2259_v43 }
0x1a28   :  { %3269 = vmatmul.msk.f32.vlgmr.msra.gmra.mxu0 %vm201_vm8, %v4620_v17 }
0x1a29   :  { %3001 = vmatpush.msra.mxu0 %v4326_v0 }
0x1a2b   :  { %3002 = vmatpush.msra.mxu0 %v4331_v36 }
0x1a2c   :  { %2458 = vrot.lane.b32.xlu2 %v4627_v6, %s3558_s4 }
0x1a2d   :  { %3003 = vmatpush.msra.mxu0 %v4338_v63  ;;  %v1742_v63 = vpop.f32.mrf.mxu0 }
0x1a2e   :  { %v1743_v53 = vadd.f32 %v1742_v63, %v4377_v10 }
0x1a2f   :  { %3004 = vmatpush.msra.mxu0 %v4345_v18 }
0x1a30   :  { %v1810_v5 = vadd.f32 %v4394_v4, %v1743_v53 }
0x1a35   :  { %v4651_v18 = vpop.f32.mrf.mxu0 }
0x1a3d   :  { %v4653_v41 = vpop.f32.mrf.mxu0 }
0x1a45   :  { %v4655_v58 = vpop.f32.mrf.mxu0 }
0x1a76   :  { %v2313_v16 = vpop.permute.xlu2 %2312 }
0x1a77   :  { %v2315_v0 = vmul.f32 %v2313_v16, %v4610_v51 }
0x1a79   :  { %v4640_v38 = vadd.f32 %v2317_v61, %v2315_v0  ;;  %v2327_v36 = vmul.f32 %v2326_v2, %v2315_v0 }
0x1a7b   :  { %v4643_v49 = vadd.f32 %v2327_v36, %v4570_v9  ;;  %3270 = vmatmul.msk.f32.vlgmr.msra.gmra.mxu1 %vm201_vm8, %v4640_v38  ;;  %v4657_v9 = vpop.f32.mrf.mxu0 }
0x1a7c   :  { %3026 = vmatpush.msra.mxu1 %v4401_v25 }
0x1a7e   :  { %3027 = vmatpush.msra.mxu1 %v4406_v50  ;;  %v2265_v45 = vpop.permute.xlu2 %2264 }
0x1a7f   :  { %v2267_v46 = vmul.f32 %v2265_v45, %v4602_v52 }
0x1a80   :  { %3028 = vmatpush.msra.mxu1 %v4414_v28  ;;  %v1787_v28 = vadd.f32 %v4469_v56, %v4463_v47 }
0x1a81   :  { %v4669_v47 = vadd.f32 %v2268_v57, %v2267_v46 }
0x1a82   :  { %3029 = vmatpush.msra.mxu1 %v4421_v20  ;;  %v1813_v14 = vadd.f32 %v4478_v19, %v1787_v28 }
0x1aa5   :  { %v2352_v25 = vpop.f32.mrf.mxu0 }
0x1aa6   :  { %v2355_v48 = vadd.f32 %v2352_v25, %v1810_v5 }
0x1aa8   :  { %3472 = vtanh.f32 %v2355_v48  ;;  %v3271_v20 = vmul.f32 -1.442695, %v2355_v48 }
0x1aaa   :  { %3474 = vpow2.f32 %v3271_v20 }
0x1aae   :  { %v3473_v50 = vpop.eup %3472 }
0x1aaf   :  { %2407 = vrot.lane.b32.xlu1 %v3473_v50, %s3557_s0 }
0x1ab0   :  { %v3475_v22 = vpop.eup %3474 }
0x1ab1   :  { %v2384_v7 = vadd.f32 1.0, %v3475_v22  ;;  %v2459_v22 = vpop.permute.xlu2 %2458 }
0x1ab3   :  { %v2396_v12 = vand.u32 2147483648, %v2384_v7  ;;  %vm2390_vm15 = vweird.f32 %v2384_v7  ;;  %v2394_v29 = vand.u32 2147483647, %v2384_v7 }
0x1ab5   :  { %v2397_v39 = vor.u32 1.1754944e-38, %v2396_v12  ;;  %vm2395_vm1 = vcmp.eq.f32.partialorder %v2394_v29, 8.507059e+37 }
0x1af8   :  { %v2377_v44 = vpop.f32.mrf.mxu1 }
0x1af9   :  { %v2380_v11 = vadd.f32 %v2377_v44, %v1813_v14 }
0x1afb   :  { %3476 = vtanh.f32 %v2380_v11  ;;  %v3272_v16 = vmul.f32 -1.442695, %v2380_v11 }
0x1afc   :  { %3478 = vrcp.f32 %v2384_v7 }
0x1afd   :  { %3480 = vpow2.f32 %v3272_v16 }
0x1b01   :  { %v3477_v10 = vpop.eup %3476 }
0x1b02   :  { %2463 = vrot.lane.b32.xlu0 %v3477_v10, %s3557_s0  ;;  %v3479_v56 = vpop.eup %3478 }
0x1b03   :  { %v2386_v32 = vmul.f32 %v3479_v56, %v2384_v7  ;;  %vm2391_vm14 = vweird.f32 %v3479_v56  ;;  %v3481_v61 = vpop.eup %3480 }
0x1b04   :  { %vm2392_vm0 = vmor %vm2390_vm15, %vm2391_vm14  ;;  %v2440_v0 = vadd.f32 1.0, %v3481_v61 }
0x1b05   :  { %v2387_v62 = vsub.f32 1.0, %v2386_v32 }
0x1b06   :  { %3482 = vrcp.f32 %v2440_v0  ;;  %v2452_v48 = vand.u32 2147483648, %v2440_v0  ;;  %vm2446_vm3 = vweird.f32 %v2440_v0  ;;  %v2450_v50 = vand.u32 2147483647, %v2440_v0 }
0x1b07   :  { %v2388_v8 = vmul.f32 %v3479_v56, %v2387_v62 }
0x1b08   :  { %v2453_v20 = vor.u32 1.1754944e-38, %v2452_v48  ;;  %vm2451_vm5 = vcmp.eq.f32.partialorder %v2450_v50, 8.507059e+37 }
0x1b09   :  { %v2389_v21 = vadd.f32 %v3479_v56, %v2388_v8 }
0x1b0a   :  { %2402 = vrot.lane.b32.xlu0 %v4669_v47, %s3558_s4 }
0x1b0b   :  { %v2393_v43 = vsel %vm2392_vm0, %v3479_v56, %v2389_v21 }
0x1b0c   :  { %v2398_v15 = vsel %vm2395_vm1, %v2397_v39, %v2393_v43  ;;  %v3483_v36 = vpop.eup %3482  ;;  %v4683_v39 = vld [vmem:[%s4939_s1 + $0x18] sm:$0xff] }
0x1b0d   :  { %v2442_v63 = vmul.f32 %v3483_v36, %v2440_v0  ;;  %vm2447_vm2 = vweird.f32 %v3483_v36 }
0x1b0e   :  { %vm2448_vm4 = vmor %vm2446_vm3, %vm2447_vm2 }
0x1b0f   :  { %v2443_v53 = vsub.f32 1.0, %v2442_v63 }
0x1b11   :  { %v2444_v5 = vmul.f32 %v3483_v36, %v2443_v53 }
0x1b13   :  { %v2445_v25 = vadd.f32 %v3483_v36, %v2444_v5 }
0x1b15   :  { %v2449_v28 = vsel %vm2448_vm4, %v3483_v36, %v2445_v25 }
0x1b16   :  { %v2454_v14 = vsel %vm2451_vm5, %v2453_v20, %v2449_v28 }
0x1b17   :  { %v2461_v56 = vmul.f32 %v2459_v22, %v2454_v14 }
0x1b21   :  { %v2408_v40 = vpop.permute.xlu1 %2407 }
0x1b22   :  { %v2410_v2 = vmul.f32 %v2408_v40, %v2398_v15  ;;  %v4686_v40 = vsub.f32 1.0, %v4683_v39 }
0x1b24   :  { %2412 = vrot.lane.b32.xlu2 %v2410_v2, %s3558_s4  ;;  %v4691_v2 = vld [vmem:[%s4939_s1 + $0x20] sm:$0xff]  ;;  %v2428_v0 = vmul.f32 %v4686_v40, %v4620_v17 }
0x1b25   :  { %v4694_v61 = vsub.f32 1.0, %v4691_v2  ;;  %v2493_v17 = vld [vmem:[%s4944_s2 + $0x20] sm:$0xff] }
0x1b27   :  { %v2491_v5 = vmul.f32 %v4694_v61, %v4627_v6  ;;  %v2484_v50 = vmul.f32 %v4694_v61, %v4640_v38 }
0x1b74   :  { %v2464_v44 = vpop.permute.xlu0 %2463 }
0x1b75   :  { %v2466_v11 = vmul.f32 %v2464_v44, %v2454_v14  ;;  %v1746_v44 = vadd.f32 %v4651_v18, %v4379_v42 }
0x1b77   :  { %2468 = vrot.lane.b32.xlu1 %v2466_v11, %s3558_s4  ;;  %v1812_v11 = vadd.f32 %v4394_v4, %v1746_v44 }
0x1b7c   :  { %v2403_v10 = vpop.permute.xlu0 %2402 }
0x1b7d   :  { %v2405_v45 = vmul.f32 %v2403_v10, %v2398_v15 }
0x1b7e   :  { %v2413_v7 = vpop.permute.xlu2 %2412 }
0x1b7f   :  { %v2415_v46 = vadd.f32 %v2413_v7, %v2405_v45  ;;  %v1784_v45 = vadd.f32 %v4465_v34, %v4459_v59 }
0x1b81   :  { %3484 = vtanh.f32 %v2415_v46 }
0x1b87   :  { %v3485_v57 = vpop.eup %3484 }
0x1b88   :  { %2418 = vrot.lane.b32.xlu1 %v3485_v57, %s3557_s0 }
0x1be9   :  { %v2469_v32 = vpop.permute.xlu1 %2468 }
0x1bea   :  { %v2471_v62 = vadd.f32 %v2469_v32, %v2461_v56 }
0x1bec   :  { %3486 = vtanh.f32 %v2471_v62  ;;  %2487 = vrot.lane.b32.xlu1 %v2471_v62, %s3559_s3 }
0x1bf2   :  { %v3487_v8 = vpop.eup %3486 }
0x1bf3   :  { %2474 = vrot.lane.b32.xlu0 %v3487_v8, %s3557_s0  ;;  %v2435_v8 = vmul.f32 %v4686_v40, %v4669_v47 }
0x1bfa   :  { %v2419_v21 = vpop.permute.xlu1 %2418 }
0x1bfb   :  { %v2421_v12 = vmul.f32 %v2419_v21, %v2398_v15 }
0x1bfd   :  { %2423 = vrot.lane.b32.xlu0 %v2421_v12, %s3558_s4 }
0x1c5e   :  { %v2488_v15 = vpop.permute.xlu1 %2487 }
0x1c5f   :  { %v2490_v63 = vmul.f32 %v2488_v15, %v4691_v2 }
0x1c61   :  { %v4707_v25 = vadd.f32 %v2491_v5, %v2490_v63 }
0x1c65   :  { %v2475_v29 = vpop.permute.xlu0 %2474 }
0x1c66   :  { %v2477_v43 = vmul.f32 %v2475_v29, %v2454_v14 }
0x1c68   :  { %2479 = vrot.lane.b32.xlu2 %v2477_v43, %s3558_s4 }
0x1c6f   :  { %v2424_v16 = vpop.permute.xlu0 %2423 }
0x1c70   :  { %v2426_v36 = vmul.f32 %v2424_v16, %v4683_v39  ;;  %2431 = vrot.lane.b32.xlu2 %v2415_v46, %s3559_s3 }
0x1c72   :  { %v4701_v53 = vadd.f32 %v2428_v0, %v2426_v36 }
0x1c74   :  { %3273 = vmatmul.msk.f32.vlgmr.msra.gmra.mxu2 %vm201_vm8, %v4701_v53 }
0x1c78   :  { %2622 = vrot.lane.b32.xlu2 %v4707_v25, %s3558_s4 }
0x1cc2   :  { %v2480_v48 = vpop.permute.xlu2 %2479 }
0x1cc3   :  { %v2482_v28 = vmul.f32 %v2480_v48, %v4691_v2 }
0x1cc5   :  { %v4717_v20 = vadd.f32 %v2484_v50, %v2482_v28  ;;  %v2494_v6 = vmul.f32 %v2493_v17, %v2482_v28 }
0x1cc7   :  { %v4720_v14 = vadd.f32 %v2494_v6, %v4643_v49  ;;  %3274 = vmatmul.msk.f32.vlgmr.msra.gmra.mxu3 %vm201_vm8, %v4717_v20  ;;  %v1811_v49 = vadd.f32 %v4478_v19, %v1784_v45 }
0x1cca   :  { %v2432_v18 = vpop.permute.xlu2 %2431 }
0x1ccb   :  { %v2434_v62 = vmul.f32 %v2432_v18, %v4683_v39 }
0x1ccd   :  { %v4735_v59 = vadd.f32 %v2435_v8, %v2434_v62 }
0x1cf7   :  { %v2517_v22 = vpop.f32.mrf.mxu2 }
0x1cf8   :  { %v2520_v10 = vadd.f32 %v2517_v22, %v1812_v11 }
0x1cfa   :  { %3488 = vtanh.f32 %v2520_v10  ;;  %v3275_v7 = vmul.f32 -1.442695, %v2520_v10 }
0x1cfc   :  { %3490 = vpow2.f32 %v3275_v7 }
0x1d00   :  { %v3489_v38 = vpop.eup %3488 }
0x1d01   :  { %2572 = vrot.lane.b32.xlu1 %v3489_v38, %s3557_s0 }
0x1d02   :  { %v3491_v56 = vpop.eup %3490 }
0x1d03   :  { %v2549_v32 = vadd.f32 1.0, %v3491_v56  ;;  %v2623_v56 = vpop.permute.xlu2 %2622 }
0x1d05   :  { %v2561_v15 = vand.u32 2147483648, %v2549_v32  ;;  %vm2555_vm7 = vweird.f32 %v2549_v32  ;;  %v2559_v16 = vand.u32 2147483647, %v2549_v32 }
0x1d07   :  { %v2562_v36 = vor.u32 1.1754944e-38, %v2561_v15  ;;  %vm2560_vm10 = vcmp.eq.f32.partialorder %v2559_v16, 8.507059e+37 }
0x1d4a   :  { %v2542_v46 = vpop.f32.mrf.mxu3 }
0x1d4b   :  { %v2545_v57 = vadd.f32 %v2542_v46, %v1811_v49 }
0x1d4d   :  { %3492 = vtanh.f32 %v2545_v57  ;;  %v3276_v17 = vmul.f32 -1.442695, %v2545_v57 }
0x1d4e   :  { %3494 = vrcp.f32 %v2549_v32 }
0x1d4f   :  { %3496 = vpow2.f32 %v3276_v17 }
0x1d53   :  { %v3493_v42 = vpop.eup %3492 }
0x1d54   :  { %2627 = vrot.lane.b32.xlu0 %v3493_v42, %s3557_s0  ;;  %v3495_v34 = vpop.eup %3494 }
0x1d55   :  { %v2551_v21 = vmul.f32 %v3495_v34, %v2549_v32  ;;  %vm2556_vm6 = vweird.f32 %v3495_v34  ;;  %v3497_v48 = vpop.eup %3496 }
0x1d56   :  { %vm2557_vm9 = vmor %vm2555_vm7, %vm2556_vm6  ;;  %v2604_v50 = vadd.f32 1.0, %v3497_v48 }
0x1d57   :  { %v2552_v12 = vsub.f32 1.0, %v2551_v21 }
0x1d58   :  { %3498 = vrcp.f32 %v2604_v50  ;;  %v2616_v10 = vand.u32 2147483648, %v2604_v50  ;;  %vm2610_vm12 = vweird.f32 %v2604_v50  ;;  %v2614_v38 = vand.u32 2147483647, %v2604_v50 }
0x1d59   :  { %v2553_v29 = vmul.f32 %v3495_v34, %v2552_v12 }
0x1d5a   :  { %v2617_v7 = vor.u32 1.1754944e-38, %v2616_v10  ;;  %vm2615_vm14 = vcmp.eq.f32.partialorder %v2614_v38, 8.507059e+37  ;;  %v1749_v38 = vadd.f32 %v4653_v41, %v4381_v60 }
0x1d5b   :  { %v2554_v43 = vadd.f32 %v3495_v34, %v2553_v29 }
0x1d5c   :  { %2567 = vrot.lane.b32.xlu0 %v4735_v59, %s3558_s4 }
0x1d5d   :  { %v2558_v0 = vsel %vm2557_vm9, %v3495_v34, %v2554_v43 }
0x1d5e   :  { %v2563_v47 = vsel %vm2560_vm10, %v2562_v36, %v2558_v0  ;;  %v3499_v28 = vpop.eup %3498 }
0x1d5f   :  { %v2606_v6 = vmul.f32 %v3499_v28, %v2604_v50  ;;  %vm2611_vm11 = vweird.f32 %v3499_v28 }
0x1d60   :  { %vm2612_vm13 = vmor %vm2610_vm12, %vm2611_vm11 }
0x1d61   :  { %v2607_v44 = vsub.f32 1.0, %v2606_v6 }
0x1d63   :  { %v2608_v11 = vmul.f32 %v3499_v28, %v2607_v44  ;;  %v2647_v44 = vmul.f32 %v4717_v20, %v4686_v40 }
0x1d65   :  { %v2609_v22 = vadd.f32 %v3499_v28, %v2608_v11 }
0x1d67   :  { %v2613_v45 = vsel %vm2612_vm13, %v3499_v28, %v2609_v22 }
0x1d68   :  { %v2618_v49 = vsel %vm2615_vm14, %v2617_v7, %v2613_v45  ;;  %v1814_v45 = vadd.f32 %v4394_v4, %v1749_v38 }
0x1d69   :  { %v2625_v34 = vmul.f32 %v2623_v56, %v2618_v49 }
0x1d73   :  { %v2573_v63 = vpop.permute.xlu1 %2572 }
0x1d74   :  { %v2575_v5 = vmul.f32 %v2573_v63, %v2563_v47 }
0x1d76   :  { %2577 = vrot.lane.b32.xlu2 %v2575_v5, %s3558_s4  ;;  %v2592_v5 = vmul.f32 %v4694_v61, %v4701_v53  ;;  %v2656_v53 = vld [vmem:[%s4944_s2 + $0x18] sm:$0xff] }
0x1dc6   :  { %v2628_v46 = vpop.permute.xlu0 %2627 }
0x1dc7   :  { %v2630_v57 = vmul.f32 %v2628_v46, %v2618_v49 }
0x1dc9   :  { %2632 = vrot.lane.b32.xlu1 %v2630_v57, %s3558_s4 }
0x1dce   :  { %v2568_v42 = vpop.permute.xlu0 %2567 }
0x1dcf   :  { %v2570_v18 = vmul.f32 %v2568_v42, %v2563_v47 }
0x1dd0   :  { %v2578_v32 = vpop.permute.xlu2 %2577 }
0x1dd1   :  { %v2580_v62 = vadd.f32 %v2578_v32, %v2570_v18  ;;  %v2599_v32 = vmul.f32 %v4694_v61, %v4735_v59 }
0x1dd3   :  { %3500 = vtanh.f32 %v2580_v62 }
0x1dd9   :  { %v3501_v8 = vpop.eup %3500 }
0x1dda   :  { %2583 = vrot.lane.b32.xlu1 %v3501_v8, %s3557_s0 }
0x1e3b   :  { %v2633_v21 = vpop.permute.xlu1 %2632 }
0x1e3c   :  { %v2635_v12 = vadd.f32 %v2633_v21, %v2625_v34 }
0x1e3e   :  { %3502 = vtanh.f32 %v2635_v12  ;;  %2650 = vrot.lane.b32.xlu1 %v2635_v12, %s3559_s3 }
0x1e44   :  { %v3503_v29 = vpop.eup %3502 }
0x1e45   :  { %2638 = vrot.lane.b32.xlu0 %v3503_v29, %s3557_s0 }
0x1e4c   :  { %v2584_v43 = vpop.permute.xlu1 %2583 }
0x1e4d   :  { %v2586_v15 = vmul.f32 %v2584_v43, %v2563_v47  ;;  %v2654_v47 = vmul.f32 %v4707_v25, %v4686_v40 }
0x1e4f   :  { %2588 = vrot.lane.b32.xlu0 %v2586_v15, %s3558_s4 }
0x1eb0   :  { %v2651_v36 = vpop.permute.xlu1 %2650 }
0x1eb1   :  { %v2653_v48 = vmul.f32 %v2651_v36, %v4683_v39 }
0x1eb3   :  { %v4757_v28 = vadd.f32 %v2654_v47, %v2653_v48 }
0x1eb7   :  { %v2639_v16 = vpop.permute.xlu0 %2638 }
0x1eb8   :  { %v2641_v0 = vmul.f32 %v2639_v16, %v2618_v49 }
0x1eba   :  { %2643 = vrot.lane.b32.xlu2 %v2641_v0, %s3558_s4 }
0x1ec1   :  { %v2589_v63 = vpop.permute.xlu0 %2588 }
0x1ec2   :  { %v2591_v17 = vmul.f32 %v2589_v63, %v4691_v2  ;;  %2595 = vrot.lane.b32.xlu2 %v2580_v62, %s3559_s3 }
0x1ec4   :  { %v4751_v50 = vadd.f32 %v2592_v5, %v2591_v17 }
0x1ec6   :  { %3277 = vmatmul.msk.f32.vlgmr.msrb.gmra.mxu0 %vm201_vm8, %v4751_v50 }
0x1eca   :  { %2785 = vrot.lane.b32.xlu2 %v4757_v28, %s3558_s4 }
0x1f14   :  { %v2644_v6 = vpop.permute.xlu2 %2643 }
0x1f15   :  { %v2646_v11 = vmul.f32 %v2644_v6, %v4683_v39  ;;  %v1781_v39 = vadd.f32 %v4461_v13, %v4455_v30 }
0x1f17   :  { %v4767_v22 = vadd.f32 %v2647_v44, %v2646_v11  ;;  %v2657_v25 = vmul.f32 %v2656_v53, %v2646_v11 }
0x1f19   :  { %v4770_v10 = vadd.f32 %v2657_v25, %v4720_v14  ;;  %3278 = vmatmul.msk.f32.vlgmr.msrb.gmra.mxu1 %vm201_vm8, %v4767_v22  ;;  %v1809_v14 = vadd.f32 %v4478_v19, %v1781_v39 }
0x1f1c   :  { %v2596_v41 = vpop.permute.xlu2 %2595 }
0x1f1d   :  { %v2598_v18 = vmul.f32 %v2596_v41, %v4691_v2 }
0x1f1f   :  { %v4785_v30 = vadd.f32 %v2599_v32, %v2598_v18 }
0x1f43   :  { %v2680_v7 = vpop.f32.mrf.mxu0 }
0x1f44   :  { %v2683_v49 = vadd.f32 %v2680_v7, %v1814_v45  ;;  %v2786_v7 = vpop.permute.xlu2 %2785 }
0x1f46   :  { %3504 = vtanh.f32 %v2683_v49  ;;  %v3279_v20 = vmul.f32 -1.442695, %v2683_v49 }
0x1f48   :  { %3506 = vpow2.f32 %v3279_v20 }
0x1f4c   :  { %v3505_v40 = vpop.eup %3504 }
0x1f4d   :  { %2735 = vrot.lane.b32.xlu1 %v3505_v40, %s3557_s0 }
0x1f4e   :  { %v3507_v56 = vpop.eup %3506 }
0x1f4f   :  { %v2712_v42 = vadd.f32 1.0, %v3507_v56 }
0x1f51   :  { %v2724_v12 = vand.u32 2147483648, %v2712_v42  ;;  %vm2718_vm0 = vweird.f32 %v2712_v42  ;;  %v2722_v29 = vand.u32 2147483647, %v2712_v42 }
0x1f53   :  { %v2725_v43 = vor.u32 1.1754944e-38, %v2724_v12  ;;  %vm2723_vm2 = vcmp.eq.f32.partialorder %v2722_v29, 8.507059e+37  ;;  %v2817_v29 = vmul.f32 %v4757_v28, %v4605_v33 }
0x1f96   :  { %v2705_v46 = vpop.f32.mrf.mxu1 }
0x1f97   :  { %v2708_v57 = vadd.f32 %v2705_v46, %v1809_v14 }
0x1f99   :  { %3508 = vtanh.f32 %v2708_v57  ;;  %v3280_v16 = vmul.f32 -1.442695, %v2708_v57 }
0x1f9a   :  { %3510 = vrcp.f32 %v2712_v42 }
0x1f9b   :  { %3512 = vpow2.f32 %v3280_v16 }
0x1f9f   :  { %v3509_v60 = vpop.eup %3508 }
0x1fa0   :  { %2790 = vrot.lane.b32.xlu0 %v3509_v60, %s3557_s0  ;;  %v3511_v13 = vpop.eup %3510 }
0x1fa1   :  { %v2714_v62 = vmul.f32 %v3511_v13, %v2712_v42  ;;  %vm2719_vm15 = vweird.f32 %v3511_v13  ;;  %v3513_v0 = vpop.eup %3512 }
0x1fa2   :  { %vm2720_vm1 = vmor %vm2718_vm0, %vm2719_vm15  ;;  %v2767_v36 = vadd.f32 1.0, %v3513_v0  ;;  %v1752_v0 = vadd.f32 %v4655_v58, %v4384_v1 }
0x1fa3   :  { %v2715_v8 = vsub.f32 1.0, %v2714_v62 }
0x1fa4   :  { %3514 = vrcp.f32 %v2767_v36  ;;  %v2779_v53 = vand.u32 2147483648, %v2767_v36  ;;  %vm2773_vm4 = vweird.f32 %v2767_v36  ;;  %v2777_v6 = vand.u32 2147483647, %v2767_v36 }
0x1fa5   :  { %v2716_v34 = vmul.f32 %v3511_v13, %v2715_v8  ;;  %v2755_v8 = vmul.f32 %v4751_v50, %v4613_v35  ;;  %v2819_v50 = vld [vmem:[%s4944_s2 + $0x10] sm:$0xff] }
0x1fa6   :  { %v2780_v11 = vor.u32 1.1754944e-38, %v2779_v53  ;;  %vm2778_vm6 = vcmp.eq.f32.partialorder %v2777_v6, 8.507059e+37 }
0x1fa7   :  { %v2717_v21 = vadd.f32 %v3511_v13, %v2716_v34 }
0x1fa8   :  { %2730 = vrot.lane.b32.xlu0 %v4785_v30, %s3558_s4 }
0x1fa9   :  { %v2721_v2 = vsel %vm2720_vm1, %v3511_v13, %v2717_v21 }
0x1faa   :  { %v2726_v61 = vsel %vm2723_vm2, %v2725_v43, %v2721_v2  ;;  %v3515_v63 = vpop.eup %3514 }
0x1fab   :  { %v2769_v5 = vmul.f32 %v3515_v63, %v2767_v36  ;;  %vm2774_vm3 = vweird.f32 %v3515_v63  ;;  %v1816_v36 = vadd.f32 %v4394_v4, %v1752_v0 }
0x1fac   :  { %vm2775_vm5 = vmor %vm2773_vm4, %vm2774_vm3 }
0x1fad   :  { %v2770_v17 = vsub.f32 1.0, %v2769_v5 }
0x1faf   :  { %v2771_v48 = vmul.f32 %v3515_v63, %v2770_v17 }
0x1fb1   :  { %v2772_v47 = vadd.f32 %v3515_v63, %v2771_v48 }
0x1fb3   :  { %v2776_v44 = vsel %vm2775_vm5, %v3515_v63, %v2772_v47 }
0x1fb4   :  { %v2781_v25 = vsel %vm2778_vm6, %v2780_v11, %v2776_v44  ;;  %v2762_v44 = vmul.f32 %v4785_v30, %v4613_v35 }
0x1fb5   :  { %v2788_v46 = vmul.f32 %v2786_v7, %v2781_v25 }
0x1fbf   :  { %v2736_v15 = vpop.permute.xlu1 %2735 }
0x1fc0   :  { %v2738_v59 = vmul.f32 %v2736_v15, %v2726_v61  ;;  %v2810_v15 = vmul.f32 %v4767_v22, %v4605_v33 }
0x1fc2   :  { %2740 = vrot.lane.b32.xlu2 %v2738_v59, %s3558_s4 }
0x2012   :  { %v2791_v38 = vpop.permute.xlu0 %2790 }
0x2013   :  { %v2793_v45 = vmul.f32 %v2791_v38, %v2781_v25 }
0x2015   :  { %2795 = vrot.lane.b32.xlu1 %v2793_v45, %s3558_s4 }
0x201a   :  { %v2731_v49 = vpop.permute.xlu0 %2730 }
0x201b   :  { %v2733_v40 = vmul.f32 %v2731_v49, %v2726_v61 }
0x201c   :  { %v2741_v39 = vpop.permute.xlu2 %2740 }
0x201d   :  { %v2743_v20 = vadd.f32 %v2741_v39, %v2733_v40 }
0x201f   :  { %3516 = vtanh.f32 %v2743_v20 }
0x2025   :  { %v3517_v14 = vpop.eup %3516 }
0x2026   :  { %2746 = vrot.lane.b32.xlu1 %v3517_v14, %s3557_s0 }
0x2087   :  { %v2796_v57 = vpop.permute.xlu1 %2795 }
0x2088   :  { %v2798_v56 = vadd.f32 %v2796_v57, %v2788_v46 }
0x208a   :  { %3518 = vtanh.f32 %v2798_v56  ;;  %2813 = vrot.lane.b32.xlu1 %v2798_v56, %s3559_s3 }
0x2090   :  { %v3519_v60 = vpop.eup %3518 }
0x2091   :  { %2801 = vrot.lane.b32.xlu0 %v3519_v60, %s3557_s0 }
0x2098   :  { %v2747_v41 = vpop.permute.xlu1 %2746 }
0x2099   :  { %v2749_v42 = vmul.f32 %v2747_v41, %v2726_v61 }
0x209b   :  { %2751 = vrot.lane.b32.xlu0 %v2749_v42, %s3558_s4 }
0x20fc   :  { %v2814_v13 = vpop.permute.xlu1 %2813 }
0x20fd   :  { %v2816_v21 = vmul.f32 %v2814_v13, %v4602_v52 }
0x20ff   :  { %v4807_v2 = vadd.f32 %v2817_v29, %v2816_v21 }
0x2103   :  { %v2802_v18 = vpop.permute.xlu0 %2801 }
0x2104   :  { %v2804_v32 = vmul.f32 %v2802_v18, %v2781_v25 }
0x2106   :  { %2806 = vrot.lane.b32.xlu2 %v2804_v32, %s3558_s4 }
0x210d   :  { %v2752_v62 = vpop.permute.xlu0 %2751 }
0x210e   :  { %v2754_v34 = vmul.f32 %v2752_v62, %v4610_v51  ;;  %2758 = vrot.lane.b32.xlu2 %v2743_v20, %s3559_s3 }
0x2110   :  { %v4801_v12 = vadd.f32 %v2755_v8, %v2754_v34 }
0x2112   :  { %3281 = vmatmul.msk.f32.vlgmr.msrb.gmra.mxu2 %vm201_vm8, %v4801_v12 }
0x2116   :  { %2948 = vrot.lane.b32.xlu2 %v4807_v2, %s3558_s4 }
0x2160   :  { %v2807_v43 = vpop.permute.xlu2 %2806 }
0x2161   :  { %v2809_v61 = vmul.f32 %v2807_v43, %v4602_v52  ;;  %v1778_v52 = vadd.f32 %v4457_v31, %v4451_v26 }
0x2163   :  { %v4817_v59 = vadd.f32 %v2810_v15, %v2809_v61  ;;  %v2820_v28 = vmul.f32 %v2819_v50, %v2809_v61 }
0x2165   :  { %v4820_v16 = vadd.f32 %v2820_v28, %v4770_v10  ;;  %3282 = vmatmul.msk.f32.vlgmr.msrb.gmra.mxu3 %vm201_vm8, %v4817_v59  ;;  %v1807_v10 = vadd.f32 %v4478_v19, %v1778_v52 }
0x2168   :  { %v2759_v58 = vpop.permute.xlu2 %2758 }
0x2169   :  { %v2761_v6 = vmul.f32 %v2759_v58, %v4610_v51 }
0x216b   :  { %v4835_v26 = vadd.f32 %v2762_v44, %v2761_v6 }
0x2170   :  { %v2949_v29 = vpop.permute.xlu2 %2948 }
0x2195   :  { %v2843_v63 = vpop.f32.mrf.mxu2 }
0x2196   :  { %v2846_v5 = vadd.f32 %v2843_v63, %v1816_v36 }
0x2198   :  { %3520 = vtanh.f32 %v2846_v5  ;;  %v3283_v22 = vmul.f32 -1.442695, %v2846_v5 }
0x219a   :  { %3522 = vpow2.f32 %v3283_v22 }
0x219e   :  { %v3521_v33 = vpop.eup %3520 }
0x219f   :  { %2898 = vrot.lane.b32.xlu1 %v3521_v33, %s3557_s0 }
0x21a0   :  { %v3523_v47 = vpop.eup %3522 }
0x21a1   :  { %v2875_v53 = vadd.f32 1.0, %v3523_v47  ;;  %v2918_v47 = vmul.f32 %v4801_v12, %v4267_v55 }
0x21a3   :  { %v2887_v7 = vand.u32 2147483648, %v2875_v53  ;;  %vm2881_vm9 = vweird.f32 %v2875_v53  ;;  %v2885_v49 = vand.u32 2147483647, %v2875_v53 }
0x21a5   :  { %v2888_v40 = vor.u32 1.1754944e-38, %v2887_v7  ;;  %vm2886_vm11 = vcmp.eq.f32.partialorder %v2885_v49, 8.507059e+37 }
0x21e8   :  { %v2868_v17 = vpop.f32.mrf.mxu3 }
0x21e9   :  { %v2871_v48 = vadd.f32 %v2868_v17, %v1807_v10 }
0x21eb   :  { %3524 = vtanh.f32 %v2871_v48  ;;  %v3284_v20 = vmul.f32 -1.442695, %v2871_v48 }
0x21ec   :  { %3526 = vrcp.f32 %v2875_v53 }
0x21ed   :  { %3528 = vpow2.f32 %v3284_v20 }
0x21f1   :  { %v3525_v1 = vpop.eup %3524 }
0x21f2   :  { %2953 = vrot.lane.b32.xlu0 %v3525_v1, %s3557_s0  ;;  %v3527_v31 = vpop.eup %3526  ;;  %v3552_v1 = vld [vmem:[%s4939_s1 + $0x30] sm:$0xff] }
0x21f3   :  { %v2877_v11 = vmul.f32 %v3527_v31, %v2875_v53  ;;  %vm2882_vm7 = vweird.f32 %v3527_v31  ;;  %v3529_v14 = vpop.eup %3528  ;;  %v3553_v53 = vld [vmem:[%s4939_s1 + $0x8] sm:$0xff] }
0x21f4   :  { %vm2883_vm10 = vmor %vm2881_vm9, %vm2882_vm7  ;;  %v2930_v46 = vadd.f32 1.0, %v3529_v14  ;;  %vm3191_vm9 = vcmask 15360  }
0x21f5   :  { %v2878_v25 = vsub.f32 1.0, %v2877_v11  ;;  %v2982_v11 = vld [vmem:[%s4944_s2 + $0x8] sm:$0xff] }
0x21f6   :  { %3530 = vrcp.f32 %v2930_v46  ;;  %v2942_v18 = vand.u32 2147483648, %v2930_v46  ;;  %vm2936_vm13 = vweird.f32 %v2930_v46  ;;  %v2940_v32 = vand.u32 2147483647, %v2930_v46 }
0x21f7   :  { %v2879_v38 = vmul.f32 %v3527_v31, %v2878_v25 }
0x21f8   :  { %v2943_v62 = vor.u32 1.1754944e-38, %v2942_v18  ;;  %vm2941_vm15 = vcmp.eq.f32.partialorder %v2940_v32, 8.507059e+37 }
0x21f9   :  { %v2880_v45 = vadd.f32 %v3527_v31, %v2879_v38  ;;  %v2973_v38 = vmul.f32 %v4817_v59, %v4243_v23 }
0x21fa   :  { %2893 = vrot.lane.b32.xlu0 %v4835_v26, %s3558_s4 }
0x21fb   :  { %v2884_v51 = vsel %vm2883_vm10, %v3527_v31, %v2880_v45  ;;  %v2980_v31 = vmul.f32 %v4807_v2, %v4243_v23  ;;  %v1755_v2 = vadd.f32 %v4657_v9, %v4386_v3  ;;  %v1775_v23 = vadd.f32 %v4453_v27, %v4449_v37 }
0x21fc   :  { %v2889_v35 = vsel %vm2886_vm11, %v2888_v40, %v2884_v51  ;;  %v3531_v57 = vpop.eup %3530 }
0x21fd   :  { %v2932_v56 = vmul.f32 %v3531_v57, %v2930_v46  ;;  %vm2937_vm12 = vweird.f32 %v3531_v57  ;;  %v1818_v40 = vadd.f32 %v4394_v4, %v1755_v2  ;;  %v3139_v2 = vld [vmem:[%s4946_s13 + $0x18] sm:$0xff] }
0x21fe   :  { %vm2938_vm14 = vmor %vm2936_vm13, %vm2937_vm12  ;;  %3155 = vmatpush.msra.mxu2 %v3139_v2 }
0x21ff   :  { %v2933_v60 = vsub.f32 1.0, %v2932_v56  ;;  %v2925_v56 = vmul.f32 %v4835_v26, %v4267_v55 }
0x2201   :  { %v2934_v41 = vmul.f32 %v3531_v57, %v2933_v60 }
0x2203   :  { %v2935_v42 = vadd.f32 %v3531_v57, %v2934_v41 }
0x2205   :  { %v2939_v13 = vsel %vm2938_vm14, %v3531_v57, %v2935_v42 }
0x2206   :  { %v2944_v8 = vsel %vm2941_vm15, %v2943_v62, %v2939_v13 }
0x2207   :  { %v2951_v0 = vmul.f32 %v2949_v29, %v2944_v8 }
0x2211   :  { %v2899_v39 = vpop.permute.xlu1 %2898 }
0x2212   :  { %v2901_v30 = vmul.f32 %v2899_v39, %v2889_v35 }
0x2214   :  { %2903 = vrot.lane.b32.xlu2 %v2901_v30, %s3558_s4 }
0x2264   :  { %v2954_v34 = vpop.permute.xlu0 %2953 }
0x2265   :  { %v2956_v21 = vmul.f32 %v2954_v34, %v2944_v8 }
0x2267   :  { %2958 = vrot.lane.b32.xlu1 %v2956_v21, %s3558_s4 }
0x226c   :  { %v2894_v50 = vpop.permute.xlu0 %2893 }
0x226d   :  { %v2896_v43 = vmul.f32 %v2894_v50, %v2889_v35 }
0x226e   :  { %v2904_v15 = vpop.permute.xlu2 %2903 }
0x226f   :  { %v2906_v61 = vadd.f32 %v2904_v15, %v2896_v43 }
0x2271   :  { %3532 = vtanh.f32 %v2906_v61 }
0x2277   :  { %v3533_v28 = vpop.eup %3532 }
0x2278   :  { %2909 = vrot.lane.b32.xlu1 %v3533_v28, %s3557_s0 }
0x22d9   :  { %v2959_v36 = vpop.permute.xlu1 %2958 }
0x22da   :  { %v2961_v63 = vadd.f32 %v2959_v36, %v2951_v0 }
0x22dc   :  { %3534 = vtanh.f32 %v2961_v63  ;;  %2976 = vrot.lane.b32.xlu1 %v2961_v63, %s3559_s3 }
0x22e2   :  { %v3535_v5 = vpop.eup %3534 }
0x22e3   :  { %2964 = vrot.lane.b32.xlu0 %v3535_v5, %s3557_s0 }
0x22ea   :  { %v2910_v33 = vpop.permute.xlu1 %2909 }
0x22eb   :  { %v2912_v52 = vmul.f32 %v2910_v33, %v2889_v35 }
0x22ed   :  { %2914 = vrot.lane.b32.xlu0 %v2912_v52, %s3558_s4 }
0x234e   :  { %v2977_v17 = vpop.permute.xlu1 %2976 }
0x234f   :  { %v2979_v6 = vmul.f32 %v3553_v53, %v2977_v17 }
0x2351   :  { %v2981_v12 = vadd.f32 %v2980_v31, %v2979_v6 }
0x2355   :  { %v2965_v22 = vpop.permute.xlu0 %2964 }
0x2356   :  { %v2967_v10 = vmul.f32 %v2965_v22, %v2944_v8 }
0x2358   :  { %2969 = vrot.lane.b32.xlu2 %v2967_v10, %s3558_s4 }
0x235f   :  { %v2915_v48 = vpop.permute.xlu0 %2914 }
0x2360   :  { %v2917_v58 = vmul.f32 %v3552_v1, %v2915_v48  ;;  %2921 = vrot.lane.b32.xlu2 %v2906_v61, %s3559_s3 }
0x2362   :  { %v4855_v44 = vadd.f32 %v2918_v47, %v2917_v58 }
0x2364   :  { %3285 = vmatmul.msk.f32.vlgmr.msra.gmra.mxu0 %vm201_vm8, %v4855_v44 }
0x2368   :  { %3104 = vrot.lane.b32.xlu2 %v2981_v12, %s3558_s4 }
0x23b2   :  { %v2970_v25 = vpop.permute.xlu2 %2969 }
0x23b3   :  { %v2972_v45 = vmul.f32 %v3553_v53, %v2970_v25 }
0x23b5   :  { %v2974_v7 = vadd.f32 %v2973_v38, %v2972_v45  ;;  %v2983_v49 = vmul.f32 %v2982_v11, %v2972_v45  ;;  %v3135_v38 = vld [vmem:[%s4945_s12 + $0x18] sm:$0xff]  ;;  %v3134_v45 = vld [vmem:[%s4945_s12 + $0x10] sm:$0xff] }
0x23b6   :  { %3178 = vmatpush.msra.mxu3 %v3135_v38 }
0x23b7   :  { %v4868_v51 = vadd.f32 %v2983_v49, %v4820_v16  ;;  %3286 = vmatmul.msk.f32.vlgmr.msra.gmra.mxu1 %vm201_vm8, %v2974_v7  ;;  %v1805_v16 = vadd.f32 %v4478_v19, %v1775_v23  ;;  %v3133_v7 = vld [vmem:[%s4945_s12 + $0x8] sm:$0xff]  ;;  %v3132_v49 = vld [vmem:[%s4945_s12] sm:$0xff]  ;;  %v3554_v23 = vld [vmem:[%s4939_s1 + $0x38] sm:$0xff] }
0x23b8   :  { %3179 = vmatpush.msra.mxu3 %v3134_v45 }
0x23ba   :  { %v2922_v9 = vpop.permute.xlu2 %2921  ;;  %3180 = vmatpush.msra.mxu3 %v3133_v7 }
0x23bb   :  { %v2924_v57 = vmul.f32 %v3552_v1, %v2922_v9 }
0x23bc   :  { %3181 = vmatpush.msra.mxu3 %v3132_v49 }
0x23bd   :  { %v2926_v60 = vadd.f32 %v2925_v56, %v2924_v57  ;;  %v3295_v57 = vld [vmem:[%s4947_s14] ss:$0 sm:$0xff] }
0x23c2   :  { %v3105_v10 = vpop.permute.xlu2 %3104 }
0x23e1   :  { %v3006_v39 = vpop.f32.mrf.mxu0 }
0x23e2   :  { %v3009_v35 = vadd.f32 %v3006_v39, %v1818_v40 }
0x23e4   :  { %3536 = vtanh.f32 %v3009_v35  ;;  %v3287_v59 = vmul.f32 -1.442695, %v3009_v35 }
0x23e6   :  { %3538 = vpow2.f32 %v3287_v59 }
0x23ea   :  { %v3537_v30 = vpop.eup %3536 }
0x23eb   :  { %3061 = vrot.lane.b32.xlu1 %v3537_v30, %s3557_s0  ;;  %v3081_v30 = vmul.f32 %v4855_v44, %v1983_v54  ;;  %v3129_v54 = vld [vmem:[%s4944_s2] sm:$0xff] }
0x23ec   :  { %v3539_v46 = vpop.eup %3538 }
0x23ed   :  { %v3038_v4 = vadd.f32 1.0, %v3539_v46  ;;  %v3555_v46 = vld [vmem:[%s4939_s1] sm:$0xff] }
0x23ef   :  { %v3050_v18 = vand.u32 2147483648, %v3038_v4  ;;  %vm3044_vm1 = vweird.f32 %v3038_v4  ;;  %v3048_v32 = vand.u32 2147483647, %v3038_v4 }
0x23f1   :  { %v3051_v62 = vor.u32 1.1754944e-38, %v3050_v18  ;;  %vm3049_vm3 = vcmp.eq.f32.partialorder %v3048_v32, 8.507059e+37 }
0x2434   :  { %v3031_v20 = vpop.f32.mrf.mxu1 }
0x2435   :  { %v3034_v14 = vadd.f32 %v3031_v20, %v1805_v16  ;;  %v3138_v20 = vld [vmem:[%s4946_s13 + $0x10] sm:$0xff] }
0x2436   :  { %3156 = vmatpush.msra.mxu2 %v3138_v20 }
0x2437   :  { %3540 = vtanh.f32 %v3034_v14  ;;  %v3288_v55 = vmul.f32 -1.442695, %v3034_v14  ;;  %v3137_v14 = vld [vmem:[%s4946_s13 + $0x8] sm:$0xff] }
0x2438   :  { %3542 = vrcp.f32 %v3038_v4  ;;  %3157 = vmatpush.msra.mxu2 %v3137_v14 }
0x2439   :  { %3544 = vpow2.f32 %v3288_v55 }
0x243a   :  { %3158 = vmatpush.msra.mxu2 %v3136_v24 }
0x243d   :  { %v3541_v3 = vpop.eup %3540 }
0x243e   :  { %3109 = vrot.lane.b32.xlu0 %v3541_v3, %s3557_s0  ;;  %v3543_v37 = vpop.eup %3542 }
0x243f   :  { %v3040_v27 = vmul.f32 %v3543_v37, %v3038_v4  ;;  %vm3045_vm0 = vweird.f32 %v3543_v37  ;;  %v3545_v26 = vpop.eup %3544 }
0x2440   :  { %vm3046_vm2 = vmor %vm3044_vm1, %vm3045_vm0  ;;  %v3086_v29 = vadd.f32 1.0, %v3545_v26 }
0x2441   :  { %v3041_v19 = vsub.f32 1.0, %v3040_v27 }
0x2442   :  { %3546 = vrcp.f32 %v3086_v29  ;;  %v3098_v0 = vand.u32 2147483648, %v3086_v29  ;;  %vm3092_vm5 = vweird.f32 %v3086_v29  ;;  %v3096_v36 = vand.u32 2147483647, %v3086_v29 }
0x2443   :  { %v3042_v41 = vmul.f32 %v3543_v37, %v3041_v19 }
0x2444   :  { %v3099_v5 = vor.u32 1.1754944e-38, %v3098_v0  ;;  %vm3097_vm7 = vcmp.eq.f32.partialorder %v3096_v36, 8.507059e+37 }
0x2445   :  { %v3043_v42 = vadd.f32 %v3543_v37, %v3042_v41 }
0x2446   :  { %3056 = vrot.lane.b32.xlu0 %v2926_v60, %s3558_s4 }
0x2447   :  { %v3047_v13 = vsel %vm3046_vm2, %v3543_v37, %v3043_v42 }
0x2448   :  { %v3052_v34 = vsel %vm3049_vm3, %v3051_v62, %v3047_v13  ;;  %v3547_v50 = vpop.eup %3546 }
0x2449   :  { %v3088_v43 = vmul.f32 %v3547_v50, %v3086_v29  ;;  %vm3093_vm4 = vweird.f32 %v3547_v50 }
0x244a   :  { %vm3094_vm6 = vmor %vm3092_vm5, %vm3093_vm4 }
0x244b   :  { %v3089_v15 = vsub.f32 1.0, %v3088_v43 }
0x244d   :  { %v3090_v61 = vmul.f32 %v3547_v50, %v3089_v15 }
0x244f   :  { %v3091_v28 = vadd.f32 %v3547_v50, %v3090_v61 }
0x2451   :  { %v3095_v63 = vsel %vm3094_vm6, %v3547_v50, %v3091_v28 }
0x2452   :  { %v3100_v33 = vsel %vm3097_vm7, %v3099_v5, %v3095_v63 }
0x2453   :  { %v3107_v53 = vmul.f32 %v3105_v10, %v3100_v33 }
0x245d   :  { %v3062_v8 = vpop.permute.xlu1 %3061 }
0x245e   :  { %v3064_v21 = vmul.f32 %v3062_v8, %v3052_v34 }
0x2460   :  { %3066 = vrot.lane.b32.xlu2 %v3064_v21, %s3558_s4 }
0x24b0   :  { %v3110_v52 = vpop.permute.xlu0 %3109 }
0x24b1   :  { %v3112_v22 = vmul.f32 %v3110_v52, %v3100_v33 }
0x24b3   :  { %3114 = vrot.lane.b32.xlu1 %v3112_v22, %s3558_s4 }
0x24b8   :  { %v3057_v17 = vpop.permute.xlu0 %3056 }
0x24b9   :  { %v3059_v48 = vmul.f32 %v3057_v17, %v3052_v34 }
0x24ba   :  { %v3067_v47 = vpop.permute.xlu2 %3066 }
0x24bb   :  { %v3069_v1 = vadd.f32 %v3067_v47, %v3059_v48 }
0x24bd   :  { %3548 = vtanh.f32 %v3069_v1 }
0x24c3   :  { %v3549_v58 = vpop.eup %3548 }
0x24c4   :  { %3072 = vrot.lane.b32.xlu1 %v3549_v58, %s3557_s0 }
0x2525   :  { %v3115_v6 = vpop.permute.xlu1 %3114 }
0x2526   :  { %v3117_v31 = vadd.f32 %v3115_v6, %v3107_v53 }
0x2528   :  { %3550 = vtanh.f32 %v3117_v31 }
0x252e   :  { %v3551_v12 = vpop.eup %3550 }
0x252f   :  { %3120 = vrot.lane.b32.xlu0 %v3551_v12, %s3557_s0 }
0x2536   :  { %v3073_v11 = vpop.permute.xlu1 %3072 }
0x2537   :  { %v3075_v25 = vmul.f32 %v3073_v11, %v3052_v34 }
0x2539   :  { %3077 = vrot.lane.b32.xlu0 %v3075_v25, %s3558_s4 }
0x25a1   :  { %v3121_v40 = vpop.permute.xlu0 %3120 }
0x25a2   :  { %v3123_v39 = vmul.f32 %v3121_v40, %v3100_v33 }
0x25a4   :  { %3125 = vrot.lane.b32.xlu2 %v3123_v39, %s3558_s4 }
0x25ab   :  { %v3078_v35 = vpop.permute.xlu0 %3077 }
0x25ac   :  { %v3080_v59 = vmul.f32 %v3554_v23, %v3078_v35 }
0x25ae   :  { %v3082_v16 = vadd.f32 %v3081_v30, %v3080_v59 }
0x25b0   :  { %3290 = vmatmul.msk.f32.vlgmr.msra.gmra.mxu3 %vm201_vm8, %v3082_v16 }
0x25fe   :  { %v3126_v44 = vpop.permute.xlu2 %3125 }
0x25ff   :  { %v3128_v3 = vmul.f32 %v3555_v46, %v3126_v44 }
0x2601   :  { %v3130_v9 = vmul.f32 %v3129_v54, %v3128_v3 }
0x2603   :  { %v3131_v4 = vadd.f32 %v3130_v9, %v4868_v51 }
0x2605   :  { %3289 = vmatmul.msk.f32.vlgmr.msra.gmra.mxu2 %vm201_vm8, %v3131_v4 }
0x2633   :  { %v3183_v56 = vpop.f32.mrf.mxu3 }
0x2688   :  { %v3160_v60 = vpop.f32.mrf.mxu2 }
0x2689   :  { %v3184_v37 = vadd.f32 %v3183_v56, %v3160_v60 }
0x268b   :  { %v3190_v27 = vadd.f32 %v3295_v57, %v3184_v37 }
0x268d   :  { %3192 = vst.msk [vmem:[%s4948_s15] sm:$0xff] %vm3191_vm9, %v3190_v27 }

</bundles_post_ra>
